<compile_context>
chip_gen: v7x
topology: tpu7x:2x2x1
jax: 0.10.0
libtpu: 0.0.40
codegen_flags: <defaults>
</compile_context>

<pallas_src>
import functools

import jax
import jax.numpy as jnp
from jax.experimental import pallas as pl
from jax.experimental.pallas import tpu as pltpu

EPS = 1e-5          # nn.BatchNorm2d default eps
NEG_SLOPE = 0.01    # nn.LeakyReLU default negative_slope
LANE = 128          # TPU lane width — channel axes are zero-padded to a multiple of this


# ---------------------------------------------------------------------------
# small static helpers
# ---------------------------------------------------------------------------
def _round_up(n, m):
    return ((n + m - 1) // m) * m


def _pick_m_tile(m, cap=2048):
    """Largest multiple-of-8 divisor of m that is <= cap, keeping >= 2 grid steps when
    possible so both v7x TensorCores get work on 'parallel' axes."""
    limit = min(cap, m // 2) if m >= 16 else min(cap, m)
    limit = max(limit, 8)
    best = None
    for c in range(8, min(m, limit) + 1, 8):
        if m % c == 0:
            best = c
    return best if best is not None else m


def _leaky(x):
    return jnp.where(x >= 0, x, NEG_SLOPE * x)


def _tile_stats(y, cnt):
    """Per-tile BN partials: (sum, sum of squared deviations from the TILE mean).
    Centered form avoids the E[x^2]-E[x]^2 cancellation in the finalize."""
    s = jnp.sum(y, axis=0, keepdims=True)
    mean = s * (1.0 / cnt)
    d = y - mean
    ssd = jnp.sum(d * d, axis=0, keepdims=True)
    return jnp.concatenate([s, ssd], axis=0)           # (2, C) f32


# ---------------------------------------------------------------------------
# Pass 1: fused (conv1 | identity_block) 1x1 matmul + BN1 partial statistics.
# The "fused" variant also applies the previous block's BN2 + residual + LeakyReLU.
# ---------------------------------------------------------------------------
def _mm_cat_tail(xb, w_ref, y1_ref, res_ref, st_ref):
    cpi = y1_ref.shape[-1]
    ycat = jnp.dot(xb, w_ref[...], preferred_element_type=jnp.float32)
    y1 = ycat[:, :cpi]                                  # conv1 branch (pre-BN1, f32)
    y1_ref[...] = y1.astype(y1_ref.dtype)               # bf16 inter-pass storage
    res_ref[...] = ycat[:, cpi:].astype(res_ref.dtype)  # identity_block branch (bf16)
    st_ref[...] = _tile_stats(y1, y1.shape[0]).reshape(1, 2, cpi)


def _pass1_first_kernel(x_ref, w_ref, y1_ref, res_ref, st_ref):
    _mm_cat_tail(x_ref[...].astype(jnp.bfloat16), w_ref, y1_ref, res_ref, st_ref)


def _pass1_fused_kernel(y2_ref, rin_ref, sc_ref, sh_ref, w_ref, y1_ref, res_ref, st_ref):
    # previous block epilogue fused as a prologue: BN2 + residual add + LeakyReLU (f32 math)
    x = _leaky(y2_ref[...].astype(jnp.float32) * sc_ref[...] + sh_ref[...]
               + rin_ref[...].astype(jnp.float32))
    _mm_cat_tail(x.astype(jnp.bfloat16), w_ref, y1_ref, res_ref, st_ref)


def _pass1_common(kernel, ins, in_specs, m, cpi, cpo, flops, bytes_accessed):
    tm = _pick_m_tile(m)
    n_t = m // tm
    cost = pl.CostEstimate(flops=flops, transcendentals=0, bytes_accessed=bytes_accessed)
    return pl.pallas_call(
        kernel,
        out_shape=(
            jax.ShapeDtypeStruct((m, cpi), jnp.bfloat16),            # y1 (pre-BN1)
            jax.ShapeDtypeStruct((m, cpo), jnp.bfloat16),            # residual branch
            jax.ShapeDtypeStruct((n_t, 2, cpi), jnp.float32),        # per-tile BN1 stats
        ),
        grid=(n_t,),
        in_specs=in_specs(tm),
        out_specs=(
            pl.BlockSpec((tm, cpi), lambda i: (i, 0)),
            pl.BlockSpec((tm, cpo), lambda i: (i, 0)),
            pl.BlockSpec((1, 2, cpi), lambda i: (i, 0, 0)),
        ),
        compiler_params=pltpu.CompilerParams(dimension_semantics=("parallel",)),
        cost_estimate=cost,
    )(*ins)


def pass1_first(xf, wcat, cpi, cpo):
    m = xf.shape[0]

    def in_specs(tm):
        return [
            pl.BlockSpec((tm, cpi), lambda i: (i, 0)),
            pl.BlockSpec((cpi, cpi + cpo), lambda i: (0, 0)),
        ]

    return _pass1_common(
        _pass1_first_kernel, (xf, wcat), in_specs, m, cpi, cpo,
        flops=2 * m * cpi * (cpi + cpo),
        bytes_accessed=4 * m * cpi + 2 * m * (cpi + cpo) + 2 * cpi * (cpi + cpo))


def pass1_fused(y2_prev, res_prev, sc2, sh2, wcat, cpi, cpo):
    m = y2_prev.shape[0]
    assert y2_prev.shape[1] == cpi and res_prev.shape[1] == cpi

    def in_specs(tm):
        return [
            pl.BlockSpec((tm, cpi), lambda i: (i, 0)),
            pl.BlockSpec((tm, cpi), lambda i: (i, 0)),
            pl.BlockSpec((1, cpi), lambda i: (0, 0)),
            pl.BlockSpec((1, cpi), lambda i: (0, 0)),
            pl.BlockSpec((cpi, cpi + cpo), lambda i: (0, 0)),
        ]

    return _pass1_common(
        _pass1_fused_kernel, (y2_prev, res_prev, sc2, sh2, wcat), in_specs, m, cpi, cpo,
        flops=2 * m * cpi * (cpi + cpo) + 6 * m * cpi,
        bytes_accessed=4 * m * cpi + 2 * m * (cpi + cpo) + 2 * cpi * (cpi + cpo))


# ---------------------------------------------------------------------------
# Pass 2: 3x3 conv, one whole image per grid step (BlockSpec pipelining hides the HBM
# fetch).  BN1 + LeakyReLU applied on the fly; conv2 zero-padding built in VMEM with
# zeros baked into the padded slab; kw taps packed along K (3 matmuls, K = 3*cpi).
# ---------------------------------------------------------------------------
def _conv3x3_kernel(y1_ref, sc_ref, sh_ref, w2_ref, y2_ref, st_ref, *, h, w):
    cpi = y1_ref.shape[-1]
    cpo = y2_ref.shape[-1]
    x = y1_ref[0].astype(jnp.float32)                                   # (h, w, cpi)
    xn = _leaky(x * sc_ref[...].reshape(1, 1, cpi) + sh_ref[...].reshape(1, 1, cpi))
    # conv2's zero padding is applied AFTER bn1/lrelu -> bake zeros into the padded slab
    # (f32 concats, then a single cast; no full-window iota mask).
    zrow = jnp.zeros((1, w, cpi), jnp.float32)
    zcol = jnp.zeros((h + 2, 1, cpi), jnp.float32)
    xr = jnp.concatenate([zrow, xn, zrow], axis=0)                      # (h+2, w,   cpi)
    xpad = jnp.concatenate([zcol, xr, zcol], axis=1)                    # (h+2, w+2, cpi)
    # pack the 3 width (kw) taps along the contraction axis -> K = 3*cpi fills the 256-deep
    # MXU on v6e/v7x and cuts slice copies + matmul issues from 9 to 3 (harmless on v5e).
    xp = jnp.concatenate(
        [xpad[:, 0:w, :], xpad[:, 1:w + 1, :], xpad[:, 2:w + 2, :]], axis=-1)
    xp = xp.astype(jnp.bfloat16)                                        # bf16 MXU operand
    acc = jnp.zeros((h * w, cpo), jnp.float32)
    for kh in range(3):                                                 # no im2col
        acc = acc + jnp.dot(xp[kh:kh + h].reshape(h * w, 3 * cpi), w2_ref[kh],
                            preferred_element_type=jnp.float32)
    y2_ref[...] = acc.astype(y2_ref.dtype)                              # bf16 store
    st_ref[...] = _tile_stats(acc, h * w).reshape(1, 2, cpo)            # BN2 partials (f32)


def conv3x3_bn_stats(y1_img, scale1, shift1, w2p, n_b, h, w, cpi, cpo):
    m = n_b * h * w
    kernel = functools.partial(_conv3x3_kernel, h=h, w=w)
    cost = pl.CostEstimate(
        flops=18 * m * cpi * cpo + 8 * m * cpi,
        transcendentals=0,
        bytes_accessed=2 * m * cpi + 2 * m * cpo + 2 * 9 * cpi * cpo,
    )
    # rough per-image working set: pipelined (double-buffered) blocks + in-kernel temps.
    need = (2 * (h * w * cpi * 2 + 9 * cpi * cpo * 2 + h * w * cpo * 2)
            + (h + 2) * (w + 2) * cpi * 4 + (h + 2) * w * 3 * cpi * (4 + 2)
            + h * w * cpo * 4 + h * w * cpi * 4)
    vmem_limit = None if need <= 12 * 1024 * 1024 else int(min(2 * need, 48 * 1024 * 1024))
    # TODO(synk): for very large H*W*C add a row-tiled (halo) variant instead of raising the
    # VMEM limit (v7x has only 64 MiB physical VMEM per TensorCore).
    return pl.pallas_call(
        kernel,
        out_shape=(
            jax.ShapeDtypeStruct((m, cpo), jnp.bfloat16),               # conv2 out (pre-BN2)
            jax.ShapeDtypeStruct((n_b, 2, cpo), jnp.float32),           # per-image BN2 stats
        ),
        grid=(n_b,),
        in_specs=[
            pl.BlockSpec((1, h, w, cpi), lambda n: (n, 0, 0, 0)),       # whole image (bf16)
            pl.BlockSpec((1, cpi), lambda n: (0, 0)),                   # BN1 scale
            pl.BlockSpec((1, cpi), lambda n: (0, 0)),                   # BN1 shift
            pl.BlockSpec((3, 3 * cpi, cpo), lambda n: (0, 0, 0)),       # kw-packed taps
        ],
        out_specs=(
            pl.BlockSpec((h * w, cpo), lambda n: (n, 0)),
            pl.BlockSpec((1, 2, cpo), lambda n: (n, 0, 0)),
        ),
        compiler_params=pltpu.CompilerParams(
            dimension_semantics=("parallel",), vmem_limit_bytes=vmem_limit),
        cost_estimate=cost,
    )(y1_img, scale1, shift1, w2p)


# ---------------------------------------------------------------------------
# Final epilogue (last block only, end=True): BN2 + residual add + tanh
# ---------------------------------------------------------------------------
def _bn_res_tanh_kernel(y_ref, r_ref, sc_ref, sh_ref, o_ref):
    out = (y_ref[...].astype(jnp.float32) * sc_ref[...] + sh_ref[...]
           + r_ref[...].astype(jnp.float32))
    o_ref[...] = jnp.tanh(out)


def bn_res_tanh(y2, res, sc2, sh2):
    m, cpo = y2.shape
    tm = _pick_m_tile(m)
    n_t = m // tm
    cost = pl.CostEstimate(flops=4 * m * cpo, transcendentals=m * cpo,
                           bytes_accessed=2 * 2 * m * cpo + 4 * m * cpo)
    return pl.pallas_call(
        _bn_res_tanh_kernel,
        out_shape=jax.ShapeDtypeStruct((m, cpo), jnp.float32),
        grid=(n_t,),
        in_specs=[
            pl.BlockSpec((tm, cpo), lambda i: (i, 0)),
            pl.BlockSpec((tm, cpo), lambda i: (i, 0)),
            pl.BlockSpec((1, cpo), lambda i: (0, 0)),
            pl.BlockSpec((1, cpo), lambda i: (0, 0)),
        ],
        out_specs=pl.BlockSpec((tm, cpo), lambda i: (i, 0)),
        compiler_params=pltpu.CompilerParams(dimension_semantics=("parallel",)),
        cost_estimate=cost,
    )(y2, res, sc2, sh2)


# ---------------------------------------------------------------------------
# BN finalize (tiny per-channel math, Chan-style stable combine) + params + wrappers
# ---------------------------------------------------------------------------
def _bn_scale_shift(stats, gamma, beta, m_total):
    n_t = stats.shape[0]
    cnt = m_total // n_t                              # all tiles have equal element count
    sums = stats[:, 0, :]
    ssds = stats[:, 1, :]
    mean_t = sums / cnt
    mu = jnp.sum(sums, axis=0) / m_total
    m2 = jnp.sum(ssds, axis=0) + cnt * jnp.sum((mean_t - mu) ** 2, axis=0)
    var = jnp.maximum(m2 / m_total, 0.0)              # biased (training-mode) variance
    scale = gamma * jax.lax.rsqrt(var + EPS)
    shift = beta - mu * scale
    return scale.reshape(1, -1), shift.reshape(1, -1)


def init_res_block(key, cin, cout, scale=0.1):
    cpi = _round_up(cin, LANE)
    cpo = _round_up(cout, LANE)
    k1, k2, k3 = jax.random.split(key, 3)
    w1 = jax.random.normal(k1, (cin, cin), jnp.float32) * scale          # conv1 (1x1)
    wid = jax.random.normal(k3, (cin, cout), jnp.float32) * scale        # identity_block
    w2 = jax.random.normal(k2, (3, 3, cin, cout), jnp.float32) * scale   # conv2 (HWIO taps)
    w1p = jnp.pad(w1, ((0, cpi - cin), (0, cpi - cin)))
    widp = jnp.pad(wid, ((0, cpi - cin), (0, cpo - cout)))
    wcat = jnp.concatenate([w1p, widp], axis=1).astype(jnp.bfloat16)     # (cpi, cpi+cpo)
    w2p = jnp.pad(w2, ((0, 0), (0, 0), (0, cpi - cin), (0, cpo - cout)))
    # pack kw taps along the contraction axis: (3, 3*cpi, cpo), rows ordered kw*cpi + ci
    w2p = w2p.reshape(3, 3 * cpi, cpo).astype(jnp.bfloat16)
    return dict(
        wcat=wcat, w2=w2p,
        g1=jnp.ones((cpi,), jnp.float32), b1=jnp.zeros((cpi,), jnp.float32),  # BN defaults
        g2=jnp.ones((cpo,), jnp.float32), b2=jnp.zeros((cpo,), jnp.float32),
    )


def init_decoder(key, in_channels, out_channels):
    ks = jax.random.split(key, 4)
    return [
        init_res_block(ks[0], in_channels * 8, in_channels * 4),
        init_res_block(ks[1], in_channels * 4, in_channels * 2),
        init_res_block(ks[2], in_channels * 2, in_channels),
        init_res_block(ks[3], in_channels, out_channels),
    ]


@functools.partial(jax.jit, static_argnums=(2,))
def decoder_forward(x_nchw, params, out_channels):
    n_b, c0, h, w = x_nchw.shape
    cp0 = params[0]["wcat"].shape[0]
    m = n_b * h * w
    feat = jnp.transpose(x_nchw, (0, 2, 3, 1))                        # NCHW -> NHWC
    feat = jnp.pad(feat, ((0, 0), (0, 0), (0, 0), (0, cp0 - c0)))     # lane-dense channels
    xf = feat.reshape(m, cp0)

    state = None   # (y2, res, sc2, sh2) of the previous block, epilogue fused downstream
    for bi, p in enumerate(params):
        cpi = p["wcat"].shape[0]
        cpo = p["w2"].shape[-1]
        if bi == 0:
            y1, res, st1 = pass1_first(xf, p["wcat"], cpi, cpo)
        else:
            y2p, resp, sc2p, sh2p = state
            y1, res, st1 = pass1_fused(y2p, resp, sc2p, sh2p, p["wcat"], cpi, cpo)
        sc1, sh1 = _bn_scale_shift(st1, p["g1"], p["b1"], m)
        y2, st2 = conv3x3_bn_stats(y1.reshape(n_b, h, w, cpi), sc1, sh1, p["w2"],
                                   n_b, h, w, cpi, cpo)
        sc2, sh2 = _bn_scale_shift(st2, p["g2"], p["b2"], m)
        state = (y2, res, sc2, sh2)

    y2, res, sc2, sh2 = state
    out = bn_res_tanh(y2, res, sc2, sh2)                              # end=True -> tanh
    out = out.reshape(n_b, h, w, -1)[..., :out_channels]              # drop channel padding
    return jnp.transpose(out, (0, 3, 1, 2))                           # back to NCHW


if __name__ == "__main__":
    key = jax.random.PRNGKey(0)
    in_ch, out_ch = 4, 3
    n_b, h, w = 2, 16, 16
    kx, kp = jax.random.split(key)

    # decoder input has in_channels*8 channels (NCHW, matching the PyTorch module)
    x = jax.random.normal(kx, (n_b, in_ch * 8, h, w), jnp.float32)
    params = init_decoder(kp, in_ch, out_ch)

    y = decoder_forward(x, params, out_ch)
    jax.block_until_ready(y)
    assert y.shape == (n_b, out_ch, h, w), y.shape
    assert bool(jnp.all(jnp.isfinite(y))), "non-finite output"
    print("KERNEL_OK")
</pallas_src>

<mosaic_0001>
module attributes {stable_mosaic.version = 11 : i64} {
  func.func @_pass1_first_kernel(%arg0: i32, %arg1: memref<256x128xf32, #tpu.memory_space<vmem>>, %arg2: memref<128x256xbf16, #tpu.memory_space<vmem>>, %arg3: memref<256x128xbf16, #tpu.memory_space<vmem>>, %arg4: memref<256x128xbf16, #tpu.memory_space<vmem>>, %arg5: memref<1x2x128xf32, #tpu.memory_space<vmem>>) attributes {dimension_semantics = [#tpu.dimension_semantics<parallel>], iteration_bounds = array<i64: 2>, scalar_prefetch = 0 : i64, scratch_operands = 0 : i64, tpu.core_type = #tpu.core_type<tc>, window_params = [{transform_indices = @transform_0, window_bounds = array<i64: 256, 128>}, {pipeline_mode = #tpu.pipeline_mode<synchronous>, transform_indices = @transform_1, window_bounds = array<i64: 128, 256>}, {transform_indices = @transform_2, window_bounds = array<i64: 256, 128>}, {transform_indices = @transform_3, window_bounds = array<i64: 256, 128>}, {transform_indices = @transform_4, window_bounds = array<i64: 1, 2, 128>}]} {
    %c0 = arith.constant 0 : index
    %c0_0 = arith.constant 0 : index
    %0 = vector.load %arg1[%c0, %c0_0] : memref<256x128xf32, #tpu.memory_space<vmem>>, vector<256x128xf32>
    %1 = arith.truncf %0 : vector<256x128xf32> to vector<256x128xbf16>
    %c0_1 = arith.constant 0 : index
    %c0_2 = arith.constant 0 : index
    %2 = vector.load %arg2[%c0_1, %c0_2] : memref<128x256xbf16, #tpu.memory_space<vmem>>, vector<128x256xbf16>
    %cst = arith.constant dense<0.000000e+00> : vector<256x256xf32>
    %3 = tpu.matmul %1, %2, %cst {dimension_numbers = #tpu.dot_dimension_numbers<[1], [0], [0], [1], [0, 0, 1, 1], [], []>} : vector<256x128xbf16>, vector<128x256xbf16>, vector<256x256xf32> -> vector<256x256xf32>
    %4 = vector.extract_strided_slice %3 {offsets = [0, 0], sizes = [256, 128], strides = [1, 1]} : vector<256x256xf32> to vector<256x128xf32>
    %5 = arith.truncf %4 : vector<256x128xf32> to vector<256x128xbf16>
    %c0_3 = arith.constant 0 : index
    %c0_4 = arith.constant 0 : index
    %6 = vector.load %arg3[%c0_3, %c0_4] : memref<256x128xbf16, #tpu.memory_space<vmem>>, vector<256x128xbf16>
    tpu.vector_store %arg3[%c0_3, %c0_4], %5 {strides = array<i32>} : memref<256x128xbf16, #tpu.memory_space<vmem>>, vector<256x128xbf16>,
    %7 = vector.extract_strided_slice %3 {offsets = [0, 128], sizes = [256, 128], strides = [1, 1]} : vector<256x256xf32> to vector<256x128xf32>
    %8 = arith.truncf %7 : vector<256x128xf32> to vector<256x128xbf16>
    %c0_5 = arith.constant 0 : index
    %c0_6 = arith.constant 0 : index
    %9 = vector.load %arg4[%c0_5, %c0_6] : memref<256x128xbf16, #tpu.memory_space<vmem>>, vector<256x128xbf16>
    tpu.vector_store %arg4[%c0_5, %c0_6], %8 {strides = array<i32>} : memref<256x128xbf16, #tpu.memory_space<vmem>>, vector<256x128xbf16>,
    %cst_7 = arith.constant dense<0.000000e+00> : vector<128xf32>
    %10 = vector.multi_reduction <add>, %4, %cst_7 [0] : vector<256x128xf32> to vector<128xf32>
    %11 = vector.shape_cast %10 : vector<128xf32> to vector<1x128xf32>
    %cst_8 = arith.constant 3.906250e-03 : f32
    %12 = vector.broadcast %cst_8 : f32 to vector<1x128xf32>
    %13 = arith.mulf %11, %12 : vector<1x128xf32>
    %14 = vector.broadcast %13 : vector<1x128xf32> to vector<256x128xf32>
    %15 = arith.subf %4, %14 : vector<256x128xf32>
    %16 = arith.mulf %15, %15 : vector<256x128xf32>
    %cst_9 = arith.constant dense<0.000000e+00> : vector<128xf32>
    %17 = vector.multi_reduction <add>, %16, %cst_9 [0] : vector<256x128xf32> to vector<128xf32>
    %18 = vector.shape_cast %17 : vector<128xf32> to vector<1x128xf32>
    %19 = tpu.concatenate %11, %18 in 0 : vector<1x128xf32>, vector<1x128xf32> -> vector<2x128xf32>
    %20 = vector.shape_cast %19 : vector<2x128xf32> to vector<1x2x128xf32>
    %c0_10 = arith.constant 0 : index
    %c0_11 = arith.constant 0 : index
    %c0_12 = arith.constant 0 : index
    %21 = vector.load %arg5[%c0_10, %c0_11, %c0_12] : memref<1x2x128xf32, #tpu.memory_space<vmem>>, vector<1x2x128xf32>
    tpu.vector_store %arg5[%c0_10, %c0_11, %c0_12], %20 {strides = array<i32>} : memref<1x2x128xf32, #tpu.memory_space<vmem>>, vector<1x2x128xf32>,
    return
  }
  func.func @transform_0(%arg0: i32) -> (i32, i32) {
    %c0_i32 = arith.constant 0 : i32
    %c0_i32_0 = arith.constant 0 : i32
    return %arg0, %c0_i32 : i32, i32
  }
  func.func @transform_1(%arg0: i32) -> (i32, i32) {
    %c0_i32 = arith.constant 0 : i32
    %c0_i32_0 = arith.constant 0 : i32
    %c0_i32_1 = arith.constant 0 : i32
    return %c0_i32, %c0_i32_0 : i32, i32
  }
  func.func @transform_2(%arg0: i32) -> (i32, i32) {
    %c0_i32 = arith.constant 0 : i32
    %c0_i32_0 = arith.constant 0 : i32
    return %arg0, %c0_i32 : i32, i32
  }
  func.func @transform_3(%arg0: i32) -> (i32, i32) {
    %c0_i32 = arith.constant 0 : i32
    %c0_i32_0 = arith.constant 0 : i32
    return %arg0, %c0_i32 : i32, i32
  }
  func.func @transform_4(%arg0: i32) -> (i32, i32, i32) {
    %c0_i32 = arith.constant 0 : i32
    %c0_i32_0 = arith.constant 0 : i32
    %c0_i32_1 = arith.constant 0 : i32
    return %arg0, %c0_i32, %c0_i32_0 : i32, i32, i32
  }
}

module attributes {stable_mosaic.version = 11 : i64} {
  func.func @_bn_res_tanh_kernel(%arg0: i32, %arg1: memref<256x128xbf16, #tpu.memory_space<vmem>>, %arg2: memref<256x128xbf16, #tpu.memory_space<vmem>>, %arg3: memref<1x128xf32, #tpu.memory_space<vmem>>, %arg4: memref<1x128xf32, #tpu.memory_space<vmem>>, %arg5: memref<256x128xf32, #tpu.memory_space<vmem>>) attributes {dimension_semantics = [#tpu.dimension_semantics<parallel>], iteration_bounds = array<i64: 2>, scalar_prefetch = 0 : i64, scratch_operands = 0 : i64, tpu.core_type = #tpu.core_type<tc>, window_params = [{transform_indices = @transform_0, window_bounds = array<i64: 256, 128>}, {transform_indices = @transform_1, window_bounds = array<i64: 256, 128>}, {pipeline_mode = #tpu.pipeline_mode<synchronous>, transform_indices = @transform_2, window_bounds = array<i64: 1, 128>}, {pipeline_mode = #tpu.pipeline_mode<synchronous>, transform_indices = @transform_3, window_bounds = array<i64: 1, 128>}, {transform_indices = @transform_4, window_bounds = array<i64: 256, 128>}]} {
    %c0 = arith.constant 0 : index
    %c0_0 = arith.constant 0 : index
    %0 = vector.load %arg1[%c0, %c0_0] : memref<256x128xbf16, #tpu.memory_space<vmem>>, vector<256x128xbf16>
    %1 = arith.extf %0 : vector<256x128xbf16> to vector<256x128xf32>
    %c0_1 = arith.constant 0 : index
    %c0_2 = arith.constant 0 : index
    %2 = vector.load %arg3[%c0_1, %c0_2] : memref<1x128xf32, #tpu.memory_space<vmem>>, vector<1x128xf32>
    %3 = vector.broadcast %2 : vector<1x128xf32> to vector<256x128xf32>
    %4 = arith.mulf %1, %3 : vector<256x128xf32>
    %c0_3 = arith.constant 0 : index
    %c0_4 = arith.constant 0 : index
    %5 = vector.load %arg4[%c0_3, %c0_4] : memref<1x128xf32, #tpu.memory_space<vmem>>, vector<1x128xf32>
    %6 = vector.broadcast %5 : vector<1x128xf32> to vector<256x128xf32>
    %7 = arith.addf %4, %6 : vector<256x128xf32>
    %c0_5 = arith.constant 0 : index
    %c0_6 = arith.constant 0 : index
    %8 = vector.load %arg2[%c0_5, %c0_6] : memref<256x128xbf16, #tpu.memory_space<vmem>>, vector<256x128xbf16>
    %9 = arith.extf %8 : vector<256x128xbf16> to vector<256x128xf32>
    %10 = arith.addf %7, %9 : vector<256x128xf32>
    %11 = math.tanh %10 : vector<256x128xf32>
    %c0_7 = arith.constant 0 : index
    %c0_8 = arith.constant 0 : index
    %12 = vector.load %arg5[%c0_7, %c0_8] : memref<256x128xf32, #tpu.memory_space<vmem>>, vector<256x128xf32>
    tpu.vector_store %arg5[%c0_7, %c0_8], %11 {strides = array<i32>} : memref<256x128xf32, #tpu.memory_space<vmem>>, vector<256x128xf32>,
    return
  }
  func.func @transform_0(%arg0: i32) -> (i32, i32) {
    %c0_i32 = arith.constant 0 : i32
    %c0_i32_0 = arith.constant 0 : i32
    return %arg0, %c0_i32 : i32, i32
  }
  func.func @transform_1(%arg0: i32) -> (i32, i32) {
    %c0_i32 = arith.constant 0 : i32
    %c0_i32_0 = arith.constant 0 : i32
    return %arg0, %c0_i32 : i32, i32
  }
  func.func @transform_2(%arg0: i32) -> (i32, i32) {
    %c0_i32 = arith.constant 0 : i32
    %c0_i32_0 = arith.constant 0 : i32
    %c0_i32_1 = arith.constant 0 : i32
    return %c0_i32, %c0_i32_0 : i32, i32
  }
  func.func @transform_3(%arg0: i32) -> (i32, i32) {
    %c0_i32 = arith.constant 0 : i32
    %c0_i32_0 = arith.constant 0 : i32
    %c0_i32_1 = arith.constant 0 : i32
    return %c0_i32, %c0_i32_0 : i32, i32
  }
  func.func @transform_4(%arg0: i32) -> (i32, i32) {
    %c0_i32 = arith.constant 0 : i32
    %c0_i32_0 = arith.constant 0 : i32
    return %arg0, %c0_i32 : i32, i32
  }
}

module attributes {stable_mosaic.version = 11 : i64} {
  func.func @_conv3x3_kernel(%arg0: i32, %arg1: memref<1x16x16x128xbf16, #tpu.memory_space<vmem>>, %arg2: memref<1x128xf32, #tpu.memory_space<vmem>>, %arg3: memref<1x128xf32, #tpu.memory_space<vmem>>, %arg4: memref<3x384x128xbf16, #tpu.memory_space<vmem>>, %arg5: memref<256x128xbf16, #tpu.memory_space<vmem>>, %arg6: memref<1x2x128xf32, #tpu.memory_space<vmem>>) attributes {dimension_semantics = [#tpu.dimension_semantics<parallel>], iteration_bounds = array<i64: 2>, scalar_prefetch = 0 : i64, scratch_operands = 0 : i64, tpu.core_type = #tpu.core_type<tc>, window_params = [{transform_indices = @transform_0, window_bounds = array<i64: 1, 16, 16, 128>}, {pipeline_mode = #tpu.pipeline_mode<synchronous>, transform_indices = @transform_1, window_bounds = array<i64: 1, 128>}, {pipeline_mode = #tpu.pipeline_mode<synchronous>, transform_indices = @transform_2, window_bounds = array<i64: 1, 128>}, {pipeline_mode = #tpu.pipeline_mode<synchronous>, transform_indices = @transform_3, window_bounds = array<i64: 3, 384, 128>}, {transform_indices = @transform_4, window_bounds = array<i64: 256, 128>}, {transform_indices = @transform_5, window_bounds = array<i64: 1, 2, 128>}]} {
    %c0 = arith.constant 0 : index
    %c0_0 = arith.constant 0 : index
    %c0_1 = arith.constant 0 : index
    %c0_2 = arith.constant 0 : index
    %0 = vector.load %arg1[%c0, %c0_0, %c0_1, %c0_2] : memref<1x16x16x128xbf16, #tpu.memory_space<vmem>>, vector<1x16x16x128xbf16>
    %1 = vector.shape_cast %0 : vector<1x16x16x128xbf16> to vector<16x16x128xbf16>
    %2 = arith.extf %1 : vector<16x16x128xbf16> to vector<16x16x128xf32>
    %c0_3 = arith.constant 0 : index
    %c0_4 = arith.constant 0 : index
    %3 = vector.load %arg2[%c0_3, %c0_4] : memref<1x128xf32, #tpu.memory_space<vmem>>, vector<1x128xf32>
    %4 = vector.shape_cast %3 : vector<1x128xf32> to vector<1x1x128xf32>
    %5 = vector.broadcast %4 : vector<1x1x128xf32> to vector<16x16x128xf32>
    %6 = arith.mulf %2, %5 : vector<16x16x128xf32>
    %c0_5 = arith.constant 0 : index
    %c0_6 = arith.constant 0 : index
    %7 = vector.load %arg3[%c0_5, %c0_6] : memref<1x128xf32, #tpu.memory_space<vmem>>, vector<1x128xf32>
    %8 = vector.shape_cast %7 : vector<1x128xf32> to vector<1x1x128xf32>
    %9 = vector.broadcast %8 : vector<1x1x128xf32> to vector<16x16x128xf32>
    %10 = arith.addf %6, %9 : vector<16x16x128xf32>
    %cst = arith.constant 0.000000e+00 : f32
    %11 = vector.broadcast %cst : f32 to vector<16x16x128xf32>
    %12 = arith.cmpf oge, %10, %11 : vector<16x16x128xf32>
    %cst_7 = arith.constant 0.00999999977 : f32
    %13 = vector.broadcast %cst_7 : f32 to vector<16x16x128xf32>
    %14 = arith.mulf %13, %10 : vector<16x16x128xf32>
    %15 = arith.select %12, %10, %14 : vector<16x16x128xi1>, vector<16x16x128xf32>
    %cst_8 = arith.constant 0.000000e+00 : f32
    %16 = vector.broadcast %cst_8 : f32 to vector<1x16x128xf32>
    %cst_9 = arith.constant 0.000000e+00 : f32
    %17 = vector.broadcast %cst_9 : f32 to vector<18x1x128xf32>
    %18 = tpu.concatenate %16, %15, %16 in 0 : vector<1x16x128xf32>, vector<16x16x128xf32>, vector<1x16x128xf32> -> vector<18x16x128xf32>
    %19 = tpu.concatenate %17, %18, %17 in 1 : vector<18x1x128xf32>, vector<18x16x128xf32>, vector<18x1x128xf32> -> vector<18x18x128xf32>
    %20 = vector.extract_strided_slice %19 {offsets = [0, 0, 0], sizes = [18, 16, 128], strides = [1, 1, 1]} : vector<18x18x128xf32> to vector<18x16x128xf32>
    %21 = vector.extract_strided_slice %19 {offsets = [0, 1, 0], sizes = [18, 16, 128], strides = [1, 1, 1]} : vector<18x18x128xf32> to vector<18x16x128xf32>
    %22 = vector.extract_strided_slice %19 {offsets = [0, 2, 0], sizes = [18, 16, 128], strides = [1, 1, 1]} : vector<18x18x128xf32> to vector<18x16x128xf32>
    %23 = tpu.concatenate %20, %21, %22 in 2 : vector<18x16x128xf32>, vector<18x16x128xf32>, vector<18x16x128xf32> -> vector<18x16x384xf32>
    %24 = arith.truncf %23 : vector<18x16x384xf32> to vector<18x16x384xbf16>
    %cst_10 = arith.constant 0.000000e+00 : f32
    %25 = vector.broadcast %cst_10 : f32 to vector<256x128xf32>
    %26 = vector.extract_strided_slice %24 {offsets = [0, 0, 0], sizes = [16, 16, 384], strides = [1, 1, 1]} : vector<18x16x384xbf16> to vector<16x16x384xbf16>
    %27 = vector.shape_cast %26 : vector<16x16x384xbf16> to vector<256x384xbf16>
    %c0_11 = arith.constant 0 : index
    %c0_12 = arith.constant 0 : index
    %c0_13 = arith.constant 0 : index
    %28 = vector.load %arg4[%c0_11, %c0_12, %c0_13] : memref<3x384x128xbf16, #tpu.memory_space<vmem>>, vector<1x384x128xbf16>
    %29 = vector.shape_cast %28 : vector<1x384x128xbf16> to vector<384x128xbf16>
    %cst_14 = arith.constant dense<0.000000e+00> : vector<256x128xf32>
    %30 = tpu.matmul %27, %29, %cst_14 {dimension_numbers = #tpu.dot_dimension_numbers<[1], [0], [0], [1], [0, 0, 1, 1], [], []>} : vector<256x384xbf16>, vector<384x128xbf16>, vector<256x128xf32> -> vector<256x128xf32>
    %31 = arith.addf %25, %30 : vector<256x128xf32>
    %32 = vector.extract_strided_slice %24 {offsets = [1, 0, 0], sizes = [16, 16, 384], strides = [1, 1, 1]} : vector<18x16x384xbf16> to vector<16x16x384xbf16>
    %33 = vector.shape_cast %32 : vector<16x16x384xbf16> to vector<256x384xbf16>
    %c1 = arith.constant 1 : index
    %c0_15 = arith.constant 0 : index
    %c0_16 = arith.constant 0 : index
    %34 = vector.load %arg4[%c1, %c0_15, %c0_16] : memref<3x384x128xbf16, #tpu.memory_space<vmem>>, vector<1x384x128xbf16>
    %35 = vector.shape_cast %34 : vector<1x384x128xbf16> to vector<384x128xbf16>
    %cst_17 = arith.constant dense<0.000000e+00> : vector<256x128xf32>
    %36 = tpu.matmul %33, %35, %cst_17 {dimension_numbers = #tpu.dot_dimension_numbers<[1], [0], [0], [1], [0, 0, 1, 1], [], []>} : vector<256x384xbf16>, vector<384x128xbf16>, vector<256x128xf32> -> vector<256x128xf32>
    %37 = arith.addf %31, %36 : vector<256x128xf32>
    %38 = vector.extract_strided_slice %24 {offsets = [2, 0, 0], sizes = [16, 16, 384], strides = [1, 1, 1]} : vector<18x16x384xbf16> to vector<16x16x384xbf16>
    %39 = vector.shape_cast %38 : vector<16x16x384xbf16> to vector<256x384xbf16>
    %c2 = arith.constant 2 : index
    %c0_18 = arith.constant 0 : index
    %c0_19 = arith.constant 0 : index
    %40 = vector.load %arg4[%c2, %c0_18, %c0_19] : memref<3x384x128xbf16, #tpu.memory_space<vmem>>, vector<1x384x128xbf16>
    %41 = vector.shape_cast %40 : vector<1x384x128xbf16> to vector<384x128xbf16>
    %cst_20 = arith.constant dense<0.000000e+00> : vector<256x128xf32>
    %42 = tpu.matmul %39, %41, %cst_20 {dimension_numbers = #tpu.dot_dimension_numbers<[1], [0], [0], [1], [0, 0, 1, 1], [], []>} : vector<256x384xbf16>, vector<384x128xbf16>, vector<256x128xf32> -> vector<256x128xf32>
    %43 = arith.addf %37, %42 : vector<256x128xf32>
    %44 = arith.truncf %43 : vector<256x128xf32> to vector<256x128xbf16>
    %c0_21 = arith.constant 0 : index
    %c0_22 = arith.constant 0 : index
    %45 = vector.load %arg5[%c0_21, %c0_22] : memref<256x128xbf16, #tpu.memory_space<vmem>>, vector<256x128xbf16>
    tpu.vector_store %arg5[%c0_21, %c0_22], %44 {strides = array<i32>} : memref<256x128xbf16, #tpu.memory_space<vmem>>, vector<256x128xbf16>,
    %cst_23 = arith.constant dense<0.000000e+00> : vector<128xf32>
    %46 = vector.multi_reduction <add>, %43, %cst_23 [0] : vector<256x128xf32> to vector<128xf32>
    %47 = vector.shape_cast %46 : vector<128xf32> to vector<1x128xf32>
    %cst_24 = arith.constant 3.906250e-03 : f32
    %48 = vector.broadcast %cst_24 : f32 to vector<1x128xf32>
    %49 = arith.mulf %47, %48 : vector<1x128xf32>
    %50 = vector.broadcast %49 : vector<1x128xf32> to vector<256x128xf32>
    %51 = arith.subf %43, %50 : vector<256x128xf32>
    %52 = arith.mulf %51, %51 : vector<256x128xf32>
    %cst_25 = arith.constant dense<0.000000e+00> : vector<128xf32>
    %53 = vector.multi_reduction <add>, %52, %cst_25 [0] : vector<256x128xf32> to vector<128xf32>
    %54 = vector.shape_cast %53 : vector<128xf32> to vector<1x128xf32>
    %55 = tpu.concatenate %47, %54 in 0 : vector<1x128xf32>, vector<1x128xf32> -> vector<2x128xf32>
    %56 = vector.shape_cast %55 : vector<2x128xf32> to vector<1x2x128xf32>
    %c0_26 = arith.constant 0 : index
    %c0_27 = arith.constant 0 : index
    %c0_28 = arith.constant 0 : index
    %57 = vector.load %arg6[%c0_26, %c0_27, %c0_28] : memref<1x2x128xf32, #tpu.memory_space<vmem>>, vector<1x2x128xf32>
    tpu.vector_store %arg6[%c0_26, %c0_27, %c0_28], %56 {strides = array<i32>} : memref<1x2x128xf32, #tpu.memory_space<vmem>>, vector<1x2x128xf32>,
    return
  }
  func.func @transform_0(%arg0: i32) -> (i32, i32, i32, i32) {
    %c0_i32 = arith.constant 0 : i32
    %c0_i32_0 = arith.constant 0 : i32
    %c0_i32_1 = arith.constant 0 : i32
    %c0_i32_2 = arith.constant 0 : i32
    return %arg0, %c0_i32, %c0_i32_0, %c0_i32_1 : i32, i32, i32, i32
  }
  func.func @transform_1(%arg0: i32) -> (i32, i32) {
    %c0_i32 = arith.constant 0 : i32
    %c0_i32_0 = arith.constant 0 : i32
    %c0_i32_1 = arith.constant 0 : i32
    return %c0_i32, %c0_i32_0 : i32, i32
  }
  func.func @transform_2(%arg0: i32) -> (i32, i32) {
    %c0_i32 = arith.constant 0 : i32
    %c0_i32_0 = arith.constant 0 : i32
    %c0_i32_1 = arith.constant 0 : i32
    return %c0_i32, %c0_i32_0 : i32, i32
  }
  func.func @transform_3(%arg0: i32) -> (i32, i32, i32) {
    %c0_i32 = arith.constant 0 : i32
    %c0_i32_0 = arith.constant 0 : i32
    %c0_i32_1 = arith.constant 0 : i32
    %c0_i32_2 = arith.constant 0 : i32
    return %c0_i32, %c0_i32_0, %c0_i32_1 : i32, i32, i32
  }
  func.func @transform_4(%arg0: i32) -> (i32, i32) {
    %c0_i32 = arith.constant 0 : i32
    %c0_i32_0 = arith.constant 0 : i32
    return %arg0, %c0_i32 : i32, i32
  }
  func.func @transform_5(%arg0: i32) -> (i32, i32, i32) {
    %c0_i32 = arith.constant 0 : i32
    %c0_i32_0 = arith.constant 0 : i32
    %c0_i32_1 = arith.constant 0 : i32
    return %arg0, %c0_i32, %c0_i32_0 : i32, i32, i32
  }
}

module attributes {stable_mosaic.version = 11 : i64} {
  func.func @_pass1_fused_kernel(%arg0: i32, %arg1: memref<256x128xbf16, #tpu.memory_space<vmem>>, %arg2: memref<256x128xbf16, #tpu.memory_space<vmem>>, %arg3: memref<1x128xf32, #tpu.memory_space<vmem>>, %arg4: memref<1x128xf32, #tpu.memory_space<vmem>>, %arg5: memref<128x256xbf16, #tpu.memory_space<vmem>>, %arg6: memref<256x128xbf16, #tpu.memory_space<vmem>>, %arg7: memref<256x128xbf16, #tpu.memory_space<vmem>>, %arg8: memref<1x2x128xf32, #tpu.memory_space<vmem>>) attributes {dimension_semantics = [#tpu.dimension_semantics<parallel>], iteration_bounds = array<i64: 2>, scalar_prefetch = 0 : i64, scratch_operands = 0 : i64, tpu.core_type = #tpu.core_type<tc>, window_params = [{transform_indices = @transform_0, window_bounds = array<i64: 256, 128>}, {transform_indices = @transform_1, window_bounds = array<i64: 256, 128>}, {pipeline_mode = #tpu.pipeline_mode<synchronous>, transform_indices = @transform_2, window_bounds = array<i64: 1, 128>}, {pipeline_mode = #tpu.pipeline_mode<synchronous>, transform_indices = @transform_3, window_bounds = array<i64: 1, 128>}, {pipeline_mode = #tpu.pipeline_mode<synchronous>, transform_indices = @transform_4, window_bounds = array<i64: 128, 256>}, {transform_indices = @transform_5, window_bounds = array<i64: 256, 128>}, {transform_indices = @transform_6, window_bounds = array<i64: 256, 128>}, {transform_indices = @transform_7, window_bounds = array<i64: 1, 2, 128>}]} {
    %c0 = arith.constant 0 : index
    %c0_0 = arith.constant 0 : index
    %0 = vector.load %arg1[%c0, %c0_0] : memref<256x128xbf16, #tpu.memory_space<vmem>>, vector<256x128xbf16>
    %1 = arith.extf %0 : vector<256x128xbf16> to vector<256x128xf32>
    %c0_1 = arith.constant 0 : index
    %c0_2 = arith.constant 0 : index
    %2 = vector.load %arg3[%c0_1, %c0_2] : memref<1x128xf32, #tpu.memory_space<vmem>>, vector<1x128xf32>
    %3 = vector.broadcast %2 : vector<1x128xf32> to vector<256x128xf32>
    %4 = arith.mulf %1, %3 : vector<256x128xf32>
    %c0_3 = arith.constant 0 : index
    %c0_4 = arith.constant 0 : index
    %5 = vector.load %arg4[%c0_3, %c0_4] : memref<1x128xf32, #tpu.memory_space<vmem>>, vector<1x128xf32>
    %6 = vector.broadcast %5 : vector<1x128xf32> to vector<256x128xf32>
    %7 = arith.addf %4, %6 : vector<256x128xf32>
    %c0_5 = arith.constant 0 : index
    %c0_6 = arith.constant 0 : index
    %8 = vector.load %arg2[%c0_5, %c0_6] : memref<256x128xbf16, #tpu.memory_space<vmem>>, vector<256x128xbf16>
    %9 = arith.extf %8 : vector<256x128xbf16> to vector<256x128xf32>
    %10 = arith.addf %7, %9 : vector<256x128xf32>
    %cst = arith.constant 0.000000e+00 : f32
    %11 = vector.broadcast %cst : f32 to vector<256x128xf32>
    %12 = arith.cmpf oge, %10, %11 : vector<256x128xf32>
    %cst_7 = arith.constant 0.00999999977 : f32
    %13 = vector.broadcast %cst_7 : f32 to vector<256x128xf32>
    %14 = arith.mulf %13, %10 : vector<256x128xf32>
    %15 = arith.select %12, %10, %14 : vector<256x128xi1>, vector<256x128xf32>
    %16 = arith.truncf %15 : vector<256x128xf32> to vector<256x128xbf16>
    %c0_8 = arith.constant 0 : index
    %c0_9 = arith.constant 0 : index
    %17 = vector.load %arg5[%c0_8, %c0_9] : memref<128x256xbf16, #tpu.memory_space<vmem>>, vector<128x256xbf16>
    %cst_10 = arith.constant dense<0.000000e+00> : vector<256x256xf32>
    %18 = tpu.matmul %16, %17, %cst_10 {dimension_numbers = #tpu.dot_dimension_numbers<[1], [0], [0], [1], [0, 0, 1, 1], [], []>} : vector<256x128xbf16>, vector<128x256xbf16>, vector<256x256xf32> -> vector<256x256xf32>
    %19 = vector.extract_strided_slice %18 {offsets = [0, 0], sizes = [256, 128], strides = [1, 1]} : vector<256x256xf32> to vector<256x128xf32>
    %20 = arith.truncf %19 : vector<256x128xf32> to vector<256x128xbf16>
    %c0_11 = arith.constant 0 : index
    %c0_12 = arith.constant 0 : index
    %21 = vector.load %arg6[%c0_11, %c0_12] : memref<256x128xbf16, #tpu.memory_space<vmem>>, vector<256x128xbf16>
    tpu.vector_store %arg6[%c0_11, %c0_12], %20 {strides = array<i32>} : memref<256x128xbf16, #tpu.memory_space<vmem>>, vector<256x128xbf16>,
    %22 = vector.extract_strided_slice %18 {offsets = [0, 128], sizes = [256, 128], strides = [1, 1]} : vector<256x256xf32> to vector<256x128xf32>
    %23 = arith.truncf %22 : vector<256x128xf32> to vector<256x128xbf16>
    %c0_13 = arith.constant 0 : index
    %c0_14 = arith.constant 0 : index
    %24 = vector.load %arg7[%c0_13, %c0_14] : memref<256x128xbf16, #tpu.memory_space<vmem>>, vector<256x128xbf16>
    tpu.vector_store %arg7[%c0_13, %c0_14], %23 {strides = array<i32>} : memref<256x128xbf16, #tpu.memory_space<vmem>>, vector<256x128xbf16>,
    %cst_15 = arith.constant dense<0.000000e+00> : vector<128xf32>
    %25 = vector.multi_reduction <add>, %19, %cst_15 [0] : vector<256x128xf32> to vector<128xf32>
    %26 = vector.shape_cast %25 : vector<128xf32> to vector<1x128xf32>
    %cst_16 = arith.constant 3.906250e-03 : f32
    %27 = vector.broadcast %cst_16 : f32 to vector<1x128xf32>
    %28 = arith.mulf %26, %27 : vector<1x128xf32>
    %29 = vector.broadcast %28 : vector<1x128xf32> to vector<256x128xf32>
    %30 = arith.subf %19, %29 : vector<256x128xf32>
    %31 = arith.mulf %30, %30 : vector<256x128xf32>
    %cst_17 = arith.constant dense<0.000000e+00> : vector<128xf32>
    %32 = vector.multi_reduction <add>, %31, %cst_17 [0] : vector<256x128xf32> to vector<128xf32>
    %33 = vector.shape_cast %32 : vector<128xf32> to vector<1x128xf32>
    %34 = tpu.concatenate %26, %33 in 0 : vector<1x128xf32>, vector<1x128xf32> -> vector<2x128xf32>
    %35 = vector.shape_cast %34 : vector<2x128xf32> to vector<1x2x128xf32>
    %c0_18 = arith.constant 0 : index
    %c0_19 = arith.constant 0 : index
    %c0_20 = arith.constant 0 : index
    %36 = vector.load %arg8[%c0_18, %c0_19, %c0_20] : memref<1x2x128xf32, #tpu.memory_space<vmem>>, vector<1x2x128xf32>
    tpu.vector_store %arg8[%c0_18, %c0_19, %c0_20], %35 {strides = array<i32>} : memref<1x2x128xf32, #tpu.memory_space<vmem>>, vector<1x2x128xf32>,
    return
  }
  func.func @transform_0(%arg0: i32) -> (i32, i32) {
    %c0_i32 = arith.constant 0 : i32
    %c0_i32_0 = arith.constant 0 : i32
    return %arg0, %c0_i32 : i32, i32
  }
  func.func @transform_1(%arg0: i32) -> (i32, i32) {
    %c0_i32 = arith.constant 0 : i32
    %c0_i32_0 = arith.constant 0 : i32
    return %arg0, %c0_i32 : i32, i32
  }
  func.func @transform_2(%arg0: i32) -> (i32, i32) {
    %c0_i32 = arith.constant 0 : i32
    %c0_i32_0 = arith.constant 0 : i32
    %c0_i32_1 = arith.constant 0 : i32
    return %c0_i32, %c0_i32_0 : i32, i32
  }
  func.func @transform_3(%arg0: i32) -> (i32, i32) {
    %c0_i32 = arith.constant 0 : i32
    %c0_i32_0 = arith.constant 0 : i32
    %c0_i32_1 = arith.constant 0 : i32
    return %c0_i32, %c0_i32_0 : i32, i32
  }
  func.func @transform_4(%arg0: i32) -> (i32, i32) {
    %c0_i32 = arith.constant 0 : i32
    %c0_i32_0 = arith.constant 0 : i32
    %c0_i32_1 = arith.constant 0 : i32
    return %c0_i32, %c0_i32_0 : i32, i32
  }
  func.func @transform_5(%arg0: i32) -> (i32, i32) {
    %c0_i32 = arith.constant 0 : i32
    %c0_i32_0 = arith.constant 0 : i32
    return %arg0, %c0_i32 : i32, i32
  }
  func.func @transform_6(%arg0: i32) -> (i32, i32) {
    %c0_i32 = arith.constant 0 : i32
    %c0_i32_0 = arith.constant 0 : i32
    return %arg0, %c0_i32 : i32, i32
  }
  func.func @transform_7(%arg0: i32) -> (i32, i32, i32) {
    %c0_i32 = arith.constant 0 : i32
    %c0_i32_0 = arith.constant 0 : i32
    %c0_i32_1 = arith.constant 0 : i32
    return %arg0, %c0_i32, %c0_i32_0 : i32, i32, i32
  }
}

</mosaic_0001>

<bundles_post_ra>
// kernel: decoder_forward.17
= control target key start
LH: loop header
LB: loop body
LE: loop exit
PB: predicated region body
PF: predicated region fallthrough
CT: control target
= control target key end

     0   :  { %s871_s15 = smov 0   ;;  %s1039_s0 = inlined_call_operand.vmem [shape: bf16[512,128], index: 0, kind: input, shape index: {}]   ;;  %s1040_s1 = inlined_call_operand.vmem [shape: bf16[512,128], index: 1, kind: input, shape index: {}]   ;;  %s1041_s2 = inlined_call_operand.vmem [shape: f32[1,128], index: 2, kind: input, shape index: {}]   ;;  %s1042_s3 = inlined_call_operand.vmem [shape: f32[1,128], index: 3, kind: input, shape index: {}]   ;;  %s1043_s4 = inlined_call_operand.vmem [shape: f32[512,128], index: 4, kind: output, shape index: {}]  }
   0x1 LB: > { %s593_s16 = sadd.s32 4294967295, %s844_s15   ;;  %p597_p0 = scmp.ge.s32.totalorder %s844_s15, 1  ;;  %s844_s15 = sphi %s871_s15, %s14_s15  }
   0x2   : > { %p174_p1 = scmp.lt.s32.totalorder %s844_s15, 3 }
   0x4   : > { %p175_p2 = pnand %p597_p0, %p174_p1 }
   0x5   : > { %s598_s17 = sshll.u32 (!%p175_p2), %s593_s16, 5  ;;  %v895_v0 = vld [vmem:[%s1041_s2] ss:$0 sm:$0xff] (!%p175_p2) }
   0x6   : > { %178 = sbr.rel (%p175_p2) target bundleno = 80 (0x50), region = 36  ;;  %p206_p3 = scmp.lt.s32.totalorder (!%p175_p2), %s598_s17, 63  ;;  %v906_v11 = vld [vmem:[%s1042_s3] ss:$0 sm:$0xff] (!%p175_p2) }
   0xd   : > { %s1045_s17 = smov (!%p206_p3, %s598_s17), 63 }
   0xe   : > { %s599_s18 = sshll.u32 %s1045_s17, 2  ;;  %s603_s29 = sshll.u32 %s1045_s17, 3 }
   0xf   : > { %s885_s21 = scalar_lea.vmem %s1039_s0, %s599_s18  ;;  %s890_s24 = scalar_lea.vmem %s1040_s1, %s599_s18 }
  0x10   : > { %v609_v1 = vld [vmem:[%s885_s21] sm:$0xff]   ;;  %v736_v3 = vld [vmem:[%s885_s21 + $0x8] sm:$0xff]   ;;  %v737_v9 = vld [vmem:[%s885_s21 + $0x10] sm:$0xff]   ;;  %s943_s6 = scalar_lea.vmem %s1043_s4, %s603_s29 }
  0x11   : > { %v673_v2 = vld [vmem:[%s890_s24] sm:$0xff]   ;;  %v610_v4 = vunpack.c.l.bf16 %v609_v1  ;;  %v611_v6 = vunpack.c.h.bf16 %v609_v1  ;;  %v751_v8 = vld [vmem:[%s890_s24 + $0x8] sm:$0xff]   ;;  %v752_v10 = vld [vmem:[%s890_s24 + $0x10] sm:$0xff]   ;;  %v614_v12 = vunpack.c.l.bf16 %v736_v3  ;;  %v615_v14 = vunpack.c.h.bf16 %v736_v3 }
  0x12   : > { %v674_v5 = vunpack.c.l.bf16 %v673_v2  ;;  %v675_v7 = vunpack.c.h.bf16 %v673_v2  ;;  %v678_v13 = vunpack.c.l.bf16 %v751_v8  ;;  %v679_v15 = vunpack.c.h.bf16 %v751_v8  ;;  %v738_v16 = vld [vmem:[%s885_s21 + $0x18] sm:$0xff]   ;;  %v739_v38 = vld [vmem:[%s885_s21 + $0x20] sm:$0xff]   ;;  %v740_v50 = vld [vmem:[%s885_s21 + $0x28] sm:$0xff]  }
  0x13   : > { %v294_v17 = vmul.f32 %v610_v4, %v895_v0  ;;  %v295_v18 = vmul.f32 %v611_v6, %v895_v0  ;;  %v618_v19 = vunpack.c.l.bf16 %v737_v9  ;;  %v682_v20 = vunpack.c.l.bf16 %v752_v10  ;;  %v753_v21 = vld [vmem:[%s890_s24 + $0x18] sm:$0xff]   ;;  %v754_v43 = vld [vmem:[%s890_s24 + $0x20] sm:$0xff]   ;;  %v755_v51 = vld [vmem:[%s890_s24 + $0x28] sm:$0xff]  }
  0x14   : > { %v296_v22 = vmul.f32 %v614_v12, %v895_v0  ;;  %v297_v23 = vmul.f32 %v615_v14, %v895_v0  ;;  %v619_v24 = vunpack.c.h.bf16 %v737_v9  ;;  %v683_v25 = vunpack.c.h.bf16 %v752_v10  ;;  %v741_v61 = vld [vmem:[%s885_s21 + $0x30] sm:$0xff]   ;;  %v742_v9 = vld [vmem:[%s885_s21 + $0x38] sm:$0xff]  }
  0x15   : > { %v333_v26 = vadd.f32 %v906_v11, %v294_v17  ;;  %v334_v27 = vadd.f32 %v906_v11, %v295_v18  ;;  %v298_v28 = vmul.f32 %v618_v19, %v895_v0  ;;  %v622_v29 = vunpack.c.l.bf16 %v738_v16  ;;  %v756_v2 = vld [vmem:[%s890_s24 + $0x30] sm:$0xff]  }
  0x16   : > { %v335_v30 = vadd.f32 %v906_v11, %v296_v22  ;;  %v336_v31 = vadd.f32 %v906_v11, %v297_v23  ;;  %v299_v32 = vmul.f32 %v619_v24, %v895_v0  ;;  %v686_v33 = vunpack.c.l.bf16 %v753_v21  ;;  %v743_v23 = vld [vmem:[%s885_s21 + $0x40] sm:$0xff]  }
  0x17   : > { %v429_v34 = vadd.f32 %v674_v5, %v333_v26  ;;  %v430_v35 = vadd.f32 %v675_v7, %v334_v27  ;;  %v337_v36 = vadd.f32 %v906_v11, %v298_v28  ;;  %v300_v37 = vmul.f32 %v622_v29, %v895_v0  ;;  %v758_v29 = vld [vmem:[%s890_s24 + $0x40] sm:$0xff]  }
  0x18   : > { %v431_v39 = vadd.f32 %v678_v13, %v335_v30  ;;  %v432_v40 = vadd.f32 %v679_v15, %v336_v31  ;;  %v338_v41 = vadd.f32 %v906_v11, %v299_v32  ;;  %v623_v42 = vunpack.c.h.bf16 %v738_v16  ;;  %v757_v15 = vld [vmem:[%s890_s24 + $0x38] sm:$0xff]  }
  0x19   : > { %774 = vtanh.f32 %v429_v34  ;;  %v433_v44 = vadd.f32 %v682_v20, %v337_v36  ;;  %v339_v45 = vadd.f32 %v906_v11, %v300_v37  ;;  %v687_v46 = vunpack.c.h.bf16 %v753_v21 }
  0x1a   : > { %776 = vtanh.f32 %v430_v35  ;;  %v434_v47 = vadd.f32 %v683_v25, %v338_v41  ;;  %v301_v48 = vmul.f32 %v623_v42, %v895_v0  ;;  %v626_v49 = vunpack.c.l.bf16 %v739_v38 }
  0x1b   : > { %778 = vtanh.f32 %v431_v39  ;;  %v435_v52 = vadd.f32 %v686_v33, %v339_v45  ;;  %v690_v53 = vunpack.c.l.bf16 %v754_v43  ;;  %v627_v54 = vunpack.c.h.bf16 %v739_v38  ;;  %v744_v38 = vld [vmem:[%s885_s21 + $0x48] sm:$0xff]  }
  0x1c   : > { %780 = vtanh.f32 %v432_v40  ;;  %v340_v55 = vadd.f32 %v906_v11, %v301_v48  ;;  %v302_v56 = vmul.f32 %v626_v49, %v895_v0  ;;  %v691_v57 = vunpack.c.h.bf16 %v754_v43 }
  0x1d   : > { %782 = vtanh.f32 %v433_v44  ;;  %v303_v58 = vmul.f32 %v627_v54, %v895_v0  ;;  %v630_v59 = vunpack.c.l.bf16 %v740_v50  ;;  %v694_v60 = vunpack.c.l.bf16 %v755_v51  ;;  %v759_v44 = vld [vmem:[%s890_s24 + $0x48] sm:$0xff]  }
  0x1e   : > { %784 = vtanh.f32 %v434_v47  ;;  %v436_v62 = vadd.f32 %v687_v46, %v340_v55  ;;  %v341_v63 = vadd.f32 %v906_v11, %v302_v56  ;;  %v631_v1 = vunpack.c.h.bf16 %v740_v50 }
  0x1f   : > { %786 = vtanh.f32 %v435_v52  ;;  %v342_v3 = vadd.f32 %v906_v11, %v303_v58  ;;  %v304_v4 = vmul.f32 %v630_v59, %v895_v0  ;;  %v695_v5 = vunpack.c.h.bf16 %v755_v51  ;;  %v760_v59 = vld [vmem:[%s890_s24 + $0x50] sm:$0xff]  }
  0x20   : > { %788 = vtanh.f32 %v436_v62  ;;  %v437_v6 = vadd.f32 %v690_v53, %v341_v63  ;;  %v305_v7 = vmul.f32 %v631_v1, %v895_v0  ;;  %v634_v8 = vunpack.c.l.bf16 %v741_v61  ;;  %v745_v53 = vld [vmem:[%s885_s21 + $0x50] sm:$0xff]  }
  0x21   : > { %v438_v10 = vadd.f32 %v691_v57, %v342_v3  ;;  %v343_v12 = vadd.f32 %v906_v11, %v304_v4  ;;  %v698_v13 = vunpack.c.l.bf16 %v756_v2  ;;  %v635_v14 = vunpack.c.h.bf16 %v741_v61  ;;  %v746_v4 = vld [vmem:[%s885_s21 + $0x58] sm:$0xff]  }
  0x22   : > { %790 = vtanh.f32 %v437_v6  ;;  %v344_v16 = vadd.f32 %v906_v11, %v305_v7  ;;  %v306_v17 = vmul.f32 %v634_v8, %v895_v0  ;;  %v699_v18 = vunpack.c.h.bf16 %v756_v2 }
  0x23   : > { %v775_v19 = vpop.eup %774  ;;  %792 = vtanh.f32 %v438_v10  ;;  %v439_v20 = vadd.f32 %v694_v60, %v343_v12  ;;  %v307_v21 = vmul.f32 %v635_v14, %v895_v0  ;;  %v638_v22 = vunpack.c.l.bf16 %v742_v9  ;;  %v761_v10 = vld [vmem:[%s890_s24 + $0x58] sm:$0xff]  }
  0x24   : > { %v777_v24 = vpop.eup %776  ;;  %493 = vst [vmem:[%s943_s6] sm:$0xff] %v775_v19  ;;  %v440_v25 = vadd.f32 %v695_v5, %v344_v16  ;;  %v345_v26 = vadd.f32 %v906_v11, %v306_v17  ;;  %v702_v27 = vunpack.c.l.bf16 %v757_v15  ;;  %v639_v28 = vunpack.c.h.bf16 %v742_v9  ;;  %v747_v19 = vld [vmem:[%s885_s21 + $0x60] sm:$0xff]  }
  0x25   : > { %v779_v30 = vpop.eup %778  ;;  %494 = vst [vmem:[%s943_s6 + $0x8] sm:$0xff] %v777_v24  ;;  %794 = vtanh.f32 %v439_v20  ;;  %v346_v31 = vadd.f32 %v906_v11, %v307_v21  ;;  %v308_v32 = vmul.f32 %v638_v22, %v895_v0  ;;  %v703_v33 = vunpack.c.h.bf16 %v757_v15 }
  0x26   : > { %v781_v34 = vpop.eup %780  ;;  %495 = vst [vmem:[%s943_s6 + $0x10] sm:$0xff] %v779_v30  ;;  %796 = vtanh.f32 %v440_v25  ;;  %v441_v35 = vadd.f32 %v698_v13, %v345_v26  ;;  %v309_v36 = vmul.f32 %v639_v28, %v895_v0  ;;  %v642_v37 = vunpack.c.l.bf16 %v743_v23  ;;  %v762_v25 = vld [vmem:[%s890_s24 + $0x60] sm:$0xff]  }
  0x27   : > { %v783_v39 = vpop.eup %782  ;;  %496 = vst [vmem:[%s943_s6 + $0x18] sm:$0xff] %v781_v34  ;;  %v442_v40 = vadd.f32 %v699_v18, %v346_v31  ;;  %v347_v41 = vadd.f32 %v906_v11, %v308_v32  ;;  %v706_v42 = vunpack.c.l.bf16 %v758_v29  ;;  %v643_v43 = vunpack.c.h.bf16 %v743_v23 }
  0x28   : > { %v785_v45 = vpop.eup %784  ;;  %497 = vst [vmem:[%s943_s6 + $0x20] sm:$0xff] %v783_v39  ;;  %798 = vtanh.f32 %v441_v35  ;;  %v348_v46 = vadd.f32 %v906_v11, %v309_v36  ;;  %v310_v47 = vmul.f32 %v642_v37, %v895_v0  ;;  %v707_v48 = vunpack.c.h.bf16 %v758_v29  ;;  %v763_v39 = vld [vmem:[%s890_s24 + $0x68] sm:$0xff]  }
  0x29   : > { %v787_v49 = vpop.eup %786  ;;  %498 = vst [vmem:[%s943_s6 + $0x28] sm:$0xff] %v785_v45  ;;  %800 = vtanh.f32 %v442_v40  ;;  %v443_v50 = vadd.f32 %v702_v27, %v347_v41  ;;  %v311_v51 = vmul.f32 %v643_v43, %v895_v0  ;;  %v646_v52 = vunpack.c.l.bf16 %v744_v38 }
  0x2a   : > { %v789_v54 = vpop.eup %788  ;;  %499 = vst [vmem:[%s943_s6 + $0x30] sm:$0xff] %v787_v49  ;;  %v444_v55 = vadd.f32 %v703_v33, %v348_v46  ;;  %v349_v56 = vadd.f32 %v906_v11, %v310_v47  ;;  %v710_v57 = vunpack.c.l.bf16 %v759_v44  ;;  %v647_v58 = vunpack.c.h.bf16 %v744_v38  ;;  %v748_v33 = vld [vmem:[%s885_s21 + $0x68] sm:$0xff]   ;;  %v749_v47 = vld [vmem:[%s885_s21 + $0x70] sm:$0xff]  }
  0x2b   : > { %500 = vst [vmem:[%s943_s6 + $0x38] sm:$0xff] %v789_v54  ;;  %802 = vtanh.f32 %v443_v50  ;;  %v350_v60 = vadd.f32 %v906_v11, %v311_v51  ;;  %v312_v61 = vmul.f32 %v646_v52, %v895_v0  ;;  %v711_v62 = vunpack.c.h.bf16 %v759_v44 }
  0x2c   : > { %v791_v63 = vpop.eup %790  ;;  %804 = vtanh.f32 %v444_v55  ;;  %v445_v1 = vadd.f32 %v706_v42, %v349_v56  ;;  %v313_v2 = vmul.f32 %v647_v58, %v895_v0  ;;  %v650_v3 = vunpack.c.l.bf16 %v745_v53 }
  0x2d   : > { %v793_v5 = vpop.eup %792  ;;  %501 = vst [vmem:[%s943_s6 + $0x40] sm:$0xff] %v791_v63  ;;  %v446_v6 = vadd.f32 %v707_v48, %v350_v60  ;;  %v351_v7 = vadd.f32 %v906_v11, %v312_v61  ;;  %v714_v8 = vunpack.c.l.bf16 %v760_v59  ;;  %v651_v9 = vunpack.c.h.bf16 %v745_v53  ;;  %v764_v53 = vld [vmem:[%s890_s24 + $0x70] sm:$0xff]   ;;  %v750_v61 = vld [vmem:[%s885_s21 + $0x78] sm:$0xff]  }
  0x2e   : > { %502 = vst [vmem:[%s943_s6 + $0x48] sm:$0xff] %v793_v5  ;;  %806 = vtanh.f32 %v445_v1  ;;  %v352_v12 = vadd.f32 %v906_v11, %v313_v2  ;;  %v314_v13 = vmul.f32 %v650_v3, %v895_v0  ;;  %v715_v14 = vunpack.c.h.bf16 %v760_v59 }
  0x2f   : > { %v795_v15 = vpop.eup %794  ;;  %808 = vtanh.f32 %v446_v6  ;;  %v447_v16 = vadd.f32 %v710_v57, %v351_v7  ;;  %v315_v17 = vmul.f32 %v651_v9, %v895_v0  ;;  %v654_v18 = vunpack.c.l.bf16 %v746_v4  ;;  %v765_v7 = vld [vmem:[%s890_s24 + $0x78] sm:$0xff]  }
  0x30   : > { %v797_v20 = vpop.eup %796  ;;  %503 = vst [vmem:[%s943_s6 + $0x50] sm:$0xff] %v795_v15  ;;  %v448_v21 = vadd.f32 %v711_v62, %v352_v12  ;;  %v353_v22 = vadd.f32 %v906_v11, %v314_v13  ;;  %v718_v23 = vunpack.c.l.bf16 %v761_v10  ;;  %v655_v24 = vunpack.c.h.bf16 %v746_v4 }
  0x31   : > { %504 = vst [vmem:[%s943_s6 + $0x58] sm:$0xff] %v797_v20  ;;  %810 = vtanh.f32 %v447_v16  ;;  %v354_v26 = vadd.f32 %v906_v11, %v315_v17  ;;  %v316_v27 = vmul.f32 %v654_v18, %v895_v0  ;;  %v719_v28 = vunpack.c.h.bf16 %v761_v10 }
  0x32   : > { %v799_v29 = vpop.eup %798  ;;  %812 = vtanh.f32 %v448_v21  ;;  %v449_v30 = vadd.f32 %v714_v8, %v353_v22  ;;  %v317_v31 = vmul.f32 %v655_v24, %v895_v0  ;;  %v658_v32 = vunpack.c.l.bf16 %v747_v19 }
  0x33   : > { %v801_v34 = vpop.eup %800  ;;  %505 = vst [vmem:[%s943_s6 + $0x60] sm:$0xff] %v799_v29  ;;  %v450_v35 = vadd.f32 %v715_v14, %v354_v26  ;;  %v355_v36 = vadd.f32 %v906_v11, %v316_v27  ;;  %v722_v37 = vunpack.c.l.bf16 %v762_v25  ;;  %v659_v38 = vunpack.c.h.bf16 %v747_v19 }
  0x34   : > { %506 = vst [vmem:[%s943_s6 + $0x68] sm:$0xff] %v801_v34  ;;  %814 = vtanh.f32 %v449_v30  ;;  %v356_v40 = vadd.f32 %v906_v11, %v317_v31  ;;  %v318_v41 = vmul.f32 %v658_v32, %v895_v0  ;;  %v723_v42 = vunpack.c.h.bf16 %v762_v25 }
  0x35   : > { %v803_v43 = vpop.eup %802  ;;  %816 = vtanh.f32 %v450_v35  ;;  %v451_v44 = vadd.f32 %v718_v23, %v355_v36  ;;  %v319_v45 = vmul.f32 %v659_v38, %v895_v0  ;;  %v662_v46 = vunpack.c.l.bf16 %v748_v33 }
  0x36   : > { %v805_v48 = vpop.eup %804  ;;  %507 = vst [vmem:[%s943_s6 + $0x70] sm:$0xff] %v803_v43  ;;  %v452_v49 = vadd.f32 %v719_v28, %v356_v40  ;;  %v357_v50 = vadd.f32 %v906_v11, %v318_v41  ;;  %v726_v51 = vunpack.c.l.bf16 %v763_v39  ;;  %v663_v52 = vunpack.c.h.bf16 %v748_v33 }
  0x37   : > { %508 = vst [vmem:[%s943_s6 + $0x78] sm:$0xff] %v805_v48  ;;  %818 = vtanh.f32 %v451_v44  ;;  %v358_v54 = vadd.f32 %v906_v11, %v319_v45  ;;  %v320_v55 = vmul.f32 %v662_v46, %v895_v0  ;;  %v727_v56 = vunpack.c.h.bf16 %v763_v39 }
  0x38   : > { %v807_v57 = vpop.eup %806  ;;  %820 = vtanh.f32 %v452_v49  ;;  %v453_v58 = vadd.f32 %v722_v37, %v357_v50  ;;  %v321_v59 = vmul.f32 %v663_v52, %v895_v0  ;;  %v666_v60 = vunpack.c.l.bf16 %v749_v47 }
  0x39   : > { %v809_v62 = vpop.eup %808  ;;  %509 = vst [vmem:[%s943_s6 + $0x80] sm:$0xff] %v807_v57  ;;  %v454_v63 = vadd.f32 %v723_v42, %v358_v54  ;;  %v359_v1 = vadd.f32 %v906_v11, %v320_v55  ;;  %v730_v2 = vunpack.c.l.bf16 %v764_v53  ;;  %v667_v3 = vunpack.c.h.bf16 %v749_v47 }
  0x3a   : > { %510 = vst [vmem:[%s943_s6 + $0x88] sm:$0xff] %v809_v62  ;;  %822 = vtanh.f32 %v453_v58  ;;  %v360_v4 = vadd.f32 %v906_v11, %v321_v59  ;;  %v322_v5 = vmul.f32 %v666_v60, %v895_v0  ;;  %v731_v6 = vunpack.c.h.bf16 %v764_v53 }
  0x3b   : > { %v811_v8 = vpop.eup %810  ;;  %824 = vtanh.f32 %v454_v63  ;;  %v455_v9 = vadd.f32 %v726_v51, %v359_v1  ;;  %v323_v10 = vmul.f32 %v667_v3, %v895_v0  ;;  %v670_v12 = vunpack.c.l.bf16 %v750_v61 }
  0x3c   : > { %v813_v13 = vpop.eup %812  ;;  %511 = vst [vmem:[%s943_s6 + $0x90] sm:$0xff] %v811_v8  ;;  %v456_v14 = vadd.f32 %v727_v56, %v360_v4  ;;  %v361_v15 = vadd.f32 %v906_v11, %v322_v5  ;;  %v671_v16 = vunpack.c.h.bf16 %v750_v61  ;;  %v734_v19 = vunpack.c.l.bf16 %v765_v7 }
  0x3d   : > { %512 = vst [vmem:[%s943_s6 + $0x98] sm:$0xff] %v813_v13  ;;  %826 = vtanh.f32 %v455_v9  ;;  %v362_v17 = vadd.f32 %v906_v11, %v323_v10  ;;  %v324_v18 = vmul.f32 %v670_v12, %v895_v0  ;;  %v735_v23 = vunpack.c.h.bf16 %v765_v7 }
  0x3e   : > { %v815_v20 = vpop.eup %814  ;;  %828 = vtanh.f32 %v456_v14  ;;  %v457_v21 = vadd.f32 %v730_v2, %v361_v15  ;;  %v325_v22 = vmul.f32 %v671_v16, %v895_v0 }
  0x3f   : > { %v817_v24 = vpop.eup %816  ;;  %513 = vst [vmem:[%s943_s6 + $0xa0] sm:$0xff] %v815_v20  ;;  %v458_v25 = vadd.f32 %v731_v6, %v362_v17  ;;  %v363_v26 = vadd.f32 %v906_v11, %v324_v18 }
  0x40   : > { %514 = vst [vmem:[%s943_s6 + $0xa8] sm:$0xff] %v817_v24  ;;  %830 = vtanh.f32 %v457_v21  ;;  %v364_v27 = vadd.f32 %v906_v11, %v325_v22 }
  0x41   : > { %v819_v28 = vpop.eup %818  ;;  %832 = vtanh.f32 %v458_v25  ;;  %v459_v29 = vadd.f32 %v734_v19, %v363_v26 }
  0x42   : > { %v821_v30 = vpop.eup %820  ;;  %515 = vst [vmem:[%s943_s6 + $0xb0] sm:$0xff] %v819_v28  ;;  %v460_v0 = vadd.f32 %v735_v23, %v364_v27 }
  0x43   : > { %516 = vst [vmem:[%s943_s6 + $0xb8] sm:$0xff] %v821_v30  ;;  %834 = vtanh.f32 %v459_v29 }
  0x44   : > { %v823_v31 = vpop.eup %822  ;;  %836 = vtanh.f32 %v460_v0 }
  0x45   : > { %v825_v32 = vpop.eup %824  ;;  %517 = vst [vmem:[%s943_s6 + $0xc0] sm:$0xff] %v823_v31 }
  0x46   : > { %518 = vst [vmem:[%s943_s6 + $0xc8] sm:$0xff] %v825_v32 }
  0x47   : > { %v827_v11 = vpop.eup %826 }
  0x48   : > { %v829_v33 = vpop.eup %828  ;;  %519 = vst [vmem:[%s943_s6 + $0xd0] sm:$0xff] %v827_v11 }
  0x49   : > { %520 = vst [vmem:[%s943_s6 + $0xd8] sm:$0xff] %v829_v33 }
  0x4a   : > { %v831_v34 = vpop.eup %830 }
  0x4b   : > { %v833_v35 = vpop.eup %832  ;;  %521 = vst [vmem:[%s943_s6 + $0xe0] sm:$0xff] %v831_v34 }
  0x4c   : > { %522 = vst [vmem:[%s943_s6 + $0xe8] sm:$0xff] %v833_v35 }
  0x4d   : > { %v835_v36 = vpop.eup %834 }
  0x4e   : > { %v837_v37 = vpop.eup %836  ;;  %523 = vst [vmem:[%s943_s6 + $0xf0] sm:$0xff] %v835_v36 }
  0x4f   : > { %524 = vst [vmem:[%s943_s6 + $0xf8] sm:$0xff] %v837_v37 }
  0x50 PF: > { %s14_s15 = sadd.s32 1, %s844_s15  }
  0x51   : > { %p11_p4 = scmp.ge.s32.totalorder %s14_s15, 4  }
  0x53   :  { %13 = sbr.rel (!%p11_p4) target bundleno = 1 (0x1), region = 69 }

// kernel: decoder_forward.9
= control target key start
LH: loop header
LB: loop body
LE: loop exit
PB: predicated region body
PF: predicated region fallthrough
CT: control target
= control target key end

     0   :  { %s1577_s15 = smov 0   ;;  %s1941_s0 = inlined_call_operand.vmem [shape: f32[512,128], index: 0, kind: input, shape index: {}]   ;;  %s1942_s1 = inlined_call_operand.vmem [shape: bf16[128,256], index: 1, kind: input, shape index: {}]   ;;  %s1943_s2 = inlined_call_operand.vmem [shape: bf16[512,128], index: 2, kind: output, shape index: {0}]   ;;  %s1944_s3 = inlined_call_operand.vmem [shape: bf16[512,128], index: 3, kind: output, shape index: {1}]   ;;  %s1945_s4 = inlined_call_operand.vmem [shape: f32[2,2,128], index: 4, kind: output, shape index: {2}]  }
   0x1 LB: > { %s1583_s16 = sadd.s32 4294967295, %s1549_s15   ;;  %p1150_p0 = scmp.ge.s32.totalorder %s1549_s15, 1  ;;  %s1549_s15 = sphi %s1577_s15, %s15_s15  }
   0x2   : > { %p168_p1 = scmp.lt.s32.totalorder %s1549_s15, 3 }
   0x4   : > { %p169_p2 = pnand %p1150_p0, %p168_p1 }
   0x5   : > { %v1519_v0 = vld [vmem:[%s1942_s1 + $0x4] ss:$8 sps:$4 sm:$0xff] (!%p169_p2)   ;;  %v1521_v1 = vld [vmem:[%s1942_s1] ss:$8 sps:$4 sm:$0xff] (!%p169_p2)   ;;  %v1551_v2 = vmov (!%p169_p2), 0   ;;  %s1151_s5 = sshll.u32 (!%p169_p2), %s1583_s16, 5 }
   0x6   : > { %172 = sbr.rel (%p169_p2) target bundleno = 437 (0x1b5), region = 28  ;;  %402 = vmatprep.mubr.bf16.mxu0 (!%p169_p2), %v1551_v2  ;;  %482 = vmatprep.mubr.bf16.mxu1 (!%p169_p2), %v1551_v2  ;;  %v1522_v3 = vld [vmem:[%s1942_s1 + $0x14] ss:$8 sps:$4 sm:$0xff] (!%p169_p2)   ;;  %v1524_v4 = vld [vmem:[%s1942_s1 + $0x10] ss:$8 sps:$4 sm:$0xff] (!%p169_p2)   ;;  %p204_p3 = scmp.lt.s32.totalorder (!%p169_p2), %s1151_s5, 63 }
   0x7   : > { %370 = vmatprep.subr.bf16.mxu0 (!%p169_p2), %v1519_v0  ;;  %1494 = vmatprep.subr.bf16.mxu1 (!%p169_p2), %v1519_v0  ;;  %v1525_v5 = vld [vmem:[%s1942_s1 + $0x24] ss:$8 sps:$4 sm:$0xff] (!%p169_p2)   ;;  %v1527_v6 = vld [vmem:[%s1942_s1 + $0x20] ss:$8 sps:$4 sm:$0xff] (!%p169_p2)   ;;  %v1528_v7 = vld [vmem:[%s1942_s1 + $0x34] ss:$8 sps:$4 sm:$0xff] (!%p169_p2)  }
   0x8   : > { %371 = vmatpush1.bf16.msra.mxu0 (!%p169_p2), %v1521_v1  ;;  %1502 = vmatpush1.bf16.msra.mxu1 (!%p169_p2), %v1521_v1  ;;  %v1530_v8 = vld [vmem:[%s1942_s1 + $0x30] ss:$8 sps:$4 sm:$0xff] (!%p169_p2)   ;;  %v1531_v9 = vld [vmem:[%s1942_s1 + $0x44] ss:$8 sps:$4 sm:$0xff] (!%p169_p2)   ;;  %v1533_v10 = vld [vmem:[%s1942_s1 + $0x40] ss:$8 sps:$4 sm:$0xff] (!%p169_p2)  }
   0x9   : > { %372 = vmatprep.subr.bf16.mxu0 (!%p169_p2), %v1522_v3  ;;  %1495 = vmatprep.subr.bf16.mxu1 (!%p169_p2), %v1522_v3  ;;  %v1534_v11 = vld [vmem:[%s1942_s1 + $0x54] ss:$8 sps:$4 sm:$0xff] (!%p169_p2)   ;;  %v1536_v12 = vld [vmem:[%s1942_s1 + $0x50] ss:$8 sps:$4 sm:$0xff] (!%p169_p2)   ;;  %v1537_v13 = vld [vmem:[%s1942_s1 + $0x64] ss:$8 sps:$4 sm:$0xff] (!%p169_p2)  }
   0xa   : > { %v1539_v14 = vld [vmem:[%s1942_s1 + $0x60] ss:$8 sps:$4 sm:$0xff] (!%p169_p2)   ;;  %v1540_v15 = vld [vmem:[%s1942_s1 + $0x74] ss:$8 sps:$4 sm:$0xff] (!%p169_p2)   ;;  %v1542_v16 = vld [vmem:[%s1942_s1 + $0x70] ss:$8 sps:$4 sm:$0xff] (!%p169_p2)  }
   0xb   : > { %p221_p4 = scmp.lt.s32.totalorder (!%p169_p2), %s1583_s16, 1  ;;  %vm1022_vm0 = vcmask (!%p169_p2), 1040384  }
   0xc   : > { %373 = vmatpush1.bf16.msra.mxu0 (!%p169_p2), %v1524_v4  ;;  %1503 = vmatpush1.bf16.msra.mxu1 (!%p169_p2), %v1524_v4 }
   0xd   : > { %374 = vmatprep.subr.bf16.mxu0 %v1525_v5  ;;  %1496 = vmatprep.subr.bf16.mxu1 %v1525_v5  ;;  %s1947_s5 = smov (!%p204_p3, %s1151_s5), 63  ;;  %s1949_s16 = smov (!%p221_p4, %s1583_s16), 1 }
   0xe   : > { %s1152_s20 = sshll.u32 %s1947_s5, 3  ;;  %s1154_s30 = sshll.u32 %s1947_s5, 2 }
   0xf   : > { %s1638_s25 = scalar_lea.vmem %s1941_s0, %s1152_s20  ;;  %s1700_s8 = scalar_lea.vmem %s1943_s2, %s1154_s30 }
  0x10   : > { %375 = vmatpush1.bf16.msra.mxu0 %v1527_v6  ;;  %1504 = vmatpush1.bf16.msra.mxu1 %v1527_v6  ;;  %v226_v17 = vld [vmem:[%s1638_s25] sm:$0xff]  ;;  %v227_v18 = vld [vmem:[%s1638_s25 + $0x8] sm:$0xff]  ;;  %v228_v23 = vld [vmem:[%s1638_s25 + $0x10] sm:$0xff]  ;;  %s1713_s10 = scalar_lea.vmem %s1944_s3, %s1154_s30  ;;  %s1157_s11 = sshll.u32 %s1949_s16, 1 }
  0x11   : > { %376 = vmatprep.subr.bf16.mxu0 %v1528_v7  ;;  %1497 = vmatprep.subr.bf16.mxu1 %v1528_v7  ;;  %v242_v19 = vld [vmem:[%s1638_s25 + $0x80] sm:$0xff]  ;;  %v243_v20 = vld [vmem:[%s1638_s25 + $0x88] sm:$0xff]  ;;  %v258_v21 = vpack.c.bf16 %v227_v18, %v226_v17  ;;  %v229_v24 = vld [vmem:[%s1638_s25 + $0x18] sm:$0xff]  ;;  %s224_s14 = scalar_lea.vmem %s1945_s4, %s1157_s11 }
  0x12   : > { %v266_v22 = vpack.c.bf16 %v243_v20, %v242_v19  ;;  %v244_v25 = vld [vmem:[%s1638_s25 + $0x90] sm:$0xff]  ;;  %v245_v26 = vld [vmem:[%s1638_s25 + $0x98] sm:$0xff]  ;;  %v259_v27 = vpack.c.bf16 %v229_v24, %v228_v23  ;;  %v230_v29 = vld [vmem:[%s1638_s25 + $0x20] sm:$0xff] }
  0x13   : > { %v267_v28 = vpack.c.bf16 %v245_v26, %v244_v25  ;;  %v231_v30 = vld [vmem:[%s1638_s25 + $0x28] sm:$0xff]  ;;  %v246_v31 = vld [vmem:[%s1638_s25 + $0xa0] sm:$0xff]  ;;  %v232_v35 = vld [vmem:[%s1638_s25 + $0x30] sm:$0xff] }
  0x14   : > { %377 = vmatpush1.bf16.msra.mxu0 %v1530_v8  ;;  %1505 = vmatpush1.bf16.msra.mxu1 %v1530_v8  ;;  %v247_v32 = vld [vmem:[%s1638_s25 + $0xa8] sm:$0xff]  ;;  %v260_v33 = vpack.c.bf16 %v231_v30, %v230_v29  ;;  %v233_v36 = vld [vmem:[%s1638_s25 + $0x38] sm:$0xff]  ;;  %v248_v37 = vld [vmem:[%s1638_s25 + $0xb0] sm:$0xff] }
  0x15   : > { %378 = vmatprep.subr.bf16.mxu0 %v1531_v9  ;;  %1498 = vmatprep.subr.bf16.mxu1 %v1531_v9  ;;  %v268_v34 = vpack.c.bf16 %v247_v32, %v246_v31  ;;  %v249_v38 = vld [vmem:[%s1638_s25 + $0xb8] sm:$0xff]  ;;  %v261_v39 = vpack.c.bf16 %v233_v36, %v232_v35  ;;  %v234_v41 = vld [vmem:[%s1638_s25 + $0x40] sm:$0xff]  ;;  %v235_v42 = vld [vmem:[%s1638_s25 + $0x48] sm:$0xff] }
  0x16   : > { %v269_v40 = vpack.c.bf16 %v249_v38, %v248_v37  ;;  %v250_v43 = vld [vmem:[%s1638_s25 + $0xc0] sm:$0xff]  ;;  %v251_v44 = vld [vmem:[%s1638_s25 + $0xc8] sm:$0xff]  ;;  %v262_v45 = vpack.c.bf16 %v235_v42, %v234_v41  ;;  %v236_v47 = vld [vmem:[%s1638_s25 + $0x50] sm:$0xff] }
  0x17   : > { %v270_v46 = vpack.c.bf16 %v251_v44, %v250_v43  ;;  %v237_v48 = vld [vmem:[%s1638_s25 + $0x58] sm:$0xff]  ;;  %v252_v49 = vld [vmem:[%s1638_s25 + $0xd0] sm:$0xff]  ;;  %v238_v53 = vld [vmem:[%s1638_s25 + $0x60] sm:$0xff] }
  0x18   : > { %379 = vmatpush1.bf16.msra.mxu0 %v1533_v10  ;;  %1506 = vmatpush1.bf16.msra.mxu1 %v1533_v10  ;;  %v253_v50 = vld [vmem:[%s1638_s25 + $0xd8] sm:$0xff]  ;;  %v263_v51 = vpack.c.bf16 %v237_v48, %v236_v47  ;;  %v239_v54 = vld [vmem:[%s1638_s25 + $0x68] sm:$0xff]  ;;  %v254_v55 = vld [vmem:[%s1638_s25 + $0xe0] sm:$0xff] }
  0x19   : > { %380 = vmatprep.subr.bf16.mxu0 %v1534_v11  ;;  %1499 = vmatprep.subr.bf16.mxu1 %v1534_v11  ;;  %v271_v52 = vpack.c.bf16 %v253_v50, %v252_v49  ;;  %v255_v56 = vld [vmem:[%s1638_s25 + $0xe8] sm:$0xff]  ;;  %v264_v57 = vpack.c.bf16 %v239_v54, %v238_v53  ;;  %v240_v59 = vld [vmem:[%s1638_s25 + $0x70] sm:$0xff]  ;;  %v241_v60 = vld [vmem:[%s1638_s25 + $0x78] sm:$0xff] }
  0x1a   : > { %v272_v58 = vpack.c.bf16 %v255_v56, %v254_v55  ;;  %v256_v61 = vld [vmem:[%s1638_s25 + $0xf0] sm:$0xff]  ;;  %v257_v62 = vld [vmem:[%s1638_s25 + $0xf8] sm:$0xff]  ;;  %v265_v63 = vpack.c.bf16 %v241_v60, %v240_v59 }
  0x1b   : > { %v273_v0 = vpack.c.bf16 %v257_v62, %v256_v61 }
  0x1c   : > { %381 = vmatpush1.bf16.msra.mxu0 %v1536_v12  ;;  %1507 = vmatpush1.bf16.msra.mxu1 %v1536_v12 }
  0x1d   : > { %382 = vmatprep.subr.bf16.mxu0 %v1537_v13  ;;  %1500 = vmatprep.subr.bf16.mxu1 %v1537_v13 }
  0x20   : > { %383 = vmatpush1.bf16.msra.mxu0 %v1539_v14  ;;  %1508 = vmatpush1.bf16.msra.mxu1 %v1539_v14 }
  0x21   : > { %384 = vmatprep.subr.bf16.mxu0 %v1540_v15  ;;  %1501 = vmatprep.subr.bf16.mxu1 %v1540_v15 }
  0x24   : > { %385 = vmatpush1.bf16.msra.mxu0 %v1542_v16  ;;  %1509 = vmatpush1.bf16.msra.mxu1 %v1542_v16 }
  0x27   : > { %403 = vmatmul.mubr.bf16.vlgmr.msra.gmra.mrb[0].mxu0 %v258_v21  ;;  %483 = vmatmul.mubr.bf16.vlgmr.msra.gmra.mrb[0].mxu1 %v266_v22 }
  0x28   : > { %412 = vmatprep.mubr.bf16.mxu0 %v1551_v2  ;;  %492 = vmatprep.mubr.bf16.mxu1 %v1551_v2 }
  0x2f   : > { %413 = vmatmul.mubr.bf16.gmra.mrb[4].mxu0 %v259_v27  ;;  %493 = vmatmul.mubr.bf16.gmra.mrb[4].mxu1 %v267_v28 }
  0x30   : > { %422 = vmatprep.mubr.bf16.mxu0 %v1551_v2  ;;  %502 = vmatprep.mubr.bf16.mxu1 %v1551_v2 }
  0x37   : > { %423 = vmatmul.mubr.bf16.gmra.mrb[8].mxu0 %v260_v33  ;;  %503 = vmatmul.mubr.bf16.gmra.mrb[8].mxu1 %v268_v34 }
  0x38   : > { %432 = vmatprep.mubr.bf16.mxu0 %v1551_v2  ;;  %512 = vmatprep.mubr.bf16.mxu1 %v1551_v2 }
  0x3f   : > { %433 = vmatmul.mubr.bf16.gmra.mrb[12].mxu0 %v261_v39  ;;  %513 = vmatmul.mubr.bf16.gmra.mrb[12].mxu1 %v269_v40 }
  0x40   : > { %442 = vmatprep.mubr.bf16.mxu0 %v1551_v2  ;;  %522 = vmatprep.mubr.bf16.mxu1 %v1551_v2 }
  0x47   : > { %443 = vmatmul.mubr.bf16.gmra.mrb[16].mxu0 %v262_v45  ;;  %523 = vmatmul.mubr.bf16.gmra.mrb[16].mxu1 %v270_v46 }
  0x48   : > { %452 = vmatprep.mubr.bf16.mxu0 %v1551_v2  ;;  %532 = vmatprep.mubr.bf16.mxu1 %v1551_v2 }
  0x4f   : > { %453 = vmatmul.mubr.bf16.gmra.mrb[20].mxu0 %v263_v51  ;;  %533 = vmatmul.mubr.bf16.gmra.mrb[20].mxu1 %v271_v52 }
  0x50   : > { %462 = vmatprep.mubr.bf16.mxu0 %v1551_v2  ;;  %542 = vmatprep.mubr.bf16.mxu1 %v1551_v2 }
  0x57   : > { %463 = vmatmul.mubr.bf16.gmra.mrb[24].mxu0 %v264_v57  ;;  %543 = vmatmul.mubr.bf16.gmra.mrb[24].mxu1 %v272_v58 }
  0x58   : > { %472 = vmatprep.mubr.bf16.mxu0 %v1551_v2  ;;  %552 = vmatprep.mubr.bf16.mxu1 %v1551_v2 }
  0x5f   : > { %473 = vmatmul.mubr.bf16.gmra.mrb[28].mxu0 %v265_v63  ;;  %553 = vmatmul.mubr.bf16.gmra.mrb[28].mxu1 %v273_v0 }
  0xfa   : > { %v1693_v1 = vpop.f32.mrb[0].mxu0  ;;  %v1695_v3 = vpop.f32.mrb[0].mxu1 }
  0xfb   : > { %v406_v4 = vpop.f32.mrb[1].mxu0  ;;  %v486_v5 = vpop.f32.mrb[1].mxu1 }
  0xfc   : > { %v1702_v2 = vpop.f32.mrb[2].mxu0  ;;  %v1704_v6 = vpop.f32.mrb[2].mxu1 }
  0xfd   : > { %v1307_v7 = vpack.c.bf16 %v1702_v2, %v1693_v1  ;;  %v883_v8 = vadd.f32 %v1702_v2, %v1693_v1  ;;  %v410_v9 = vpop.f32.mrb[3].mxu0  ;;  %v1347_v10 = vpack.c.bf16 %v1704_v6, %v1695_v3  ;;  %v490_v11 = vpop.f32.mrb[3].mxu1 }
  0xfe   : > { %v1387_v12 = vpack.c.bf16 %v410_v9, %v406_v4  ;;  %v1427_v13 = vpack.c.bf16 %v490_v11, %v486_v5 }
  0xff   : > { %1308 = vst [vmem:[%s1700_s8] sm:$0xff] %v1307_v7   ;;  %1471 = vst [vmem:[%s1700_s8 + $0x40] sm:$0xff] %v1347_v10  }
 0x100   : > { %1388 = vst [vmem:[%s1713_s10] sm:$0xff] %v1387_v12   ;;  %1486 = vst [vmem:[%s1713_s10 + $0x40] sm:$0xff] %v1427_v13  }
 0x102   : > { %v1721_v14 = vpop.f32.mrb[4].mxu0  ;;  %v1723_v15 = vpop.f32.mrb[4].mxu1 }
 0x103   : > { %v884_v16 = vadd.f32 %v883_v8, %v1721_v14  ;;  %v416_v17 = vpop.f32.mrb[5].mxu0  ;;  %v496_v18 = vpop.f32.mrb[5].mxu1 }
 0x104   : > { %v1726_v19 = vpop.f32.mrb[6].mxu0  ;;  %v1728_v20 = vpop.f32.mrb[6].mxu1 }
 0x105   : > { %v1312_v21 = vpack.c.bf16 %v1726_v19, %v1721_v14  ;;  %v885_v22 = vadd.f32 %v884_v16, %v1726_v19  ;;  %v420_v23 = vpop.f32.mrb[7].mxu0  ;;  %v1352_v24 = vpack.c.bf16 %v1728_v20, %v1723_v15  ;;  %v500_v25 = vpop.f32.mrb[7].mxu1 }
 0x106   : > { %v1392_v26 = vpack.c.bf16 %v420_v23, %v416_v17  ;;  %v1432_v27 = vpack.c.bf16 %v500_v25, %v496_v18 }
 0x107   : > { %1464 = vst [vmem:[%s1700_s8 + $0x8] sm:$0xff] %v1312_v21   ;;  %1472 = vst [vmem:[%s1700_s8 + $0x48] sm:$0xff] %v1352_v24  }
 0x108   : > { %1479 = vst [vmem:[%s1713_s10 + $0x8] sm:$0xff] %v1392_v26   ;;  %1487 = vst [vmem:[%s1713_s10 + $0x48] sm:$0xff] %v1432_v27  }
 0x10a   : > { %v1739_v28 = vpop.f32.mrb[8].mxu0  ;;  %v1741_v29 = vpop.f32.mrb[8].mxu1 }
 0x10b   : > { %v886_v30 = vadd.f32 %v885_v22, %v1739_v28  ;;  %v426_v31 = vpop.f32.mrb[9].mxu0  ;;  %v506_v32 = vpop.f32.mrb[9].mxu1 }
 0x10c   : > { %v1744_v33 = vpop.f32.mrb[10].mxu0  ;;  %v1746_v34 = vpop.f32.mrb[10].mxu1 }
 0x10d   : > { %v1317_v35 = vpack.c.bf16 %v1744_v33, %v1739_v28  ;;  %v887_v36 = vadd.f32 %v886_v30, %v1744_v33  ;;  %v430_v37 = vpop.f32.mrb[11].mxu0  ;;  %v1357_v38 = vpack.c.bf16 %v1746_v34, %v1741_v29  ;;  %v510_v39 = vpop.f32.mrb[11].mxu1 }
 0x10e   : > { %v1397_v40 = vpack.c.bf16 %v430_v37, %v426_v31  ;;  %v1437_v41 = vpack.c.bf16 %v510_v39, %v506_v32 }
 0x10f   : > { %1465 = vst [vmem:[%s1700_s8 + $0x10] sm:$0xff] %v1317_v35   ;;  %1473 = vst [vmem:[%s1700_s8 + $0x50] sm:$0xff] %v1357_v38  }
 0x110   : > { %1480 = vst [vmem:[%s1713_s10 + $0x10] sm:$0xff] %v1397_v40   ;;  %1488 = vst [vmem:[%s1713_s10 + $0x50] sm:$0xff] %v1437_v41  }
 0x112   : > { %v1757_v42 = vpop.f32.mrb[12].mxu0  ;;  %v1759_v43 = vpop.f32.mrb[12].mxu1 }
 0x113   : > { %v888_v44 = vadd.f32 %v887_v36, %v1757_v42  ;;  %v436_v45 = vpop.f32.mrb[13].mxu0  ;;  %v516_v46 = vpop.f32.mrb[13].mxu1 }
 0x114   : > { %v1762_v47 = vpop.f32.mrb[14].mxu0  ;;  %v1764_v48 = vpop.f32.mrb[14].mxu1 }
 0x115   : > { %v1322_v49 = vpack.c.bf16 %v1762_v47, %v1757_v42  ;;  %v889_v50 = vadd.f32 %v888_v44, %v1762_v47  ;;  %v440_v51 = vpop.f32.mrb[15].mxu0  ;;  %v1362_v52 = vpack.c.bf16 %v1764_v48, %v1759_v43  ;;  %v520_v53 = vpop.f32.mrb[15].mxu1 }
 0x116   : > { %v1402_v54 = vpack.c.bf16 %v440_v51, %v436_v45  ;;  %v1442_v55 = vpack.c.bf16 %v520_v53, %v516_v46 }
 0x117   : > { %1466 = vst [vmem:[%s1700_s8 + $0x18] sm:$0xff] %v1322_v49   ;;  %1474 = vst [vmem:[%s1700_s8 + $0x58] sm:$0xff] %v1362_v52  }
 0x118   : > { %1481 = vst [vmem:[%s1713_s10 + $0x18] sm:$0xff] %v1402_v54   ;;  %1489 = vst [vmem:[%s1713_s10 + $0x58] sm:$0xff] %v1442_v55  }
 0x11a   : > { %v1775_v56 = vpop.f32.mrb[16].mxu0  ;;  %v1777_v57 = vpop.f32.mrb[16].mxu1 }
 0x11b   : > { %v890_v58 = vadd.f32 %v889_v50, %v1775_v56  ;;  %v446_v59 = vpop.f32.mrb[17].mxu0  ;;  %v526_v60 = vpop.f32.mrb[17].mxu1 }
 0x11c   : > { %v1780_v61 = vpop.f32.mrb[18].mxu0  ;;  %v1782_v62 = vpop.f32.mrb[18].mxu1 }
 0x11d   : > { %v1327_v63 = vpack.c.bf16 %v1780_v61, %v1775_v56  ;;  %v891_v0 = vadd.f32 %v890_v58, %v1780_v61  ;;  %v450_v4 = vpop.f32.mrb[19].mxu0  ;;  %v1367_v5 = vpack.c.bf16 %v1782_v62, %v1777_v57  ;;  %v530_v7 = vpop.f32.mrb[19].mxu1 }
 0x11e   : > { %v1407_v8 = vpack.c.bf16 %v450_v4, %v446_v59  ;;  %v1447_v9 = vpack.c.bf16 %v530_v7, %v526_v60 }
 0x11f   : > { %1467 = vst [vmem:[%s1700_s8 + $0x20] sm:$0xff] %v1327_v63   ;;  %1475 = vst [vmem:[%s1700_s8 + $0x60] sm:$0xff] %v1367_v5  }
 0x120   : > { %1482 = vst [vmem:[%s1713_s10 + $0x20] sm:$0xff] %v1407_v8   ;;  %1490 = vst [vmem:[%s1713_s10 + $0x60] sm:$0xff] %v1447_v9  }
 0x122   : > { %v1793_v10 = vpop.f32.mrb[20].mxu0  ;;  %v1795_v11 = vpop.f32.mrb[20].mxu1 }
 0x123   : > { %v892_v12 = vadd.f32 %v891_v0, %v1793_v10  ;;  %v456_v13 = vpop.f32.mrb[21].mxu0  ;;  %v536_v16 = vpop.f32.mrb[21].mxu1 }
 0x124   : > { %v1798_v17 = vpop.f32.mrb[22].mxu0  ;;  %v1800_v18 = vpop.f32.mrb[22].mxu1 }
 0x125   : > { %v1332_v21 = vpack.c.bf16 %v1798_v17, %v1793_v10  ;;  %v893_v22 = vadd.f32 %v892_v12, %v1798_v17  ;;  %v460_v23 = vpop.f32.mrb[23].mxu0  ;;  %v1372_v24 = vpack.c.bf16 %v1800_v18, %v1795_v11  ;;  %v540_v25 = vpop.f32.mrb[23].mxu1 }
 0x126   : > { %v1412_v26 = vpack.c.bf16 %v460_v23, %v456_v13  ;;  %v1452_v27 = vpack.c.bf16 %v540_v25, %v536_v16 }
 0x127   : > { %1468 = vst [vmem:[%s1700_s8 + $0x28] sm:$0xff] %v1332_v21   ;;  %1476 = vst [vmem:[%s1700_s8 + $0x68] sm:$0xff] %v1372_v24  }
 0x128   : > { %1483 = vst [vmem:[%s1713_s10 + $0x28] sm:$0xff] %v1412_v26   ;;  %1491 = vst [vmem:[%s1713_s10 + $0x68] sm:$0xff] %v1452_v27  }
 0x12a   : > { %v1811_v30 = vpop.f32.mrb[24].mxu0  ;;  %v1813_v31 = vpop.f32.mrb[24].mxu1 }
 0x12b   : > { %v894_v32 = vadd.f32 %v893_v22, %v1811_v30  ;;  %v466_v35 = vpop.f32.mrb[25].mxu0  ;;  %v546_v36 = vpop.f32.mrb[25].mxu1 }
 0x12c   : > { %v1816_v37 = vpop.f32.mrb[26].mxu0  ;;  %v1818_v38 = vpop.f32.mrb[26].mxu1 }
 0x12d   : > { %v1337_v39 = vpack.c.bf16 %v1816_v37, %v1811_v30  ;;  %v895_v40 = vadd.f32 %v894_v32, %v1816_v37  ;;  %v470_v41 = vpop.f32.mrb[27].mxu0  ;;  %v1377_v44 = vpack.c.bf16 %v1818_v38, %v1813_v31  ;;  %v550_v45 = vpop.f32.mrb[27].mxu1 }
 0x12e   : > { %v1417_v46 = vpack.c.bf16 %v470_v41, %v466_v35  ;;  %v1457_v49 = vpack.c.bf16 %v550_v45, %v546_v36 }
 0x12f   : > { %1469 = vst [vmem:[%s1700_s8 + $0x30] sm:$0xff] %v1337_v39   ;;  %1477 = vst [vmem:[%s1700_s8 + $0x70] sm:$0xff] %v1377_v44  }
 0x130   : > { %1484 = vst [vmem:[%s1713_s10 + $0x30] sm:$0xff] %v1417_v46   ;;  %1492 = vst [vmem:[%s1713_s10 + $0x70] sm:$0xff] %v1457_v49  }
 0x132   : > { %v1829_v50 = vpop.f32.mrb[28].mxu0  ;;  %v1831_v51 = vpop.f32.mrb[28].mxu1 }
 0x133   : > { %v896_v52 = vadd.f32 %v895_v40, %v1829_v50  ;;  %v476_v53 = vpop.f32.mrb[29].mxu0  ;;  %v556_v54 = vpop.f32.mrb[29].mxu1 }
 0x134   : > { %v1834_v55 = vpop.f32.mrb[30].mxu0  ;;  %v1836_v58 = vpop.f32.mrb[30].mxu1 }
 0x135   : > { %v1342_v59 = vpack.c.bf16 %v1834_v55, %v1829_v50  ;;  %v897_v60 = vadd.f32 %v896_v52, %v1834_v55  ;;  %v480_v63 = vpop.f32.mrb[31].mxu0  ;;  %v1382_v0 = vpack.c.bf16 %v1836_v58, %v1831_v51  ;;  %v560_v4 = vpop.f32.mrb[31].mxu1 }
 0x136   : > { %v1422_v5 = vpack.c.bf16 %v480_v63, %v476_v53  ;;  %v1462_v7 = vpack.c.bf16 %v560_v4, %v556_v54 }
 0x137   : > { %1470 = vst [vmem:[%s1700_s8 + $0x38] sm:$0xff] %v1342_v59   ;;  %v898_v8 = vadd.f32 %v897_v60, %v1695_v3  ;;  %1478 = vst [vmem:[%s1700_s8 + $0x78] sm:$0xff] %v1382_v0  }
 0x138   : > { %1485 = vst [vmem:[%s1713_s10 + $0x38] sm:$0xff] %v1422_v5   ;;  %1493 = vst [vmem:[%s1713_s10 + $0x78] sm:$0xff] %v1462_v7  }
 0x139   : > { %v899_v9 = vadd.f32 %v898_v8, %v1704_v6 }
 0x13b   : > { %v900_v12 = vadd.f32 %v899_v9, %v1723_v15 }
 0x13d   : > { %v901_v13 = vadd.f32 %v900_v12, %v1728_v20 }
 0x13f   : > { %v902_v16 = vadd.f32 %v901_v13, %v1741_v29 }
 0x141   : > { %v903_v21 = vadd.f32 %v902_v16, %v1746_v34 }
 0x143   : > { %v904_v22 = vadd.f32 %v903_v21, %v1759_v43 }
 0x145   : > { %v905_v23 = vadd.f32 %v904_v22, %v1764_v48 }
 0x147   : > { %v906_v24 = vadd.f32 %v905_v23, %v1777_v57 }
 0x149   : > { %v907_v25 = vadd.f32 %v906_v24, %v1782_v62 }
 0x14b   : > { %v908_v26 = vadd.f32 %v907_v25, %v1795_v11 }
 0x14d   : > { %v909_v27 = vadd.f32 %v908_v26, %v1800_v18 }
 0x14f   : > { %v910_v32 = vadd.f32 %v909_v27, %v1813_v31 }
 0x151   : > { %v911_v35 = vadd.f32 %v910_v32, %v1818_v38 }
 0x153   : > { %v912_v36 = vadd.f32 %v911_v35, %v1831_v51 }
 0x155   : > { %v913_v39 = vadd.f32 %v912_v36, %v1836_v58 }
 0x157   : > { %v914_v40 = vrot.slane %v913_v39, 4 }
 0x159   : > { %v915_v41 = vadd.f32 %v914_v40, %v913_v39 }
 0x15b   : > { %v916_v44 = vrot.slane %v915_v41, 2 }
 0x15d   : > { %v917_v45 = vadd.f32 %v916_v44, %v915_v41 }
 0x15f   : > { %v918_v46 = vrot.slane %v917_v45, 1 }
 0x161   : > { %v1863_v49 = vadd.f32 %v918_v46, %v917_v45 }
 0x163   : > { %v1866_v52 = vmul.f32 0.00390625, %v1863_v49 }
 0x165   : > { %v921_v53 = vsub.f32 %v1693_v1, %v1866_v52  ;;  %v922_v54 = vsub.f32 %v1702_v2, %v1866_v52  ;;  %v923_v59 = vsub.f32 %v1721_v14, %v1866_v52  ;;  %v924_v0 = vsub.f32 %v1726_v19, %v1866_v52 }
 0x166   : > { %v925_v4 = vsub.f32 %v1739_v28, %v1866_v52  ;;  %v926_v8 = vsub.f32 %v1744_v33, %v1866_v52  ;;  %v927_v2 = vsub.f32 %v1757_v42, %v1866_v52  ;;  %v928_v13 = vsub.f32 %v1762_v47, %v1866_v52 }
 0x167   : > { %v953_v60 = vmul.f32 %v921_v53, %v921_v53  ;;  %v954_v63 = vmul.f32 %v922_v54, %v922_v54  ;;  %v955_v5 = vmul.f32 %v923_v59, %v923_v59  ;;  %v956_v1 = vmul.f32 %v924_v0, %v924_v0 }
 0x168   : > { %v957_v12 = vmul.f32 %v925_v4, %v925_v4  ;;  %v958_v16 = vmul.f32 %v926_v8, %v926_v8  ;;  %v929_v28 = vsub.f32 %v1775_v56, %v1866_v52  ;;  %v959_v21 = vmul.f32 %v927_v2, %v927_v2 }
 0x169   : > { %v985_v7 = vadd.f32 %v954_v63, %v953_v60  ;;  %v930_v33 = vsub.f32 %v1780_v61, %v1866_v52  ;;  %v960_v23 = vmul.f32 %v928_v13, %v928_v13  ;;  %v931_v42 = vsub.f32 %v1793_v10, %v1866_v52 }
 0x16a   : > { %v961_v25 = vmul.f32 %v929_v28, %v929_v28  ;;  %v932_v47 = vsub.f32 %v1798_v17, %v1866_v52  ;;  %v933_v56 = vsub.f32 %v1811_v30, %v1866_v52  ;;  %v934_v61 = vsub.f32 %v1816_v37, %v1866_v52 }
 0x16b   : > { %v986_v9 = vadd.f32 %v985_v7, %v955_v5  ;;  %v962_v27 = vmul.f32 %v930_v33, %v930_v33  ;;  %v963_v35 = vmul.f32 %v931_v42, %v931_v42  ;;  %v935_v10 = vsub.f32 %v1829_v50, %v1866_v52 }
 0x16c   : > { %v964_v39 = vmul.f32 %v932_v47, %v932_v47  ;;  %v965_v41 = vmul.f32 %v933_v56, %v933_v56  ;;  %v936_v17 = vsub.f32 %v1834_v55, %v1866_v52  ;;  %v966_v45 = vmul.f32 %v934_v61, %v934_v61 }
 0x16d   : > { %v987_v14 = vadd.f32 %v986_v9, %v956_v1  ;;  %v937_v30 = vsub.f32 %v1695_v3, %v1866_v52  ;;  %v967_v53 = vmul.f32 %v935_v10, %v935_v10  ;;  %v938_v37 = vsub.f32 %v1704_v6, %v1866_v52 }
 0x16e   : > { %v968_v59 = vmul.f32 %v936_v17, %v936_v17  ;;  %v939_v50 = vsub.f32 %v1723_v15, %v1866_v52  ;;  %v940_v55 = vsub.f32 %v1728_v20, %v1866_v52  ;;  %v941_v3 = vsub.f32 %v1741_v29, %v1866_v52 }
 0x16f   : > { %v988_v19 = vadd.f32 %v987_v14, %v957_v12  ;;  %v969_v63 = vmul.f32 %v937_v30, %v937_v30  ;;  %v970_v4 = vmul.f32 %v938_v37, %v938_v37  ;;  %v942_v6 = vsub.f32 %v1746_v34, %v1866_v52 }
 0x170   : > { %v971_v7 = vmul.f32 %v939_v50, %v939_v50  ;;  %v972_v1 = vmul.f32 %v940_v55, %v940_v55  ;;  %v943_v15 = vsub.f32 %v1759_v43, %v1866_v52  ;;  %v973_v2 = vmul.f32 %v941_v3, %v941_v3 }
 0x171   : > { %v989_v22 = vadd.f32 %v988_v19, %v958_v16  ;;  %v944_v20 = vsub.f32 %v1764_v48, %v1866_v52  ;;  %v974_v14 = vmul.f32 %v942_v6, %v942_v6  ;;  %v945_v29 = vsub.f32 %v1777_v57, %v1866_v52 }
 0x172   : > { %v975_v16 = vmul.f32 %v943_v15, %v943_v15  ;;  %v946_v34 = vsub.f32 %v1782_v62, %v1866_v52  ;;  %v947_v43 = vsub.f32 %v1795_v11, %v1866_v52  ;;  %v948_v48 = vsub.f32 %v1800_v18, %v1866_v52 }
 0x173   : > { %v990_v24 = vadd.f32 %v989_v22, %v959_v21  ;;  %v976_v28 = vmul.f32 %v944_v20, %v944_v20  ;;  %v977_v22 = vmul.f32 %v945_v29, %v945_v29  ;;  %v949_v57 = vsub.f32 %v1813_v31, %v1866_v52 }
 0x174   : > { %v979_v42 = vmul.f32 %v947_v43, %v947_v43  ;;  %v950_v62 = vsub.f32 %v1818_v38, %v1866_v52  ;;  %v951_v11 = vsub.f32 %v1831_v51, %v1866_v52  ;;  %v952_v18 = vsub.f32 %v1836_v58, %v1866_v52 }
 0x175   : > { %v991_v26 = vadd.f32 %v990_v24, %v960_v23  ;;  %v978_v23 = vmul.f32 %v946_v34, %v946_v34 }
 0x176   : > { %v982_v56 = vmul.f32 %v950_v62, %v950_v62  ;;  %v983_v31 = vmul.f32 %v951_v11, %v951_v11  ;;  %v984_v61 = vmul.f32 %v952_v18, %v952_v18 }
 0x177   : > { %v992_v32 = vadd.f32 %v991_v26, %v961_v25  ;;  %v980_v26 = vmul.f32 %v948_v48, %v948_v48 }
 0x179   : > { %v993_v36 = vadd.f32 %v992_v32, %v962_v27  ;;  %v981_v27 = vmul.f32 %v949_v57, %v949_v57 }
 0x17b   : > { %v994_v40 = vadd.f32 %v993_v36, %v963_v35 }
 0x17d   : > { %v995_v44 = vadd.f32 %v994_v40, %v964_v39 }
 0x17f   : > { %v996_v46 = vadd.f32 %v995_v44, %v965_v41 }
 0x181   : > { %v997_v54 = vadd.f32 %v996_v46, %v966_v45 }
 0x183   : > { %v998_v60 = vadd.f32 %v997_v54, %v967_v53 }
 0x185   : > { %v999_v0 = vadd.f32 %v998_v60, %v968_v59 }
 0x187   : > { %v1000_v5 = vadd.f32 %v999_v0, %v969_v63 }
 0x189   : > { %v1001_v8 = vadd.f32 %v1000_v5, %v970_v4 }
 0x18b   : > { %v1002_v9 = vadd.f32 %v1001_v8, %v971_v7 }
 0x18d   : > { %v1003_v12 = vadd.f32 %v1002_v9, %v972_v1 }
 0x18f   : > { %v1004_v13 = vadd.f32 %v1003_v12, %v973_v2 }
 0x191   : > { %v1005_v19 = vadd.f32 %v1004_v13, %v974_v14 }
 0x193   : > { %v1006_v21 = vadd.f32 %v1005_v19, %v975_v16 }
 0x195   : > { %v1007_v33 = vadd.f32 %v1006_v21, %v976_v28 }
 0x197   : > { %v1008_v24 = vadd.f32 %v1007_v33, %v977_v22 }
 0x199   : > { %v1009_v25 = vadd.f32 %v1008_v24, %v978_v23 }
 0x19b   : > { %v1010_v47 = vadd.f32 %v1009_v25, %v979_v42 }
 0x19d   : > { %v1011_v32 = vadd.f32 %v1010_v47, %v980_v26 }
 0x19f   : > { %v1012_v35 = vadd.f32 %v1011_v32, %v981_v27 }
 0x1a1   : > { %v1013_v36 = vadd.f32 %v1012_v35, %v982_v56 }
 0x1a3   : > { %v1014_v39 = vadd.f32 %v1013_v36, %v983_v31 }
 0x1a5   : > { %v1015_v40 = vadd.f32 %v1014_v39, %v984_v61 }
 0x1a7   : > { %v1016_v38 = vrot.slane %v1015_v40, 4 }
 0x1a9   : > { %v1017_v10 = vadd.f32 %v1016_v38, %v1015_v40 }
 0x1ab   : > { %v1018_v41 = vrot.slane %v1017_v10, 2 }
 0x1ad   : > { %v1019_v44 = vadd.f32 %v1018_v41, %v1017_v10 }
 0x1af   : > { %v1020_v51 = vrot.slane %v1019_v44, 1 }
 0x1b1   : > { %v1021_v58 = vadd.f32 %v1020_v51, %v1019_v44 }
 0x1b3   : > { %v1023_v52 = vsel %vm1022_vm0, %v1863_v49, %v1021_v58 }
 0x1b4   : > { %1024 = vst [vmem:[%s224_s14] sm:$0x3] %v1023_v52 }
 0x1b5 PF: > { %s15_s15 = sadd.s32 1, %s1549_s15  }
 0x1b6   : > { %p12_p5 = scmp.ge.s32.totalorder %s15_s15, 4  }
 0x1b8   :  { %14 = sbr.rel (!%p12_p5) target bundleno = 1 (0x1), region = 82 }

// kernel: decoder_forward.11
= control target key start
LH: loop header
LB: loop body
LE: loop exit
PB: predicated region body
PF: predicated region fallthrough
CT: control target
= control target key end

     0   :  { %s2171_s24 = smov 0   ;;  %s2686_s0 = inlined_call_operand.vmem [shape: bf16[512,128], index: 0, kind: input, shape index: {}]   ;;  %s2687_s1 = inlined_call_operand.vmem [shape: bf16[512,128], index: 1, kind: input, shape index: {}]   ;;  %s2688_s2 = inlined_call_operand.vmem [shape: f32[1,128], index: 2, kind: input, shape index: {}]   ;;  %s2689_s3 = inlined_call_operand.vmem [shape: f32[1,128], index: 3, kind: input, shape index: {}]   ;;  %s2690_s4 = inlined_call_operand.vmem [shape: bf16[128,256], index: 4, kind: input, shape index: {}]   ;;  %s2691_s5 = inlined_call_operand.vmem [shape: bf16[512,128], index: 5, kind: output, shape index: {0}]   ;;  %s2692_s6 = inlined_call_operand.vmem [shape: bf16[512,128], index: 6, kind: output, shape index: {1}]   ;;  %s2693_s7 = inlined_call_operand.vmem [shape: f32[2,2,128], index: 7, kind: output, shape index: {2}]  }
   0x1 LB: > { %s2177_s25 = sadd.s32 4294967295, %s2128_s24   ;;  %p1567_p0 = scmp.ge.s32.totalorder %s2128_s24, 1  ;;  %s2128_s24 = sphi %s2171_s24, %s18_s24  }
   0x2   : > { %p254_p1 = scmp.lt.s32.totalorder %s2128_s24, 3 }
   0x4   : > { %p255_p2 = pnand %p1567_p0, %p254_p1 }
   0x5   : > { %v2098_v0 = vld [vmem:[%s2690_s4 + $0x4] ss:$8 sps:$4 sm:$0xff] (!%p255_p2)   ;;  %s1568_s28 = sshll.u32 (!%p255_p2), %s2177_s25, 5  ;;  %v2100_v1 = vld [vmem:[%s2690_s4] ss:$8 sps:$4 sm:$0xff] (!%p255_p2)   ;;  %v2130_v2 = vmov (!%p255_p2), 0  }
   0x6   : > { %258 = sbr.rel (%p255_p2) target bundleno = 437 (0x1b5), region = 40  ;;  %807 = vmatprep.mubr.bf16.mxu0 (!%p255_p2), %v2130_v2  ;;  %p301_p3 = scmp.lt.s32.totalorder (!%p255_p2), %s1568_s28, 63  ;;  %887 = vmatprep.mubr.bf16.mxu1 (!%p255_p2), %v2130_v2  ;;  %v2101_v3 = vld [vmem:[%s2690_s4 + $0x14] ss:$8 sps:$4 sm:$0xff] (!%p255_p2)   ;;  %v2103_v4 = vld [vmem:[%s2690_s4 + $0x10] ss:$8 sps:$4 sm:$0xff] (!%p255_p2)  }
   0x7   : > { %775 = vmatprep.subr.bf16.mxu0 (!%p255_p2), %v2098_v0  ;;  %2073 = vmatprep.subr.bf16.mxu1 (!%p255_p2), %v2098_v0  ;;  %v2104_v5 = vld [vmem:[%s2690_s4 + $0x24] ss:$8 sps:$4 sm:$0xff] (!%p255_p2)   ;;  %v2106_v6 = vld [vmem:[%s2690_s4 + $0x20] ss:$8 sps:$4 sm:$0xff] (!%p255_p2)   ;;  %v2107_v7 = vld [vmem:[%s2690_s4 + $0x34] ss:$8 sps:$4 sm:$0xff] (!%p255_p2)  }
   0x8   : > { %776 = vmatpush1.bf16.msra.mxu0 (!%p255_p2), %v2100_v1  ;;  %2081 = vmatpush1.bf16.msra.mxu1 (!%p255_p2), %v2100_v1  ;;  %v2109_v8 = vld [vmem:[%s2690_s4 + $0x30] ss:$8 sps:$4 sm:$0xff] (!%p255_p2)   ;;  %v2110_v9 = vld [vmem:[%s2690_s4 + $0x44] ss:$8 sps:$4 sm:$0xff] (!%p255_p2)   ;;  %v2229_v13 = vld [vmem:[%s2688_s2] ss:$0 sm:$0xff] (!%p255_p2) }
   0x9   : > { %777 = vmatprep.subr.bf16.mxu0 (!%p255_p2), %v2101_v3  ;;  %2074 = vmatprep.subr.bf16.mxu1 (!%p255_p2), %v2101_v3  ;;  %v2234_v14 = vld [vmem:[%s2689_s3] ss:$0 sm:$0xff] (!%p255_p2)  ;;  %v2113_v35 = vld [vmem:[%s2690_s4 + $0x54] ss:$8 sps:$4 sm:$0xff] (!%p255_p2)   ;;  %v2115_v44 = vld [vmem:[%s2690_s4 + $0x50] ss:$8 sps:$4 sm:$0xff] (!%p255_p2)  }
   0xa   : > { %v2112_v29 = vld [vmem:[%s2690_s4 + $0x40] ss:$8 sps:$4 sm:$0xff] (!%p255_p2)   ;;  %v2116_v52 = vld [vmem:[%s2690_s4 + $0x64] ss:$8 sps:$4 sm:$0xff] (!%p255_p2)   ;;  %v2119_v1 = vld [vmem:[%s2690_s4 + $0x74] ss:$8 sps:$4 sm:$0xff] (!%p255_p2)  }
   0xb   : > { %v2118_v62 = vld [vmem:[%s2690_s4 + $0x60] ss:$8 sps:$4 sm:$0xff] (!%p255_p2)   ;;  %p324_p4 = scmp.lt.s32.totalorder (!%p255_p2), %s2177_s25, 1 }
   0xc   : > { %778 = vmatpush1.bf16.msra.mxu0 (!%p255_p2), %v2103_v4  ;;  %2082 = vmatpush1.bf16.msra.mxu1 (!%p255_p2), %v2103_v4 }
   0xd   : > { %s2695_s28 = smov (!%p301_p3, %s1568_s28), 63  ;;  %779 = vmatprep.subr.bf16.mxu0 %v2104_v5  ;;  %2075 = vmatprep.subr.bf16.mxu1 %v2104_v5  ;;  %s2697_s25 = smov (!%p324_p4, %s2177_s25), 1 }
   0xe   : > { %s2199_s14 = sshll.u32 %s2695_s28, 2 }
   0xf   : > { %s2208_s19 = scalar_lea.vmem %s2686_s0, %s2199_s14  ;;  %s2217_s26 = scalar_lea.vmem %s2687_s1, %s2199_s14 }
  0x10   : > { %v1726_v10 = vld [vmem:[%s2208_s19] sm:$0xff]   ;;  %780 = vmatpush1.bf16.msra.mxu0 %v2106_v6  ;;  %2083 = vmatpush1.bf16.msra.mxu1 %v2106_v6  ;;  %v2013_v18 = vld [vmem:[%s2208_s19 + $0x8] sm:$0xff]   ;;  %v2014_v20 = vld [vmem:[%s2208_s19 + $0x10] sm:$0xff]   ;;  %s2442_s8 = scalar_lea.vmem %s2691_s5, %s2199_s14  ;;  %s2454_s11 = scalar_lea.vmem %s2692_s6, %s2199_s14 }
  0x11   : > { %v1727_v11 = vunpack.c.l.bf16 %v1726_v10  ;;  %v1728_v12 = vunpack.c.h.bf16 %v1726_v10  ;;  %v1790_v15 = vld [vmem:[%s2217_s26] sm:$0xff]   ;;  %781 = vmatprep.subr.bf16.mxu0 %v2107_v7  ;;  %v2028_v19 = vld [vmem:[%s2217_s26 + $0x8] sm:$0xff]   ;;  %2076 = vmatprep.subr.bf16.mxu1 %v2107_v7  ;;  %v1731_v23 = vunpack.c.l.bf16 %v2013_v18  ;;  %v1732_v24 = vunpack.c.h.bf16 %v2013_v18  ;;  %v2029_v25 = vld [vmem:[%s2217_s26 + $0x10] sm:$0xff]   ;;  %s1576_s14 = sshll.u32 %s2697_s25, 1 }
  0x12   : > { %v1791_v16 = vunpack.c.l.bf16 %v1790_v15  ;;  %v1792_v17 = vunpack.c.h.bf16 %v1790_v15  ;;  %v1795_v26 = vunpack.c.l.bf16 %v2028_v19  ;;  %v1735_v27 = vunpack.c.l.bf16 %v2014_v20  ;;  %v2015_v34 = vld [vmem:[%s2208_s19 + $0x18] sm:$0xff]   ;;  %v2020_v61 = vld [vmem:[%s2208_s19 + $0x40] sm:$0xff]   ;;  %s327_s15 = scalar_lea.vmem %s2693_s7, %s1576_s14 }
  0x13   : > { %v400_v21 = vmul.f32 %v1727_v11, %v2229_v13  ;;  %v401_v22 = vmul.f32 %v1728_v12, %v2229_v13  ;;  %v1736_v28 = vunpack.c.h.bf16 %v2014_v20  ;;  %v402_v32 = vmul.f32 %v1731_v23, %v2229_v13  ;;  %v2030_v49 = vld [vmem:[%s2217_s26 + $0x18] sm:$0xff]   ;;  %v2035_v6 = vld [vmem:[%s2217_s26 + $0x40] sm:$0xff]  }
  0x14   : > { %782 = vmatpush1.bf16.msra.mxu0 %v2109_v8  ;;  %v403_v33 = vmul.f32 %v1732_v24, %v2229_v13  ;;  %v1796_v36 = vunpack.c.h.bf16 %v2028_v19  ;;  %2084 = vmatpush1.bf16.msra.mxu1 %v2109_v8  ;;  %v404_v37 = vmul.f32 %v1735_v27, %v2229_v13  ;;  %v1799_v39 = vunpack.c.l.bf16 %v2029_v25  ;;  %v2016_v15 = vld [vmem:[%s2208_s19 + $0x20] sm:$0xff]  }
  0x15   : > { %v439_v30 = vadd.f32 %v2234_v14, %v400_v21  ;;  %v440_v31 = vadd.f32 %v2234_v14, %v401_v22  ;;  %783 = vmatprep.subr.bf16.mxu0 %v2110_v9  ;;  %v405_v38 = vmul.f32 %v1736_v28, %v2229_v13  ;;  %v441_v42 = vadd.f32 %v2234_v14, %v402_v32  ;;  %v2031_v28 = vld [vmem:[%s2217_s26 + $0x20] sm:$0xff]  }
  0x16   : > { %v442_v43 = vadd.f32 %v2234_v14, %v403_v33  ;;  %2077 = vmatprep.subr.bf16.mxu1 %v2110_v9  ;;  %v443_v45 = vadd.f32 %v2234_v14, %v404_v37  ;;  %v1800_v47 = vunpack.c.h.bf16 %v2029_v25  ;;  %v1739_v48 = vunpack.c.l.bf16 %v2015_v34 }
  0x17   : > { %v535_v40 = vadd.f32 %v1791_v16, %v439_v30  ;;  %v536_v41 = vadd.f32 %v1792_v17, %v440_v31  ;;  %v444_v46 = vadd.f32 %v2234_v14, %v405_v38  ;;  %v537_v53 = vadd.f32 %v1795_v26, %v441_v42  ;;  %v2121_v16 = vld [vmem:[%s2690_s4 + $0x70] ss:$8 sps:$4 sm:$0xff]  }
  0x18   : > { %784 = vmatpush1.bf16.msra.mxu0 %v2112_v29  ;;  %2085 = vmatpush1.bf16.msra.mxu1 %v2112_v29  ;;  %v1740_v54 = vunpack.c.h.bf16 %v2015_v34  ;;  %v538_v57 = vadd.f32 %v1796_v36, %v442_v43  ;;  %v406_v58 = vmul.f32 %v1739_v48, %v2229_v13  ;;  %v539_v59 = vadd.f32 %v1799_v39, %v443_v45  ;;  %v2021_v29 = vld [vmem:[%s2208_s19 + $0x48] sm:$0xff]  }
  0x19   : > { %vm567_vm0 = vcmp.ge.f32.partialorder %v535_v40, 0.0  ;;  %vm568_vm1 = vcmp.ge.f32.partialorder %v536_v41, 0.0  ;;  %v599_v50 = vmul.f32 0.01, %v535_v40  ;;  %v600_v51 = vmul.f32 0.01, %v536_v41  ;;  %785 = vmatprep.subr.bf16.mxu0 %v2113_v35  ;;  %2078 = vmatprep.subr.bf16.mxu1 %v2113_v35 }
  0x1a   : > { %v1803_v60 = vunpack.c.l.bf16 %v2030_v49  ;;  %v2278_v0 = vadd.f32 %v1800_v47, %v444_v46  ;;  %vm569_vm2 = vcmp.ge.f32.partialorder %v537_v53, 0.0  ;;  %v601_v3 = vmul.f32 0.01, %v537_v53  ;;  %v2017_v48 = vld [vmem:[%s2208_s19 + $0x28] sm:$0xff]  }
  0x1b   : > { %v2267_v55 = vsel %vm567_vm0, %v535_v40, %v599_v50  ;;  %v2269_v56 = vsel %vm568_vm1, %v536_v41, %v600_v51  ;;  %v407_v4 = vmul.f32 %v1740_v54, %v2229_v13  ;;  %v445_v5 = vadd.f32 %v2234_v14, %v406_v58  ;;  %v2036_v40 = vld [vmem:[%s2217_s26 + $0x48] sm:$0xff]  }
  0x1c   : > { %786 = vmatpush1.bf16.msra.mxu0 %v2115_v44  ;;  %v663_v63 = vpack.c.bf16 %v2269_v56, %v2267_v55  ;;  %2086 = vmatpush1.bf16.msra.mxu1 %v2115_v44  ;;  %vm570_vm3 = vcmp.ge.f32.partialorder %v538_v57, 0.0  ;;  %v602_v7 = vmul.f32 0.01, %v538_v57  ;;  %v1804_v8 = vunpack.c.h.bf16 %v2030_v49 }
  0x1d   : > { %787 = vmatprep.subr.bf16.mxu0 %v2116_v52  ;;  %2079 = vmatprep.subr.bf16.mxu1 %v2116_v52  ;;  %v1759_v9 = vunpack.c.l.bf16 %v2020_v61  ;;  %vm571_vm4 = vcmp.ge.f32.partialorder %v539_v59, 0.0  ;;  %v603_v10 = vmul.f32 0.01, %v539_v59  ;;  %v446_v11 = vadd.f32 %v2234_v14, %v407_v4 }
  0x1e   : > { %v2287_v12 = vadd.f32 %v1803_v60, %v445_v5  ;;  %vm572_vm5 = vcmp.ge.f32.partialorder %v2278_v0, 0.0  ;;  %v1760_v17 = vunpack.c.h.bf16 %v2020_v61  ;;  %v1823_v19 = vunpack.c.l.bf16 %v2035_v6  ;;  %v2032_v60 = vld [vmem:[%s2217_s26 + $0x28] sm:$0xff]  }
  0x1f   : > { %v416_v18 = vmul.f32 %v1759_v9, %v2229_v13  ;;  %v2296_v20 = vsel %vm569_vm2, %v537_v53, %v601_v3  ;;  %v604_v21 = vmul.f32 0.01, %v2278_v0  ;;  %v542_v22 = vadd.f32 %v1804_v8, %v446_v11  ;;  %v2037_v11 = vld [vmem:[%s2217_s26 + $0x50] sm:$0xff]  }
  0x20   : > { %788 = vmatpush1.bf16.msra.mxu0 %v2118_v62  ;;  %2087 = vmatpush1.bf16.msra.mxu1 %v2118_v62  ;;  %v1824_v23 = vunpack.c.h.bf16 %v2035_v6  ;;  %v417_v24 = vmul.f32 %v1760_v17, %v2229_v13  ;;  %v1743_v26 = vunpack.c.l.bf16 %v2016_v15  ;;  %v1744_v27 = vunpack.c.h.bf16 %v2016_v15 }
  0x21   : > { %789 = vmatprep.subr.bf16.mxu0 %v2119_v1  ;;  %2080 = vmatprep.subr.bf16.mxu1 %v2119_v1  ;;  %v455_v25 = vadd.f32 %v2234_v14, %v416_v18  ;;  %v634_v30 = vsel %vm570_vm3, %v538_v57, %v602_v7  ;;  %v2305_v31 = vsel %vm571_vm4, %v539_v59, %v603_v10  ;;  %vm573_vm6 = vcmp.ge.f32.partialorder %v2287_v12, 0.0  ;;  %v2022_v10 = vld [vmem:[%s2208_s19 + $0x50] sm:$0xff]  }
  0x22   : > { %v605_v32 = vmul.f32 0.01, %v2287_v12  ;;  %vm574_vm7 = vcmp.ge.f32.partialorder %v542_v22, 0.0  ;;  %v456_v33 = vadd.f32 %v2234_v14, %v417_v24  ;;  %v408_v35 = vmul.f32 %v1743_v26, %v2229_v13 }
  0x23   : > { %v551_v34 = vadd.f32 %v1823_v19, %v455_v25  ;;  %v409_v36 = vmul.f32 %v1744_v27, %v2229_v13  ;;  %v1807_v37 = vunpack.c.l.bf16 %v2031_v28  ;;  %v1763_v38 = vunpack.c.l.bf16 %v2021_v29  ;;  %v2018_v19 = vld [vmem:[%s2208_s19 + $0x30] sm:$0xff]  }
  0x24   : > { %790 = vmatpush1.bf16.msra.mxu0 %v2121_v16  ;;  %2088 = vmatpush1.bf16.msra.mxu1 %v2121_v16  ;;  %v1764_v39 = vunpack.c.h.bf16 %v2021_v29  ;;  %v606_v41 = vmul.f32 0.01, %v542_v22  ;;  %v552_v42 = vadd.f32 %v1824_v23, %v456_v33  ;;  %v447_v44 = vadd.f32 %v2234_v14, %v408_v35 }
  0x25   : > { %vm583_vm8 = vcmp.ge.f32.partialorder %v551_v34, 0.0  ;;  %v615_v43 = vmul.f32 0.01, %v551_v34  ;;  %v1808_v45 = vunpack.c.h.bf16 %v2031_v28  ;;  %v418_v46 = vmul.f32 %v1763_v38, %v2229_v13 }
  0x26   : > { %v419_v47 = vmul.f32 %v1764_v39, %v2229_v13  ;;  %vm584_vm9 = vcmp.ge.f32.partialorder %v552_v42, 0.0  ;;  %v616_v49 = vmul.f32 0.01, %v552_v42  ;;  %v1827_v51 = vunpack.c.l.bf16 %v2036_v40 }
  0x27   : > { %808 = vmatmul.mubr.bf16.vlgmr.msra.gmra.mrb[0].mxu0 %v663_v63  ;;  %v647_v50 = vsel %vm583_vm8, %v551_v34, %v615_v43  ;;  %v448_v52 = vadd.f32 %v2234_v14, %v409_v36  ;;  %v543_v53 = vadd.f32 %v1807_v37, %v447_v44  ;;  %v457_v54 = vadd.f32 %v2234_v14, %v418_v46  ;;  %v2033_v36 = vld [vmem:[%s2217_s26 + $0x30] sm:$0xff]  }
  0x28   : > { %817 = vmatprep.mubr.bf16.mxu0 %v2130_v2  ;;  %v458_v55 = vadd.f32 %v2234_v14, %v419_v47  ;;  %v648_v56 = vsel %vm584_vm9, %v552_v42, %v616_v49  ;;  %v1828_v57 = vunpack.c.h.bf16 %v2036_v40  ;;  %v1747_v58 = vunpack.c.l.bf16 %v2017_v48 }
  0x29   : > { %v1748_v59 = vunpack.c.h.bf16 %v2017_v48  ;;  %v664_v61 = vpack.c.bf16 %v634_v30, %v2296_v20  ;;  %v636_v62 = vsel %vm572_vm5, %v2278_v0, %v604_v21  ;;  %v2329_v63 = vsel %vm573_vm6, %v2287_v12, %v605_v32 }
  0x2a   : > { %v671_v1 = vpack.c.bf16 %v648_v56, %v647_v50  ;;  %v2332_v3 = vsel %vm574_vm7, %v542_v22, %v606_v41  ;;  %v553_v4 = vadd.f32 %v1827_v51, %v457_v54  ;;  %v554_v5 = vadd.f32 %v1828_v57, %v458_v55  ;;  %v2023_v41 = vld [vmem:[%s2208_s19 + $0x58] sm:$0xff]  }
  0x2b   : > { %v410_v6 = vmul.f32 %v1747_v58, %v2229_v13  ;;  %v544_v7 = vadd.f32 %v1808_v45, %v448_v52  ;;  %v411_v8 = vmul.f32 %v1748_v59, %v2229_v13  ;;  %v1811_v9 = vunpack.c.l.bf16 %v2032_v60  ;;  %v2038_v51 = vld [vmem:[%s2217_s26 + $0x58] sm:$0xff]  }
  0x2c   : > { %888 = vmatmul.mubr.bf16.vlgmr.msra.gmra.mrb[0].mxu1 %v671_v1  ;;  %v1812_v0 = vunpack.c.h.bf16 %v2032_v60  ;;  %vm575_vm10 = vcmp.ge.f32.partialorder %v543_v53, 0.0  ;;  %vm585_vm11 = vcmp.ge.f32.partialorder %v553_v4, 0.0  ;;  %vm586_vm12 = vcmp.ge.f32.partialorder %v554_v5, 0.0 }
  0x2d   : > { %897 = vmatprep.mubr.bf16.mxu1 %v2130_v2  ;;  %v617_v12 = vmul.f32 0.01, %v553_v4  ;;  %v607_v15 = vmul.f32 0.01, %v543_v53  ;;  %v618_v16 = vmul.f32 0.01, %v554_v5  ;;  %v449_v17 = vadd.f32 %v2234_v14, %v410_v6 }
  0x2e   : > { %v450_v18 = vadd.f32 %v2234_v14, %v411_v8  ;;  %v1767_v21 = vunpack.c.l.bf16 %v2022_v10  ;;  %v1768_v22 = vunpack.c.h.bf16 %v2022_v10  ;;  %v1831_v23 = vunpack.c.l.bf16 %v2037_v11  ;;  %v2024_v8 = vld [vmem:[%s2208_s19 + $0x60] sm:$0xff]  }
  0x2f   : > { %818 = vmatmul.mubr.bf16.gmra.mrb[4].mxu0 %v664_v61  ;;  %v649_v20 = vsel %vm585_vm11, %v553_v4, %v617_v12  ;;  %v650_v24 = vsel %vm586_vm12, %v554_v5, %v618_v16  ;;  %v545_v25 = vadd.f32 %v1811_v9, %v449_v17  ;;  %v1832_v27 = vunpack.c.h.bf16 %v2037_v11 }
  0x30   : > { %827 = vmatprep.mubr.bf16.mxu0 %v2130_v2  ;;  %v546_v26 = vadd.f32 %v1812_v0, %v450_v18  ;;  %v672_v28 = vpack.c.bf16 %v650_v24, %v649_v20  ;;  %v420_v29 = vmul.f32 %v1767_v21, %v2229_v13  ;;  %v421_v30 = vmul.f32 %v1768_v22, %v2229_v13 }
  0x31   : > { %v1751_v32 = vunpack.c.l.bf16 %v2018_v19  ;;  %v665_v33 = vpack.c.bf16 %v636_v62, %v2305_v31  ;;  %v666_v34 = vpack.c.bf16 %v2332_v3, %v2329_v63  ;;  %vm576_vm13 = vcmp.ge.f32.partialorder %v544_v7, 0.0  ;;  %v2019_v62 = vld [vmem:[%s2208_s19 + $0x38] sm:$0xff]  }
  0x32   : > { %v608_v35 = vmul.f32 0.01, %v544_v7  ;;  %v459_v37 = vadd.f32 %v2234_v14, %v420_v29  ;;  %v460_v38 = vadd.f32 %v2234_v14, %v421_v30  ;;  %v1752_v39 = vunpack.c.h.bf16 %v2018_v19  ;;  %v2039_v19 = vld [vmem:[%s2217_s26 + $0x60] sm:$0xff]  }
  0x33   : > { %v412_v40 = vmul.f32 %v1751_v32, %v2229_v13  ;;  %v2354_v42 = vsel %vm575_vm10, %v543_v53, %v607_v15  ;;  %vm577_vm14 = vcmp.ge.f32.partialorder %v545_v25, 0.0  ;;  %vm578_vm15 = vcmp.ge.f32.partialorder %v546_v26, 0.0 }
  0x34   : > { %898 = vmatmul.mubr.bf16.gmra.mrb[4].mxu1 %v672_v28  ;;  %v609_v31 = vmul.f32 0.01, %v545_v25  ;;  %v610_v43 = vmul.f32 0.01, %v546_v26  ;;  %v555_v44 = vadd.f32 %v1831_v23, %v459_v37  ;;  %v556_v45 = vadd.f32 %v1832_v27, %v460_v38  ;;  %v2390_v27 = vld [vmem:[%s2217_s26 + $0x38] sm:$0xff]  }
  0x35   : > { %907 = vmatprep.mubr.bf16.mxu1 %v2130_v2  ;;  %v1815_v46 = vunpack.c.l.bf16 %v2033_v36  ;;  %v413_v47 = vmul.f32 %v1752_v39, %v2229_v13  ;;  %v451_v48 = vadd.f32 %v2234_v14, %v412_v40  ;;  %v1771_v49 = vunpack.c.l.bf16 %v2023_v41  ;;  %v2040_v39 = vld [vmem:[%s2217_s26 + $0x68] sm:$0xff]   ;;  %v2026_v40 = vld [vmem:[%s2208_s19 + $0x70] sm:$0xff]  }
  0x36   : > { %v1772_v50 = vunpack.c.h.bf16 %v2023_v41  ;;  %vm587_vm0 = vcmp.ge.f32.partialorder %v555_v44, 0.0  ;;  %vm588_vm1 = vcmp.ge.f32.partialorder %v556_v45, 0.0  ;;  %v619_v52 = vmul.f32 0.01, %v555_v44 }
  0x37   : > { %828 = vmatmul.mubr.bf16.gmra.mrb[8].mxu0 %v665_v33  ;;  %v620_v53 = vmul.f32 0.01, %v556_v45  ;;  %v2362_v54 = vsel %vm576_vm13, %v544_v7, %v608_v35  ;;  %v2365_v55 = vsel %vm577_vm14, %v545_v25, %v609_v31  ;;  %v422_v56 = vmul.f32 %v1771_v49, %v2229_v13  ;;  %v2025_v25 = vld [vmem:[%s2208_s19 + $0x68] sm:$0xff]  }
  0x38   : > { %837 = vmatprep.mubr.bf16.mxu0 %v2130_v2  ;;  %v423_v57 = vmul.f32 %v1772_v50, %v2229_v13  ;;  %v651_v58 = vsel %vm587_vm0, %v555_v44, %v619_v52  ;;  %v1835_v60 = vunpack.c.l.bf16 %v2038_v51  ;;  %v1836_v61 = vunpack.c.h.bf16 %v2038_v51  ;;  %v2041_v52 = vld [vmem:[%s2217_s26 + $0x70] sm:$0xff]  }
  0x39   : > { %v652_v59 = vsel %vm588_vm1, %v556_v45, %v620_v53  ;;  %v2371_v63 = vsel %vm578_vm15, %v546_v26, %v610_v43  ;;  %v452_v3 = vadd.f32 %v2234_v14, %v413_v47  ;;  %v1816_v4 = vunpack.c.h.bf16 %v2033_v36 }
  0x3a   : > { %v673_v1 = vpack.c.bf16 %v652_v59, %v651_v58  ;;  %v547_v5 = vadd.f32 %v1815_v46, %v451_v48  ;;  %v461_v6 = vadd.f32 %v2234_v14, %v422_v56  ;;  %v462_v7 = vadd.f32 %v2234_v14, %v423_v57 }
  0x3b   : > { %v1755_v9 = vunpack.c.l.bf16 %v2019_v62  ;;  %v667_v0 = vpack.c.bf16 %v2362_v54, %v2354_v42  ;;  %v668_v10 = vpack.c.bf16 %v2371_v63, %v2365_v55  ;;  %v2382_v15 = vadd.f32 %v1816_v4, %v452_v3 }
  0x3c   : > { %908 = vmatmul.mubr.bf16.gmra.mrb[8].mxu1 %v673_v1  ;;  %v557_v11 = vadd.f32 %v1835_v60, %v461_v6  ;;  %v558_v12 = vadd.f32 %v1836_v61, %v462_v7  ;;  %v1756_v16 = vunpack.c.h.bf16 %v2019_v62  ;;  %v1775_v17 = vunpack.c.l.bf16 %v2024_v8  ;;  %v2027_v60 = vld [vmem:[%s2208_s19 + $0x78] sm:$0xff]  }
  0x3d   : > { %917 = vmatprep.mubr.bf16.mxu1 %v2130_v2  ;;  %v1776_v18 = vunpack.c.h.bf16 %v2024_v8  ;;  %vm579_vm2 = vcmp.ge.f32.partialorder %v547_v5, 0.0  ;;  %v611_v21 = vmul.f32 0.01, %v547_v5  ;;  %v414_v23 = vmul.f32 %v1755_v9, %v2229_v13 }
  0x3e   : > { %vm589_vm3 = vcmp.ge.f32.partialorder %v557_v11, 0.0  ;;  %vm590_vm4 = vcmp.ge.f32.partialorder %v558_v12, 0.0  ;;  %v621_v20 = vmul.f32 0.01, %v557_v11  ;;  %v622_v22 = vmul.f32 0.01, %v558_v12 }
  0x3f   : > { %838 = vmatmul.mubr.bf16.gmra.mrb[12].mxu0 %v666_v34  ;;  %v424_v24 = vmul.f32 %v1775_v17, %v2229_v13  ;;  %v425_v28 = vmul.f32 %v1776_v18, %v2229_v13  ;;  %v1839_v29 = vunpack.c.l.bf16 %v2039_v19  ;;  %v1840_v30 = vunpack.c.h.bf16 %v2039_v19 }
  0x40   : > { %847 = vmatprep.mubr.bf16.mxu0 %v2130_v2  ;;  %v653_v26 = vsel %vm589_vm3, %v557_v11, %v621_v20  ;;  %vm580_vm5 = vcmp.ge.f32.partialorder %v2382_v15, 0.0  ;;  %v612_v32 = vmul.f32 0.01, %v2382_v15  ;;  %v654_v33 = vsel %vm590_vm4, %v558_v12, %v622_v22 }
  0x41   : > { %v415_v34 = vmul.f32 %v1756_v16, %v2229_v13  ;;  %v674_v35 = vpack.c.bf16 %v654_v33, %v653_v26  ;;  %v463_v36 = vadd.f32 %v2234_v14, %v424_v24  ;;  %v464_v37 = vadd.f32 %v2234_v14, %v425_v28  ;;  %v2042_v24 = vld [vmem:[%s2217_s26 + $0x78] sm:$0xff]  }
  0x42   : > { %v1779_v38 = vunpack.c.l.bf16 %v2025_v25  ;;  %v2401_v41 = vsel %vm579_vm2, %v547_v5, %v611_v21  ;;  %v453_v42 = vadd.f32 %v2234_v14, %v414_v23  ;;  %v1819_v31 = vunpack.c.l.bf16 %v2390_v27 }
  0x43   : > { %v1780_v43 = vunpack.c.h.bf16 %v2025_v25  ;;  %v1820_v44 = vunpack.c.h.bf16 %v2390_v27  ;;  %v559_v45 = vadd.f32 %v1839_v29, %v463_v36  ;;  %v560_v46 = vadd.f32 %v1840_v30, %v464_v37 }
  0x44   : > { %918 = vmatmul.mubr.bf16.gmra.mrb[12].mxu1 %v674_v35  ;;  %v426_v47 = vmul.f32 %v1779_v38, %v2229_v13  ;;  %v1843_v49 = vunpack.c.l.bf16 %v2040_v39  ;;  %v1844_v50 = vunpack.c.h.bf16 %v2040_v39  ;;  %v1783_v51 = vunpack.c.l.bf16 %v2026_v40 }
  0x45   : > { %927 = vmatprep.mubr.bf16.mxu1 %v2130_v2  ;;  %v427_v48 = vmul.f32 %v1780_v43, %v2229_v13  ;;  %v454_v53 = vadd.f32 %v2234_v14, %v415_v34  ;;  %vm591_vm6 = vcmp.ge.f32.partialorder %v559_v45, 0.0  ;;  %vm592_vm7 = vcmp.ge.f32.partialorder %v560_v46, 0.0 }
  0x46   : > { %v623_v54 = vmul.f32 0.01, %v559_v45  ;;  %v624_v56 = vmul.f32 0.01, %v560_v46  ;;  %v465_v57 = vadd.f32 %v2234_v14, %v426_v47  ;;  %v1784_v59 = vunpack.c.h.bf16 %v2026_v40 }
  0x47   : > { %848 = vmatmul.mubr.bf16.gmra.mrb[16].mxu0 %v667_v0  ;;  %v466_v58 = vadd.f32 %v2234_v14, %v427_v48  ;;  %v428_v62 = vmul.f32 %v1783_v51, %v2229_v13  ;;  %v1847_v1 = vunpack.c.l.bf16 %v2041_v52  ;;  %v1848_v3 = vunpack.c.h.bf16 %v2041_v52 }
  0x48   : > { %857 = vmatprep.mubr.bf16.mxu0 %v2130_v2  ;;  %v655_v61 = vsel %vm591_vm6, %v559_v45, %v623_v54  ;;  %v656_v4 = vsel %vm592_vm7, %v560_v46, %v624_v56  ;;  %v561_v5 = vadd.f32 %v1843_v49, %v465_v57  ;;  %v429_v7 = vmul.f32 %v1784_v59, %v2229_v13 }
  0x49   : > { %v562_v6 = vadd.f32 %v1844_v50, %v466_v58  ;;  %v675_v8 = vpack.c.bf16 %v656_v4, %v655_v61  ;;  %v467_v9 = vadd.f32 %v2234_v14, %v428_v62  ;;  %v1787_v0 = vunpack.c.l.bf16 %v2027_v60 }
  0x4a   : > { %v1788_v11 = vunpack.c.h.bf16 %v2027_v60  ;;  %vm593_vm8 = vcmp.ge.f32.partialorder %v561_v5, 0.0  ;;  %v625_v12 = vmul.f32 0.01, %v561_v5  ;;  %v644_v17 = vsel %vm580_vm5, %v2382_v15, %v612_v32 }
  0x4b   : > { %vm594_vm9 = vcmp.ge.f32.partialorder %v562_v6, 0.0  ;;  %v626_v16 = vmul.f32 0.01, %v562_v6  ;;  %v468_v18 = vadd.f32 %v2234_v14, %v429_v7  ;;  %v563_v19 = vadd.f32 %v1847_v1, %v467_v9 }
  0x4c   : > { %928 = vmatmul.mubr.bf16.gmra.mrb[16].mxu1 %v675_v8  ;;  %v430_v20 = vmul.f32 %v1787_v0, %v2229_v13  ;;  %v657_v21 = vsel %vm593_vm8, %v561_v5, %v625_v12  ;;  %v431_v23 = vmul.f32 %v1788_v11, %v2229_v13  ;;  %v549_v15 = vadd.f32 %v1819_v31, %v453_v42 }
  0x4d   : > { %937 = vmatprep.mubr.bf16.mxu1 %v2130_v2  ;;  %v658_v22 = vsel %vm594_vm9, %v562_v6, %v626_v16  ;;  %v550_v25 = vadd.f32 %v1820_v44, %v454_v53  ;;  %v564_v26 = vadd.f32 %v1848_v3, %v468_v18  ;;  %v669_v27 = vpack.c.bf16 %v644_v17, %v2401_v41 }
  0x4e   : > { %v676_v28 = vpack.c.bf16 %v658_v22, %v657_v21  ;;  %v627_v29 = vmul.f32 0.01, %v563_v19  ;;  %v1851_v30 = vunpack.c.l.bf16 %v2042_v24  ;;  %v1852_v32 = vunpack.c.h.bf16 %v2042_v24 }
  0x4f   : > { %858 = vmatmul.mubr.bf16.gmra.mrb[20].mxu0 %v668_v10  ;;  %vm595_vm10 = vcmp.ge.f32.partialorder %v563_v19, 0.0  ;;  %v628_v55 = vmul.f32 0.01, %v564_v26  ;;  %v469_v63 = vadd.f32 %v2234_v14, %v430_v20  ;;  %v470_v10 = vadd.f32 %v2234_v14, %v431_v23 }
  0x50   : > { %867 = vmatprep.mubr.bf16.mxu0 %v2130_v2  ;;  %v613_v33 = vmul.f32 0.01, %v549_v15  ;;  %v614_v13 = vmul.f32 0.01, %v550_v25  ;;  %vm596_vm11 = vcmp.ge.f32.partialorder %v564_v26, 0.0  ;;  %vm581_vm12 = vcmp.ge.f32.partialorder %v549_v15, 0.0 }
  0x51   : > { %vm582_vm13 = vcmp.ge.f32.partialorder %v550_v25, 0.0  ;;  %v659_v34 = vsel %vm595_vm10, %v563_v19, %v627_v29  ;;  %v660_v35 = vsel %vm596_vm11, %v564_v26, %v628_v55  ;;  %v565_v36 = vadd.f32 %v1851_v30, %v469_v63 }
  0x52   : > { %v566_v37 = vadd.f32 %v1852_v32, %v470_v10  ;;  %v645_v38 = vsel %vm581_vm12, %v549_v15, %v613_v33  ;;  %v646_v39 = vsel %vm582_vm13, %v550_v25, %v614_v13  ;;  %v677_v40 = vpack.c.bf16 %v660_v35, %v659_v34 }
  0x53   : > { %v670_v14 = vpack.c.bf16 %v646_v39, %v645_v38  ;;  %v629_v41 = vmul.f32 0.01, %v565_v36  ;;  %vm597_vm14 = vcmp.ge.f32.partialorder %v565_v36, 0.0  ;;  %vm1427_vm0 = vcmask 1040384  }
  0x54   : > { %938 = vmatmul.mubr.bf16.gmra.mrb[20].mxu1 %v676_v28  ;;  %v630_v42 = vmul.f32 0.01, %v566_v37  ;;  %vm598_vm15 = vcmp.ge.f32.partialorder %v566_v37, 0.0 }
  0x55   : > { %947 = vmatprep.mubr.bf16.mxu1 %v2130_v2  ;;  %v661_v31 = vsel %vm597_vm14, %v565_v36, %v629_v41 }
  0x56   : > { %v662_v43 = vsel %vm598_vm15, %v566_v37, %v630_v42 }
  0x57   : > { %868 = vmatmul.mubr.bf16.gmra.mrb[24].mxu0 %v669_v27  ;;  %v678_v44 = vpack.c.bf16 %v662_v43, %v661_v31 }
  0x58   : > { %877 = vmatprep.mubr.bf16.mxu0 %v2130_v2 }
  0x5c   : > { %948 = vmatmul.mubr.bf16.gmra.mrb[24].mxu1 %v677_v40 }
  0x5d   : > { %957 = vmatprep.mubr.bf16.mxu1 %v2130_v2 }
  0x5f   : > { %878 = vmatmul.mubr.bf16.gmra.mrb[28].mxu0 %v670_v14 }
  0x64   : > { %958 = vmatmul.mubr.bf16.gmra.mrb[28].mxu1 %v678_v44 }
  0xfa   : > { %v2436_v45 = vpop.f32.mrb[0].mxu0 }
  0xfb   : > { %v811_v46 = vpop.f32.mrb[1].mxu0 }
  0xfc   : > { %v2444_v47 = vpop.f32.mrb[2].mxu0 }
  0xfd   : > { %v1856_v48 = vpack.c.bf16 %v2444_v47, %v2436_v45  ;;  %v1288_v2 = vadd.f32 %v2444_v47, %v2436_v45  ;;  %v815_v49 = vpop.f32.mrb[3].mxu0 }
  0xfe   : > { %v1936_v50 = vpack.c.bf16 %v815_v49, %v811_v46 }
  0xff   : > { %1857 = vst [vmem:[%s2442_s8] sm:$0xff] %v1856_v48   ;;  %v2458_v51 = vpop.f32.mrb[0].mxu1 }
 0x100   : > { %1937 = vst [vmem:[%s2454_s11] sm:$0xff] %v1936_v50   ;;  %v891_v52 = vpop.f32.mrb[1].mxu1 }
 0x101   : > { %v2462_v54 = vpop.f32.mrb[2].mxu1 }
 0x102   : > { %v2460_v53 = vpop.f32.mrb[4].mxu0  ;;  %v1896_v58 = vpack.c.bf16 %v2462_v54, %v2458_v51  ;;  %v895_v59 = vpop.f32.mrb[3].mxu1 }
 0x103   : > { %v1289_v56 = vadd.f32 %v1288_v2, %v2460_v53  ;;  %v821_v57 = vpop.f32.mrb[5].mxu0  ;;  %v1976_v61 = vpack.c.bf16 %v895_v59, %v891_v52 }
 0x104   : > { %v2467_v60 = vpop.f32.mrb[6].mxu0  ;;  %2050 = vst [vmem:[%s2442_s8 + $0x40] sm:$0xff] %v1896_v58  }
 0x105   : > { %v1861_v62 = vpack.c.bf16 %v2467_v60, %v2460_v53  ;;  %v1290_v1 = vadd.f32 %v1289_v56, %v2467_v60  ;;  %v825_v3 = vpop.f32.mrb[7].mxu0  ;;  %2065 = vst [vmem:[%s2454_s11 + $0x40] sm:$0xff] %v1976_v61  }
 0x106   : > { %v1941_v4 = vpack.c.bf16 %v825_v3, %v821_v57 }
 0x107   : > { %2043 = vst [vmem:[%s2442_s8 + $0x8] sm:$0xff] %v1861_v62   ;;  %v2476_v5 = vpop.f32.mrb[4].mxu1 }
 0x108   : > { %2058 = vst [vmem:[%s2454_s11 + $0x8] sm:$0xff] %v1941_v4   ;;  %v901_v6 = vpop.f32.mrb[5].mxu1 }
 0x109   : > { %v2480_v8 = vpop.f32.mrb[6].mxu1 }
 0x10a   : > { %v2478_v7 = vpop.f32.mrb[8].mxu0  ;;  %v1901_v11 = vpack.c.bf16 %v2480_v8, %v2476_v5  ;;  %v905_v12 = vpop.f32.mrb[7].mxu1 }
 0x10b   : > { %v1291_v9 = vadd.f32 %v1290_v1, %v2478_v7  ;;  %v831_v0 = vpop.f32.mrb[9].mxu0  ;;  %v1981_v17 = vpack.c.bf16 %v905_v12, %v901_v6 }
 0x10c   : > { %v2485_v16 = vpop.f32.mrb[10].mxu0  ;;  %2051 = vst [vmem:[%s2442_s8 + $0x48] sm:$0xff] %v1901_v11  }
 0x10d   : > { %v1866_v18 = vpack.c.bf16 %v2485_v16, %v2478_v7  ;;  %v1292_v19 = vadd.f32 %v1291_v9, %v2485_v16  ;;  %v835_v20 = vpop.f32.mrb[11].mxu0  ;;  %2066 = vst [vmem:[%s2454_s11 + $0x48] sm:$0xff] %v1981_v17  }
 0x10e   : > { %v1946_v21 = vpack.c.bf16 %v835_v20, %v831_v0 }
 0x10f   : > { %2044 = vst [vmem:[%s2442_s8 + $0x10] sm:$0xff] %v1866_v18   ;;  %v2494_v22 = vpop.f32.mrb[8].mxu1 }
 0x110   : > { %2059 = vst [vmem:[%s2454_s11 + $0x10] sm:$0xff] %v1946_v21   ;;  %v911_v23 = vpop.f32.mrb[9].mxu1 }
 0x111   : > { %v2498_v15 = vpop.f32.mrb[10].mxu1 }
 0x112   : > { %v2496_v24 = vpop.f32.mrb[12].mxu0  ;;  %v1906_v27 = vpack.c.bf16 %v2498_v15, %v2494_v22  ;;  %v915_v28 = vpop.f32.mrb[11].mxu1 }
 0x113   : > { %v1293_v25 = vadd.f32 %v1292_v19, %v2496_v24  ;;  %v841_v26 = vpop.f32.mrb[13].mxu0  ;;  %v1986_v30 = vpack.c.bf16 %v915_v28, %v911_v23 }
 0x114   : > { %v2503_v29 = vpop.f32.mrb[14].mxu0  ;;  %2052 = vst [vmem:[%s2442_s8 + $0x50] sm:$0xff] %v1906_v27  }
 0x115   : > { %v1871_v32 = vpack.c.bf16 %v2503_v29, %v2496_v24  ;;  %v1294_v55 = vadd.f32 %v1293_v25, %v2503_v29  ;;  %v845_v63 = vpop.f32.mrb[15].mxu0  ;;  %2067 = vst [vmem:[%s2454_s11 + $0x50] sm:$0xff] %v1986_v30  }
 0x116   : > { %v1951_v10 = vpack.c.bf16 %v845_v63, %v841_v26 }
 0x117   : > { %2045 = vst [vmem:[%s2442_s8 + $0x18] sm:$0xff] %v1871_v32   ;;  %v2512_v33 = vpop.f32.mrb[12].mxu1 }
 0x118   : > { %2060 = vst [vmem:[%s2454_s11 + $0x18] sm:$0xff] %v1951_v10   ;;  %v921_v34 = vpop.f32.mrb[13].mxu1 }
 0x119   : > { %v2517_v37 = vpop.f32.mrb[14].mxu1 }
 0x11a   : > { %v2514_v13 = vpop.f32.mrb[16].mxu0  ;;  %v1911_v39 = vpack.c.bf16 %v2517_v37, %v2512_v33  ;;  %v925_v40 = vpop.f32.mrb[15].mxu1 }
 0x11b   : > { %v1295_v35 = vadd.f32 %v1294_v55, %v2514_v13  ;;  %v851_v36 = vpop.f32.mrb[17].mxu0  ;;  %v1991_v31 = vpack.c.bf16 %v925_v40, %v921_v34 }
 0x11c   : > { %v2519_v38 = vpop.f32.mrb[18].mxu0  ;;  %2053 = vst [vmem:[%s2442_s8 + $0x58] sm:$0xff] %v1911_v39  }
 0x11d   : > { %v1876_v14 = vpack.c.bf16 %v2519_v38, %v2514_v13  ;;  %v1296_v41 = vadd.f32 %v1295_v35, %v2519_v38  ;;  %v855_v42 = vpop.f32.mrb[19].mxu0  ;;  %2068 = vst [vmem:[%s2454_s11 + $0x58] sm:$0xff] %v1991_v31  }
 0x11e   : > { %v1956_v43 = vpack.c.bf16 %v855_v42, %v851_v36 }
 0x11f   : > { %2046 = vst [vmem:[%s2442_s8 + $0x20] sm:$0xff] %v1876_v14   ;;  %v2530_v44 = vpop.f32.mrb[16].mxu1 }
 0x120   : > { %2061 = vst [vmem:[%s2454_s11 + $0x20] sm:$0xff] %v1956_v43   ;;  %v931_v48 = vpop.f32.mrb[17].mxu1 }
 0x121   : > { %v2535_v50 = vpop.f32.mrb[18].mxu1 }
 0x122   : > { %v2532_v46 = vpop.f32.mrb[20].mxu0  ;;  %v1916_v56 = vpack.c.bf16 %v2535_v50, %v2530_v44  ;;  %v935_v57 = vpop.f32.mrb[19].mxu1 }
 0x123   : > { %v1297_v2 = vadd.f32 %v1296_v41, %v2532_v46  ;;  %v861_v49 = vpop.f32.mrb[21].mxu0  ;;  %v1996_v62 = vpack.c.bf16 %v935_v57, %v931_v48 }
 0x124   : > { %v2537_v52 = vpop.f32.mrb[22].mxu0  ;;  %2054 = vst [vmem:[%s2442_s8 + $0x60] sm:$0xff] %v1916_v56  }
 0x125   : > { %v1881_v58 = vpack.c.bf16 %v2537_v52, %v2532_v46  ;;  %v1298_v59 = vadd.f32 %v1297_v2, %v2537_v52  ;;  %v865_v61 = vpop.f32.mrb[23].mxu0  ;;  %2069 = vst [vmem:[%s2454_s11 + $0x60] sm:$0xff] %v1996_v62  }
 0x126   : > { %v1961_v1 = vpack.c.bf16 %v865_v61, %v861_v49 }
 0x127   : > { %2047 = vst [vmem:[%s2442_s8 + $0x28] sm:$0xff] %v1881_v58   ;;  %v2548_v3 = vpop.f32.mrb[20].mxu1 }
 0x128   : > { %2062 = vst [vmem:[%s2454_s11 + $0x28] sm:$0xff] %v1961_v1   ;;  %v941_v6 = vpop.f32.mrb[21].mxu1 }
 0x129   : > { %v2553_v11 = vpop.f32.mrb[22].mxu1 }
 0x12a   : > { %v2550_v4 = vpop.f32.mrb[24].mxu0  ;;  %v1921_v17 = vpack.c.bf16 %v2553_v11, %v2548_v3  ;;  %v945_v18 = vpop.f32.mrb[23].mxu1 }
 0x12b   : > { %v1299_v9 = vadd.f32 %v1298_v59, %v2550_v4  ;;  %v871_v0 = vpop.f32.mrb[25].mxu0  ;;  %v2001_v23 = vpack.c.bf16 %v945_v18, %v941_v6 }
 0x12c   : > { %v2555_v12 = vpop.f32.mrb[26].mxu0  ;;  %2055 = vst [vmem:[%s2442_s8 + $0x68] sm:$0xff] %v1921_v17  }
 0x12d   : > { %v1886_v19 = vpack.c.bf16 %v2555_v12, %v2550_v4  ;;  %v1300_v20 = vadd.f32 %v1299_v9, %v2555_v12  ;;  %v875_v21 = vpop.f32.mrb[27].mxu0  ;;  %2070 = vst [vmem:[%s2454_s11 + $0x68] sm:$0xff] %v2001_v23  }
 0x12e   : > { %v1966_v25 = vpack.c.bf16 %v875_v21, %v871_v0 }
 0x12f   : > { %2048 = vst [vmem:[%s2442_s8 + $0x30] sm:$0xff] %v1886_v19   ;;  %v2566_v26 = vpop.f32.mrb[24].mxu1 }
 0x130   : > { %2063 = vst [vmem:[%s2454_s11 + $0x30] sm:$0xff] %v1966_v25   ;;  %v951_v28 = vpop.f32.mrb[25].mxu1 }
 0x131   : > { %v2571_v55 = vpop.f32.mrb[26].mxu1 }
 0x132   : > { %v2568_v27 = vpop.f32.mrb[28].mxu0  ;;  %v1926_v10 = vpack.c.bf16 %v2571_v55, %v2566_v26  ;;  %v955_v34 = vpop.f32.mrb[27].mxu1 }
 0x133   : > { %v1301_v30 = vadd.f32 %v1300_v20, %v2568_v27  ;;  %v881_v32 = vpop.f32.mrb[29].mxu0  ;;  %v2006_v40 = vpack.c.bf16 %v955_v34, %v951_v28 }
 0x134   : > { %v2573_v63 = vpop.f32.mrb[30].mxu0  ;;  %2056 = vst [vmem:[%s2442_s8 + $0x70] sm:$0xff] %v1926_v10  }
 0x135   : > { %v1891_v35 = vpack.c.bf16 %v2573_v63, %v2568_v27  ;;  %v1302_v36 = vadd.f32 %v1301_v30, %v2573_v63  ;;  %v885_v39 = vpop.f32.mrb[31].mxu0  ;;  %2071 = vst [vmem:[%s2454_s11 + $0x70] sm:$0xff] %v2006_v40  }
 0x136   : > { %v1971_v14 = vpack.c.bf16 %v885_v39, %v881_v32 }
 0x137   : > { %2049 = vst [vmem:[%s2442_s8 + $0x38] sm:$0xff] %v1891_v35   ;;  %v1303_v41 = vadd.f32 %v1302_v36, %v2458_v51  ;;  %v2586_v31 = vpop.f32.mrb[28].mxu1 }
 0x138   : > { %2064 = vst [vmem:[%s2454_s11 + $0x38] sm:$0xff] %v1971_v14   ;;  %v961_v43 = vpop.f32.mrb[29].mxu1 }
 0x139   : > { %v1304_v42 = vadd.f32 %v1303_v41, %v2462_v54  ;;  %v2589_v2 = vpop.f32.mrb[30].mxu1 }
 0x13a   : > { %v1931_v49 = vpack.c.bf16 %v2589_v2, %v2586_v31  ;;  %v965_v56 = vpop.f32.mrb[31].mxu1 }
 0x13b   : > { %v1305_v48 = vadd.f32 %v1304_v42, %v2476_v5  ;;  %v2011_v58 = vpack.c.bf16 %v965_v56, %v961_v43 }
 0x13c   : > { %2057 = vst [vmem:[%s2442_s8 + $0x78] sm:$0xff] %v1931_v49  }
 0x13d   : > { %v1306_v57 = vadd.f32 %v1305_v48, %v2480_v8  ;;  %2072 = vst [vmem:[%s2454_s11 + $0x78] sm:$0xff] %v2011_v58  }
 0x13f   : > { %v1307_v59 = vadd.f32 %v1306_v57, %v2494_v22 }
 0x141   : > { %v1308_v61 = vadd.f32 %v1307_v59, %v2498_v15 }
 0x143   : > { %v1309_v62 = vadd.f32 %v1308_v61, %v2512_v33 }
 0x145   : > { %v1310_v1 = vadd.f32 %v1309_v62, %v2517_v37 }
 0x147   : > { %v1311_v6 = vadd.f32 %v1310_v1, %v2530_v44 }
 0x149   : > { %v1312_v9 = vadd.f32 %v1311_v6, %v2535_v50 }
 0x14b   : > { %v1313_v0 = vadd.f32 %v1312_v9, %v2548_v3 }
 0x14d   : > { %v1314_v17 = vadd.f32 %v1313_v0, %v2553_v11 }
 0x14f   : > { %v1315_v18 = vadd.f32 %v1314_v17, %v2566_v26 }
 0x151   : > { %v1316_v19 = vadd.f32 %v1315_v18, %v2571_v55 }
 0x153   : > { %v1317_v20 = vadd.f32 %v1316_v19, %v2586_v31 }
 0x155   : > { %v1318_v21 = vadd.f32 %v1317_v20, %v2589_v2 }
 0x157   : > { %v1319_v23 = vrot.slane %v1318_v21, 4 }
 0x159   : > { %v1320_v25 = vadd.f32 %v1319_v23, %v1318_v21 }
 0x15b   : > { %v1321_v28 = vrot.slane %v1320_v25, 2 }
 0x15d   : > { %v1322_v30 = vadd.f32 %v1321_v28, %v1320_v25 }
 0x15f   : > { %v1323_v32 = vrot.slane %v1322_v30, 1 }
 0x161   : > { %v2608_v10 = vadd.f32 %v1323_v32, %v1322_v30 }
 0x163   : > { %v2611_v34 = vmul.f32 0.00390625, %v2608_v10 }
 0x165   : > { %v1326_v35 = vsub.f32 %v2436_v45, %v2611_v34  ;;  %v1327_v36 = vsub.f32 %v2444_v47, %v2611_v34  ;;  %v1328_v39 = vsub.f32 %v2460_v53, %v2611_v34  ;;  %v1329_v41 = vsub.f32 %v2467_v60, %v2611_v34 }
 0x166   : > { %v1330_v42 = vsub.f32 %v2478_v7, %v2611_v34  ;;  %v1331_v49 = vsub.f32 %v2485_v16, %v2611_v34  ;;  %v1332_v47 = vsub.f32 %v2496_v24, %v2611_v34  ;;  %v1333_v58 = vsub.f32 %v2503_v29, %v2611_v34 }
 0x167   : > { %v1358_v40 = vmul.f32 %v1326_v35, %v1326_v35  ;;  %v1359_v14 = vmul.f32 %v1327_v36, %v1327_v36  ;;  %v1360_v43 = vmul.f32 %v1328_v39, %v1328_v39  ;;  %v1361_v45 = vmul.f32 %v1329_v41, %v1329_v41 }
 0x168   : > { %v1362_v57 = vmul.f32 %v1330_v42, %v1330_v42  ;;  %v1363_v59 = vmul.f32 %v1331_v49, %v1331_v49  ;;  %v1334_v7 = vsub.f32 %v2514_v13, %v2611_v34  ;;  %v1364_v61 = vmul.f32 %v1332_v47, %v1332_v47 }
 0x169   : > { %v1390_v48 = vadd.f32 %v1359_v14, %v1358_v40  ;;  %v1335_v16 = vsub.f32 %v2519_v38, %v2611_v34  ;;  %v1365_v1 = vmul.f32 %v1333_v58, %v1333_v58  ;;  %v1336_v24 = vsub.f32 %v2532_v46, %v2611_v34 }
 0x16a   : > { %v1366_v9 = vmul.f32 %v1334_v7, %v1334_v7  ;;  %v1337_v29 = vsub.f32 %v2537_v52, %v2611_v34  ;;  %v1338_v13 = vsub.f32 %v2550_v4, %v2611_v34  ;;  %v1339_v38 = vsub.f32 %v2555_v12, %v2611_v34 }
 0x16b   : > { %v1391_v56 = vadd.f32 %v1390_v48, %v1360_v43  ;;  %v1367_v17 = vmul.f32 %v1335_v16, %v1335_v16  ;;  %v1368_v19 = vmul.f32 %v1336_v24, %v1336_v24  ;;  %v1340_v46 = vsub.f32 %v2568_v27, %v2611_v34 }
 0x16c   : > { %v1369_v21 = vmul.f32 %v1337_v29, %v1337_v29  ;;  %v1370_v25 = vmul.f32 %v1338_v13, %v1338_v13  ;;  %v1341_v52 = vsub.f32 %v2573_v63, %v2611_v34  ;;  %v1371_v30 = vmul.f32 %v1339_v38, %v1339_v38 }
 0x16d   : > { %v1392_v53 = vadd.f32 %v1391_v56, %v1361_v45  ;;  %v1342_v4 = vsub.f32 %v2458_v51, %v2611_v34  ;;  %v1372_v35 = vmul.f32 %v1340_v46, %v1340_v46  ;;  %v1343_v12 = vsub.f32 %v2462_v54, %v2611_v34 }
 0x16e   : > { %v1373_v39 = vmul.f32 %v1341_v52, %v1341_v52  ;;  %v1344_v27 = vsub.f32 %v2476_v5, %v2611_v34  ;;  %v1345_v63 = vsub.f32 %v2480_v8, %v2611_v34  ;;  %v1346_v51 = vsub.f32 %v2494_v22, %v2611_v34 }
 0x16f   : > { %v1393_v60 = vadd.f32 %v1392_v53, %v1362_v57  ;;  %v1374_v14 = vmul.f32 %v1342_v4, %v1342_v4  ;;  %v1375_v42 = vmul.f32 %v1343_v12, %v1343_v12  ;;  %v1347_v54 = vsub.f32 %v2498_v15, %v2611_v34 }
 0x170   : > { %v1376_v48 = vmul.f32 %v1344_v27, %v1344_v27  ;;  %v1377_v45 = vmul.f32 %v1345_v63, %v1345_v63  ;;  %v1348_v5 = vsub.f32 %v2512_v33, %v2611_v34  ;;  %v1378_v47 = vmul.f32 %v1346_v51, %v1346_v51 }
 0x171   : > { %v1394_v62 = vadd.f32 %v1393_v60, %v1363_v59  ;;  %v1349_v8 = vsub.f32 %v2517_v37, %v2611_v34  ;;  %v1379_v53 = vmul.f32 %v1347_v54, %v1347_v54  ;;  %v1350_v22 = vsub.f32 %v2530_v44, %v2611_v34 }
 0x172   : > { %v1380_v59 = vmul.f32 %v1348_v5, %v1348_v5  ;;  %v1351_v15 = vsub.f32 %v2535_v50, %v2611_v34  ;;  %v1352_v33 = vsub.f32 %v2548_v3, %v2611_v34  ;;  %v1353_v37 = vsub.f32 %v2553_v11, %v2611_v34 }
 0x173   : > { %v1395_v6 = vadd.f32 %v1394_v62, %v1364_v61  ;;  %v1381_v7 = vmul.f32 %v1349_v8, %v1349_v8  ;;  %v1382_v62 = vmul.f32 %v1350_v22, %v1350_v22  ;;  %v1354_v44 = vsub.f32 %v2566_v26, %v2611_v34 }
 0x174   : > { %v1384_v24 = vmul.f32 %v1352_v33, %v1352_v33  ;;  %v1355_v50 = vsub.f32 %v2571_v55, %v2611_v34  ;;  %v1356_v3 = vsub.f32 %v2586_v31, %v2611_v34  ;;  %v1357_v11 = vsub.f32 %v2589_v2, %v2611_v34 }
 0x175   : > { %v1396_v0 = vadd.f32 %v1395_v6, %v1365_v1  ;;  %v1383_v1 = vmul.f32 %v1351_v15, %v1351_v15 }
 0x176   : > { %v1387_v13 = vmul.f32 %v1355_v50, %v1355_v50  ;;  %v1388_v26 = vmul.f32 %v1356_v3, %v1356_v3  ;;  %v1389_v38 = vmul.f32 %v1357_v11, %v1357_v11 }
 0x177   : > { %v1397_v18 = vadd.f32 %v1396_v0, %v1366_v9  ;;  %v1385_v0 = vmul.f32 %v1353_v37, %v1353_v37 }
 0x179   : > { %v1398_v20 = vadd.f32 %v1397_v18, %v1367_v17  ;;  %v1386_v17 = vmul.f32 %v1354_v44, %v1354_v44 }
 0x17b   : > { %v1399_v23 = vadd.f32 %v1398_v20, %v1368_v19 }
 0x17d   : > { %v1400_v28 = vadd.f32 %v1399_v23, %v1369_v21 }
 0x17f   : > { %v1401_v32 = vadd.f32 %v1400_v28, %v1370_v25 }
 0x181   : > { %v1402_v36 = vadd.f32 %v1401_v32, %v1371_v30 }
 0x183   : > { %v1403_v40 = vadd.f32 %v1402_v36, %v1372_v35 }
 0x185   : > { %v1404_v41 = vadd.f32 %v1403_v40, %v1373_v39 }
 0x187   : > { %v1405_v43 = vadd.f32 %v1404_v41, %v1374_v14 }
 0x189   : > { %v1406_v49 = vadd.f32 %v1405_v43, %v1375_v42 }
 0x18b   : > { %v1407_v56 = vadd.f32 %v1406_v49, %v1376_v48 }
 0x18d   : > { %v1408_v57 = vadd.f32 %v1407_v56, %v1377_v45 }
 0x18f   : > { %v1409_v58 = vadd.f32 %v1408_v57, %v1378_v47 }
 0x191   : > { %v1410_v60 = vadd.f32 %v1409_v58, %v1379_v53 }
 0x193   : > { %v1411_v61 = vadd.f32 %v1410_v60, %v1380_v59 }
 0x195   : > { %v1412_v16 = vadd.f32 %v1411_v61, %v1381_v7 }
 0x197   : > { %v1413_v6 = vadd.f32 %v1412_v16, %v1382_v62 }
 0x199   : > { %v1414_v9 = vadd.f32 %v1413_v6, %v1383_v1 }
 0x19b   : > { %v1415_v29 = vadd.f32 %v1414_v9, %v1384_v24 }
 0x19d   : > { %v1416_v18 = vadd.f32 %v1415_v29, %v1385_v0 }
 0x19f   : > { %v1417_v19 = vadd.f32 %v1416_v18, %v1386_v17 }
 0x1a1   : > { %v1418_v20 = vadd.f32 %v1417_v19, %v1387_v13 }
 0x1a3   : > { %v1419_v21 = vadd.f32 %v1418_v20, %v1388_v26 }
 0x1a5   : > { %v1420_v23 = vadd.f32 %v1419_v21, %v1389_v38 }
 0x1a7   : > { %v1421_v55 = vrot.slane %v1420_v23, 4 }
 0x1a9   : > { %v1422_v46 = vadd.f32 %v1421_v55, %v1420_v23 }
 0x1ab   : > { %v1423_v25 = vrot.slane %v1422_v46, 2 }
 0x1ad   : > { %v1424_v28 = vadd.f32 %v1423_v25, %v1422_v46 }
 0x1af   : > { %v1425_v31 = vrot.slane %v1424_v28, 1 }
 0x1b1   : > { %v1426_v2 = vadd.f32 %v1425_v31, %v1424_v28 }
 0x1b3   : > { %v1428_v34 = vsel %vm1427_vm0, %v2608_v10, %v1426_v2 }
 0x1b4   : > { %1429 = vst [vmem:[%s327_s15] sm:$0x3] %v1428_v34 }
 0x1b5 PF: > { %s18_s24 = sadd.s32 1, %s2128_s24  }
 0x1b6   : > { %p15_p5 = scmp.ge.s32.totalorder %s18_s24, 4  }
 0x1b8   :  { %17 = sbr.rel (!%p15_p5) target bundleno = 1 (0x1), region = 97 }

// kernel: decoder_forward.10
= control target key start
LH: loop header
LB: loop body
LE: loop exit
PB: predicated region body
PF: predicated region fallthrough
CT: control target
= control target key end

     0   :  { %s4398_s18 = smov 0   ;;  %s6044_s0 = inlined_call_operand.vmem [shape: bf16[2,16,16,128], index: 0, kind: input, shape index: {}]   ;;  %s6045_s1 = inlined_call_operand.vmem [shape: f32[1,128], index: 1, kind: input, shape index: {}]   ;;  %s6046_s2 = inlined_call_operand.vmem [shape: f32[1,128], index: 2, kind: input, shape index: {}]   ;;  %s6047_s3 = inlined_call_operand.vmem [shape: bf16[3,384,128], index: 3, kind: input, shape index: {}]   ;;  %s6048_s4 = inlined_call_operand.vmem [shape: bf16[512,128], index: 4, kind: output, shape index: {0}]   ;;  %s6049_s5 = inlined_call_operand.vmem [shape: f32[2,2,128], index: 5, kind: output, shape index: {1}]  }
   0x1 LB: > { %s4404_s19 = sadd.s32 4294967295, %s4364_s18   ;;  %p2937_p0 = scmp.ge.s32.totalorder %s4364_s18, 1  ;;  %s4364_s18 = sphi %s4398_s18, %s16_s18  }
   0x2   : > { %p190_p1 = scmp.lt.s32.totalorder %s4364_s18, 3 }
   0x4   : > { %p191_p2 = pnand %p2937_p0, %p190_p1 }
   0x6   : > { %194 = sbr.rel (%p191_p2) target bundleno = 678 (0x2a6), region = 36 }
   0xd   : > { %v4284_v0 = vld [vmem:[%s6047_s3 + $0x100] sm:$0xff]   ;;  %v4287_v3 = vld [vmem:[%s6047_s3 + $0x108] sm:$0xff]   ;;  %v4290_v6 = vld [vmem:[%s6047_s3 + $0x110] sm:$0xff]   ;;  %p222_p3 = scmp.lt.s32.totalorder %s4404_s19, 1  ;;  %v4366_v20 = vmov 0.0   ;;  %vm509_vm0 = vcmask 1040384  }
   0xe   : > { %v4414_v1 = vld [vmem:[%s6047_s3 + $0x140] sm:$0xff]   ;;  %3546 = vmatprep.subr.bf16.mxu0 %v4284_v0  ;;  %v4427_v4 = vld [vmem:[%s6047_s3 + $0x148] sm:$0xff]   ;;  %v4439_v7 = vld [vmem:[%s6047_s3 + $0x150] sm:$0xff]   ;;  %v4503_v21 = vrot.slane %v4366_v20, 7  ;;  %vm678_vm1 = vcmask 1046528   ;;  %vm798_vm2 = vcmask 1045504  }
   0xf   : > { %v4286_v2 = vld [vmem:[%s6047_s3 + $0xc0] sm:$0xff]   ;;  %4098 = vmatprep.subr.bf16.mxu1 %v4414_v1  ;;  %v4289_v5 = vld [vmem:[%s6047_s3 + $0xc8] sm:$0xff]   ;;  %v4292_v8 = vld [vmem:[%s6047_s3 + $0xd0] sm:$0xff]   ;;  %s4469_s25 = scalar_select %p222_p3, %s4404_s19, 1  ;;  %vm4367_vm10 = vmmov 1  }
  0x10   : > { %3547 = vmatpush3.bf16.msra.mxu0 %v4286_v2  ;;  %4106 = vmatpush3.bf16.msra.mxu1 %v4414_v1  ;;  %v4293_v9 = vld [vmem:[%s6047_s3 + $0x118] sm:$0xff]   ;;  %v4296_v12 = vld [vmem:[%s6047_s3 + $0x120] sm:$0xff]   ;;  %v4299_v15 = vld [vmem:[%s6047_s3 + $0x128] sm:$0xff]   ;;  %6097 = vst [vmem:[#allocation2_spill] sm:$0xff] %v4503_v21  ;;  %v4528_v31 = vsel %vm509_vm0, 0.0, %v4503_v21  ;;  %v4546_v43 = vsel %vm509_vm0, %v4503_v21, 0.0 }
  0x11   : > { %3548 = vmatprep.subr.bf16.mxu0 %v4287_v3  ;;  %4099 = vmatprep.subr.bf16.mxu1 %v4427_v4  ;;  %v4452_v10 = vld [vmem:[%s6047_s3 + $0x158] sm:$0xff]   ;;  %v4466_v13 = vld [vmem:[%s6047_s3 + $0x160] sm:$0xff]   ;;  %v4482_v16 = vld [vmem:[%s6047_s3 + $0x168] sm:$0xff]   ;;  %s3339_s7 = sshll.u32 %s4469_s25, 7  ;;  %6098 = vst [vmem:[#allocation3_spill] sm:$0xff] %v4528_v31  ;;  %v679_v48 = vrot.slane %v4528_v31, 1 }
  0x12   : > { %v4295_v11 = vld [vmem:[%s6047_s3 + $0xd8] sm:$0xff]   ;;  %v4298_v14 = vld [vmem:[%s6047_s3 + $0xe0] sm:$0xff]   ;;  %v4301_v17 = vld [vmem:[%s6047_s3 + $0xe8] sm:$0xff]   ;;  %s4501_s16 = scalar_lea.vmem %s6044_s0, %s3339_s7  ;;  %6099 = vst [vmem:[#allocation4_spill] sm:$0xff] %v4546_v43  ;;  %v680_v52 = vrot.slane %v4503_v21, 1  ;;  %v682_v60 = vrot.slane %v4546_v43, 1 }
  0x13   : > { %v4302_v18 = vld [vmem:[%s6047_s3 + $0x130] sm:$0xff]   ;;  %v4305_v23 = vld [vmem:[%s6047_s3 + $0x138] sm:$0xff]   ;;  %v3373_v24 = vld [vmem:[%s4501_s16] sm:$0xff]   ;;  %s2940_s23 = sshll.u32 %s4404_s19, 5  ;;  %s2942_s28 = sshll.u32 %s4469_s25, 1 }
  0x14   : > { %3549 = vmatpush3.bf16.msra.mxu0 %v4289_v5  ;;  %4107 = vmatpush3.bf16.msra.mxu1 %v4427_v4  ;;  %v4496_v19 = vld [vmem:[%s6047_s3 + $0x170] sm:$0xff]   ;;  %v4516_v25 = vld [vmem:[%s6045_s1] ss:$0 sm:$0xff]  ;;  %v4522_v26 = vld [vmem:[%s6047_s3 + $0x178] sm:$0xff]   ;;  %v3374_v27 = vunpack.c.l.bf16 %v3373_v24  ;;  %v3375_v28 = vunpack.c.h.bf16 %v3373_v24  ;;  %p228_p4 = scmp.lt.s32.totalorder %s2940_s23, 63  ;;  %s236_s30 = scalar_lea.vmem %s6049_s5, %s2942_s28 }
  0x15   : > { %3550 = vmatprep.subr.bf16.mxu0 %v4290_v6  ;;  %4100 = vmatprep.subr.bf16.mxu1 %v4439_v7  ;;  %v4304_v22 = vld [vmem:[%s6047_s3 + $0xf0] sm:$0xff]   ;;  %v3523_v29 = vld [vmem:[%s4501_s16 + $0x40] sm:$0xff]   ;;  %v3524_v30 = vld [vmem:[%s4501_s16 + $0x48] sm:$0xff]   ;;  %v4569_v6 = vsel %vm678_vm1, %v679_v48, %v680_v52 }
  0x16   : > { %v4533_v32 = vld [vmem:[%s6046_s2] ss:$0 sm:$0xff]  ;;  %v3406_v33 = vunpack.c.l.bf16 %v3523_v29  ;;  %v3407_v34 = vunpack.c.h.bf16 %v3523_v29  ;;  %v3410_v35 = vunpack.c.l.bf16 %v3524_v30  ;;  %v3411_v36 = vunpack.c.h.bf16 %v3524_v30  ;;  %v4307_v39 = vld [vmem:[%s6047_s3 + $0xf8] sm:$0xff]   ;;  %vm3017_vm7 = vmneg %vm509_vm0  ;;  %s6178_s23 = smov (!%p228_p4, %s2940_s23), 63 }
  0x17   : > { %v309_v37 = vmul.f32 %v3374_v27, %v4516_v25  ;;  %v310_v38 = vmul.f32 %v3375_v28, %v4516_v25  ;;  %v4308_v47 = vld [vmem:[%s6047_s3 + $0x40] sm:$0xff]   ;;  %v3525_v24 = vld [vmem:[%s4501_s16 + $0x50] sm:$0xff]   ;;  %vm4604_vm11 = vmpackc.low %vm4367_vm10, %vm3017_vm7  ;;  %s2941_s19 = sshll.u32 %s6178_s23, 2 }
  0x18   : > { %3551 = vmatpush3.bf16.msra.mxu0 %v4292_v8  ;;  %4108 = vmatpush3.bf16.msra.mxu1 %v4439_v7  ;;  %v325_v40 = vmul.f32 %v3406_v33, %v4516_v25  ;;  %v326_v41 = vmul.f32 %v3407_v34, %v4516_v25  ;;  %v327_v42 = vmul.f32 %v3410_v35, %v4516_v25  ;;  %s5785_s27 = scalar_lea.vmem %s6048_s4, %s2941_s19 }
  0x19   : > { %3552 = vmatprep.subr.bf16.mxu0 %v4293_v9  ;;  %4101 = vmatprep.subr.bf16.mxu1 %v4452_v10  ;;  %v348_v44 = vadd.f32 %v4533_v32, %v309_v37  ;;  %v349_v45 = vadd.f32 %v4533_v32, %v310_v38  ;;  %v328_v46 = vmul.f32 %v3411_v36, %v4516_v25 }
  0x1a   : > { %v364_v49 = vadd.f32 %v4533_v32, %v325_v40  ;;  %v365_v50 = vadd.f32 %v4533_v32, %v326_v41  ;;  %v366_v51 = vadd.f32 %v4533_v32, %v327_v42 }
  0x1b   : > { %vm380_vm3 = vcmp.ge.f32.partialorder %v348_v44, 0.0  ;;  %vm381_vm4 = vcmp.ge.f32.partialorder %v349_v45, 0.0  ;;  %v412_v53 = vmul.f32 0.01, %v348_v44  ;;  %v413_v54 = vmul.f32 0.01, %v349_v45 }
  0x1c   : > { %3553 = vmatpush3.bf16.msra.mxu0 %v4295_v11  ;;  %4109 = vmatpush3.bf16.msra.mxu1 %v4452_v10  ;;  %vm396_vm5 = vcmp.ge.f32.partialorder %v364_v49, 0.0  ;;  %vm397_vm6 = vcmp.ge.f32.partialorder %v365_v50, 0.0  ;;  %v428_v55 = vmul.f32 0.01, %v364_v49  ;;  %v429_v56 = vmul.f32 0.01, %v365_v50 }
  0x1d   : > { %3554 = vmatprep.subr.bf16.mxu0 %v4296_v12  ;;  %4102 = vmatprep.subr.bf16.mxu1 %v4466_v13  ;;  %v444_v57 = vsel %vm380_vm3, %v348_v44, %v412_v53  ;;  %v445_v58 = vsel %vm381_vm4, %v349_v45, %v413_v54  ;;  %v367_v59 = vadd.f32 %v4533_v32, %v328_v46  ;;  %v430_v5 = vmul.f32 0.01, %v366_v51 }
  0x1e   : > { %v512_v61 = vrot.slane %v444_v57, 7  ;;  %v513_v62 = vrot.slane %v445_v58, 7  ;;  %v460_v63 = vsel %vm396_vm5, %v364_v49, %v428_v55  ;;  %v461_v0 = vsel %vm397_vm6, %v365_v50, %v429_v56 }
  0x1f   : > { %v4564_v2 = vrot.slane %v460_v63, 7  ;;  %v537_v3 = vrot.slane %v461_v0, 7  ;;  %v431_v12 = vmul.f32 0.01, %v367_v59  ;;  %vm398_vm8 = vcmp.ge.f32.partialorder %v366_v51, 0.0 }
  0x20   : > { %3555 = vmatpush3.bf16.msra.mxu0 %v4298_v14  ;;  %4110 = vmatpush3.bf16.msra.mxu1 %v4466_v13  ;;  %v4572_v8 = vsel %vm509_vm0, %v512_v61, %v513_v62  ;;  %v4575_v9 = vsel %vm509_vm0, 0.0, %v512_v61  ;;  %v4578_v11 = vsel %vm509_vm0, %v513_v62, 0.0  ;;  %v3516_v14 = vld [vmem:[%s4501_s16 + $0x8] sm:$0xff]   ;;  %vm399_vm9 = vcmp.ge.f32.partialorder %v367_v59, 0.0 }
  0x21   : > { %3556 = vmatprep.subr.bf16.mxu0 %v4299_v15  ;;  %4103 = vmatprep.subr.bf16.mxu1 %v4482_v16  ;;  %6100 = vst [vmem:[#allocation5_spill] sm:$0xff] %v4564_v2  ;;  %6101 = vst [vmem:[#allocation6_spill] sm:$0xff] %v4572_v8  ;;  %v684_v15 = vrot.slane %v4575_v9, 1  ;;  %v4587_v20 = vsel %vm509_vm0, %v4564_v2, %v537_v3  ;;  %v4609_v36 = vpack.c.bf16 %v4572_v8, %v512_v61 }
  0x22   : > { %v845_v30 = vrot.slane %v4587_v20, 2  ;;  %v462_v37 = vsel %vm398_vm8, %v366_v51, %v430_v5  ;;  %v3378_v41 = vunpack.c.l.bf16 %v3516_v14  ;;  %v3379_v45 = vunpack.c.h.bf16 %v3516_v14  ;;  %v3526_v51 = vld [vmem:[%s4501_s16 + $0x58] sm:$0xff]  }
  0x23   : > { %v4612_v40 = vrot.slane %v462_v37, 7  ;;  %v3414_v46 = vunpack.c.l.bf16 %v3525_v24  ;;  %v3415_v50 = vunpack.c.h.bf16 %v3525_v24  ;;  %v3418_v0 = vunpack.c.l.bf16 %v3526_v51 }
  0x24   : > { %3557 = vmatpush3.bf16.msra.mxu0 %v4301_v17  ;;  %4111 = vmatpush3.bf16.msra.mxu1 %v4482_v16  ;;  %v685_v17 = vrot.slane %v4572_v8, 1  ;;  %v311_v49 = vmul.f32 %v3378_v41, %v4516_v25  ;;  %v312_v56 = vmul.f32 %v3379_v45, %v4516_v25  ;;  %v683_v45 = vsel %vm678_vm1, %v680_v52, %v682_v60 }
  0x25   : > { %3558 = vmatprep.subr.bf16.mxu0 %v4302_v18  ;;  %4104 = vmatprep.subr.bf16.mxu1 %v4496_v19  ;;  %v687_v18 = vrot.slane %v4578_v11, 1  ;;  %6104 = vst [vmem:[#allocation7_spill] sm:$0xff] %v4612_v40  ;;  %v4623_v48 = vsel %vm509_vm0, 0.0, %v4612_v40  ;;  %v329_v61 = vmul.f32 %v3414_v46, %v4516_v25  ;;  %v330_v63 = vmul.f32 %v3415_v50, %v4516_v25 }
  0x26   : > { %v686_v27 = vsel %vm678_vm1, %v684_v15, %v685_v17  ;;  %v849_v55 = vrot.slane %v4623_v48, 2  ;;  %v351_v62 = vadd.f32 %v4533_v32, %v312_v56  ;;  %v4689_v60 = vpack.c.bf16 %v4503_v21, %v4503_v21 }
  0x27   : > { %v688_v28 = vsel %vm678_vm1, %v685_v17, %v687_v18  ;;  %v4310_v17 = vld [vmem:[%s6047_s3 + $0x48] sm:$0xff]   ;;  %v368_v24 = vadd.f32 %v4533_v32, %v329_v61  ;;  %v4698_v61 = vpack.c.bf16 %v683_v45, %v4569_v6  ;;  %v4314_v6 = vld [vmem:[%s6047_s3 + $0x58] sm:$0xff]  }
  0x28   : > { %3559 = vmatpush3.bf16.msra.mxu0 %v4304_v22  ;;  %4112 = vmatpush3.bf16.msra.mxu1 %v4496_v19  ;;  %v4591_v22 = vsel %vm509_vm0, 0.0, %v4564_v2  ;;  %v4601_v33 = vpack.c.bf16 %v688_v28, %v686_v27  ;;  %vm383_vm13 = vcmp.ge.f32.partialorder %v351_v62, 0.0  ;;  %v415_v18 = vmul.f32 0.01, %v351_v62  ;;  %v4311_v27 = vld [vmem:[%s6047_s3 + $0x8] sm:$0xff]   ;;  %6107 = vst [vmem:[#allocation10_spill] sm:$0xff] %v4689_v60 }
  0x29   : > { %3560 = vmatprep.subr.bf16.mxu0 %v4305_v23  ;;  %4105 = vmatprep.subr.bf16.mxu1 %v4522_v26  ;;  %v4594_v23 = vsel %vm509_vm0, %v537_v3, 0.0  ;;  %v844_v29 = vrot.slane %v4591_v22, 2  ;;  %vm400_vm14 = vcmp.ge.f32.partialorder %v368_v24, 0.0  ;;  %6108 = vst [vmem:[#allocation11_spill] sm:$0xff] %v4698_v61  ;;  %v3521_v2 = vld [vmem:[%s4501_s16 + $0x30] sm:$0xff]  }
  0x2a   : > { %v847_v34 = vrot.slane %v4594_v23, 2  ;;  %1242 = vmatprep.mubr.bf16.mxu0 %v4601_v33  ;;  %v447_v37 = vsel %vm383_vm13, %v351_v62, %v415_v18 }
  0x2b   : > { %v846_v38 = vsel %vm798_vm2, %v844_v29, %v845_v30  ;;  %v369_v29 = vadd.f32 %v4533_v32, %v330_v63 }
  0x2c   : > { %3561 = vmatpush3.bf16.msra.mxu0 %v4307_v39  ;;  %4113 = vmatpush3.bf16.msra.mxu1 %v4522_v26  ;;  %v463_v39 = vsel %vm399_vm9, %v367_v59, %v431_v12  ;;  %v848_v42 = vsel %vm798_vm2, %v845_v30, %v847_v34  ;;  %v350_v59 = vadd.f32 %v4533_v32, %v311_v49  ;;  %v4309_v12 = vld [vmem:[%s6047_s3] sm:$0xff]  }
  0x2d   : > { %3954 = vmatprep.subr.bf16.mxu0 %v4414_v1  ;;  %3682 = vmatprep.subr.bf16.mxu1 %v4308_v47  ;;  %v540_v44 = vrot.slane %v463_v39, 7  ;;  %v4616_v47 = vpack.c.bf16 %v848_v42, %v846_v38  ;;  %v331_v30 = vmul.f32 %v3418_v0, %v4516_v25  ;;  %v516_v39 = vrot.slane %v447_v37, 7 }
  0x2e   : > { %vm382_vm12 = vcmp.ge.f32.partialorder %v350_v59, 0.0  ;;  %v414_v14 = vmul.f32 0.01, %v350_v59  ;;  %v433_v41 = vmul.f32 0.01, %v369_v29  ;;  %vm401_vm15 = vcmp.ge.f32.partialorder %v369_v29, 0.0 }
  0x2f   : > { %6105 = vst [vmem:[#allocation8_spill] sm:$0xff] %v4616_v47  ;;  %3020 = vmatmul.mubr.msk.bf16.vlgmr.msra.gmra.mrb[0].mxu0 %vm4604_vm11, %v4609_v36  ;;  %v4629_v53 = vsel %vm509_vm0, %v4612_v40, %v540_v44  ;;  %v4632_v54 = vsel %vm509_vm0, %v540_v44, 0.0  ;;  %3986 = vmatprep.mubr.bf16.mxu1 %v4616_v47  ;;  %v370_v42 = vadd.f32 %v4533_v32, %v331_v30  ;;  %v3517_v44 = vld [vmem:[%s4501_s16 + $0x10] sm:$0xff]   ;;  %v4684_v56 = vsel %vm509_vm0, %v516_v39, 0.0 }
  0x30   : > { %3955 = vmatpush3.bf16.msra.mxu0 %v4414_v1  ;;  %v850_v57 = vrot.slane %v4629_v53, 2  ;;  %v852_v58 = vrot.slane %v4632_v54, 2  ;;  %v3419_v1 = vunpack.c.h.bf16 %v3526_v51  ;;  %v446_v28 = vsel %vm382_vm12, %v350_v59, %v414_v14  ;;  %v4312_v51 = vld [vmem:[%s6047_s3 + $0x50] sm:$0xff]  }
  0x31   : > { %3956 = vmatprep.subr.bf16.mxu0 %v4427_v4  ;;  %v515_v38 = vrot.slane %v446_v28, 7  ;;  %v3382_v59 = vunpack.c.l.bf16 %v3517_v44  ;;  %v465_v62 = vsel %vm401_vm15, %v369_v29, %v433_v41  ;;  %vm402_vm3 = vcmp.ge.f32.partialorder %v370_v42, 0.0  ;;  %v4316_v41 = vld [vmem:[%s6047_s3 + $0x60] sm:$0xff]  }
  0x32   : > { %v851_v3 = vsel %vm798_vm2, %v849_v55, %v850_v57  ;;  %v853_v5 = vsel %vm798_vm2, %v850_v57, %v852_v58  ;;  %v332_v34 = vmul.f32 %v3419_v1, %v4516_v25  ;;  %v692_v58 = vrot.slane %v4684_v56, 1 }
  0x33   : > { %v4650_v15 = vpack.c.bf16 %v853_v5, %v851_v3  ;;  %v4673_v46 = vsel %vm509_vm0, 0.0, %v515_v38  ;;  %v4681_v55 = vsel %vm509_vm0, %v515_v38, %v516_v39  ;;  %v543_v5 = vrot.slane %v465_v62, 7  ;;  %v3528_v39 = vld [vmem:[%s4501_s16 + $0x68] sm:$0xff]  }
  0x34   : > { %3957 = vmatpush3.bf16.msra.mxu0 %v4427_v4  ;;  %v432_v4 = vmul.f32 0.01, %v368_v24  ;;  %v371_v50 = vadd.f32 %v4533_v32, %v332_v34  ;;  %v689_v52 = vrot.slane %v4673_v46, 1  ;;  %v690_v57 = vrot.slane %v4681_v55, 1 }
  0x35   : > { %6106 = vst [vmem:[#allocation9_spill] sm:$0xff] %v4650_v15  ;;  %3958 = vmatprep.subr.bf16.mxu0 %v4439_v7  ;;  %3987 = vmatmul.mubr.bf16.vlgmr.msra.gmra.mrb[0].mxu1 %v4650_v15  ;;  %v4704_v0 = vpack.c.bf16 %v4681_v55, %v515_v38  ;;  %v3383_v30 = vunpack.c.h.bf16 %v3517_v44 }
  0x36   : > { %3683 = vmatpush3.bf16.msra.mxu1 %v4309_v12  ;;  %v464_v49 = vsel %vm400_vm14, %v368_v24, %v432_v4  ;;  %v691_v1 = vsel %vm678_vm1, %v689_v52, %v690_v57  ;;  %v693_v3 = vsel %vm678_vm1, %v690_v57, %v692_v58  ;;  %vm403_vm4 = vcmp.ge.f32.partialorder %v371_v50, 0.0  ;;  %v4315_v24 = vld [vmem:[%s6047_s3 + $0x18] sm:$0xff]   ;;  %v4317_v58 = vld [vmem:[%s6047_s3 + $0x20] sm:$0xff]  }
  0x37   : > { %3684 = vmatprep.subr.bf16.mxu1 %v4310_v17  ;;  %v4701_v63 = vrot.slane %v464_v49, 7  ;;  %v4712_v12 = vpack.c.bf16 %v693_v3, %v691_v1  ;;  %v434_v17 = vmul.f32 0.01, %v370_v42  ;;  %v435_v18 = vmul.f32 0.01, %v371_v50 }
  0x38   : > { %3959 = vmatpush3.bf16.msra.mxu0 %v4439_v7  ;;  %v4313_v7 = vld [vmem:[%s6047_s3 + $0x10] sm:$0xff]   ;;  %v313_v49 = vmul.f32 %v3382_v59, %v4516_v25 }
  0x39   : > { %3960 = vmatprep.subr.bf16.mxu0 %v4452_v10  ;;  %6109 = vst [vmem:[#allocation12_spill] sm:$0xff] %v4701_v63  ;;  %6110 = vst [vmem:[#allocation13_spill] sm:$0xff] %v4712_v12  ;;  %v4716_v14 = vsel %vm509_vm0, 0.0, %v4701_v63  ;;  %v4725_v28 = vsel %vm509_vm0, %v4701_v63, %v543_v5  ;;  %1250 = vmatprep.mubr.bf16.mxu0 %v4712_v12  ;;  %v466_v38 = vsel %vm402_vm3, %v370_v42, %v434_v17  ;;  %v4318_v17 = vld [vmem:[%s6047_s3 + $0x68] sm:$0xff]  }
  0x3a   : > { %3685 = vmatpush3.bf16.msra.mxu1 %v4311_v27  ;;  %v3527_v27 = vld [vmem:[%s4501_s16 + $0x60] sm:$0xff]   ;;  %v854_v29 = vrot.slane %v4716_v14, 2  ;;  %v855_v34 = vrot.slane %v4725_v28, 2  ;;  %v467_v4 = vsel %vm403_vm4, %v371_v50, %v435_v18  ;;  %3024 = vmatmul.mubr.msk.bf16.gmra.mrb[4].mxu0 %vm4604_vm11, %v4704_v0  ;;  %v4743_v44 = vrot.slane %v466_v38, 7  ;;  %v4319_v38 = vld [vmem:[%s6047_s3 + $0x28] sm:$0xff]  }
  0x3b   : > { %3686 = vmatprep.subr.bf16.mxu1 %v4312_v51  ;;  %v546_v45 = vrot.slane %v467_v4, 7  ;;  %v314_v42 = vmul.f32 %v3383_v30, %v4516_v25  ;;  %v3422_v52 = vunpack.c.l.bf16 %v3527_v27  ;;  %v3423_v57 = vunpack.c.h.bf16 %v3527_v27  ;;  %v4784_v4 = vld [vmem:[%s4501_s16 + $0x18] sm:$0xff]  }
  0x3c   : > { %3961 = vmatpush3.bf16.msra.mxu0 %v4452_v10  ;;  %v4728_v10 = vsel %vm509_vm0, %v543_v5, 0.0  ;;  %6111 = vst [vmem:[#allocation14_spill] sm:$0xff] %v4743_v44  ;;  %v856_v50 = vsel %vm798_vm2, %v854_v29, %v855_v34  ;;  %v4761_v59 = vsel %vm509_vm0, 0.0, %v4743_v44  ;;  %v3426_v30 = vunpack.c.l.bf16 %v3528_v39 }
  0x3d   : > { %3962 = vmatprep.subr.bf16.mxu0 %v4466_v13  ;;  %v857_v37 = vrot.slane %v4728_v10, 2  ;;  %v4757_v62 = vsel %vm509_vm0, %v4743_v44, %v546_v45  ;;  %v4764_v1 = vsel %vm509_vm0, %v546_v45, 0.0  ;;  %v859_v3 = vrot.slane %v4761_v59, 2 }
  0x3e   : > { %3687 = vmatpush3.bf16.msra.mxu1 %v4313_v7  ;;  %v860_v5 = vrot.slane %v4757_v62, 2  ;;  %v353_v18 = vadd.f32 %v4533_v32, %v314_v42  ;;  %v333_v27 = vmul.f32 %v3422_v52, %v4516_v25  ;;  %v334_v29 = vmul.f32 %v3423_v57, %v4516_v25  ;;  %v4320_v42 = vld [vmem:[%s6047_s3 + $0x70] sm:$0xff]  }
  0x3f   : > { %3688 = vmatprep.subr.bf16.mxu1 %v4314_v6  ;;  %v858_v51 = vsel %vm798_vm2, %v855_v34, %v857_v37  ;;  %v352_v6 = vadd.f32 %v4533_v32, %v313_v49  ;;  %v3427_v52 = vunpack.c.h.bf16 %v3528_v39  ;;  %v335_v57 = vmul.f32 %v3426_v30, %v4516_v25 }
  0x40   : > { %3963 = vmatpush3.bf16.msra.mxu0 %v4466_v13  ;;  %v4753_v7 = vpack.c.bf16 %v858_v51, %v856_v50  ;;  %v862_v13 = vrot.slane %v4764_v1, 2  ;;  %v861_v34 = vsel %vm798_vm2, %v859_v3, %v860_v5  ;;  %vm385_vm6 = vcmp.ge.f32.partialorder %v353_v18, 0.0 }
  0x41   : > { %3964 = vmatprep.subr.bf16.mxu0 %v4482_v16  ;;  %vm384_vm5 = vcmp.ge.f32.partialorder %v352_v6, 0.0  ;;  %v416_v37 = vmul.f32 0.01, %v352_v6  ;;  %v417_v49 = vmul.f32 0.01, %v353_v18  ;;  %v373_v51 = vadd.f32 %v4533_v32, %v334_v29 }
  0x42   : > { %6112 = vst [vmem:[#allocation15_spill] sm:$0xff] %v4753_v7  ;;  %3689 = vmatpush3.bf16.msra.mxu1 %v4315_v24  ;;  %3990 = vmatprep.mubr.bf16.mxu1 %v4753_v7  ;;  %v863_v24 = vsel %vm798_vm2, %v860_v5, %v862_v13  ;;  %v3386_v29 = vunpack.c.l.bf16 %v4784_v4  ;;  %v3530_v7 = vld [vmem:[%s4501_s16 + $0x78] sm:$0xff]  }
  0x43   : > { %3690 = vmatprep.subr.bf16.mxu1 %v4316_v41  ;;  %v4787_v45 = vpack.c.bf16 %v863_v24, %v861_v34  ;;  %v372_v41 = vadd.f32 %v4533_v32, %v333_v27  ;;  %v448_v50 = vsel %vm384_vm5, %v352_v6, %v416_v37  ;;  %vm405_vm8 = vcmp.ge.f32.partialorder %v373_v51, 0.0  ;;  %v4321_v6 = vld [vmem:[%s6047_s3 + $0x30] sm:$0xff]  }
  0x44   : > { %3965 = vmatpush3.bf16.msra.mxu0 %v4482_v16  ;;  %v449_v16 = vsel %vm385_vm6, %v353_v18, %v417_v49  ;;  %v518_v3 = vrot.slane %v448_v50, 7  ;;  %v437_v27 = vmul.f32 0.01, %v373_v51  ;;  %v336_v34 = vmul.f32 %v3427_v52, %v4516_v25 }
  0x45   : > { %6113 = vst [vmem:[#allocation16_spill] sm:$0xff] %v4787_v45  ;;  %3966 = vmatprep.subr.bf16.mxu0 %v4496_v19  ;;  %3991 = vmatmul.mubr.bf16.gmra.mrb[4].mxu1 %v4787_v45  ;;  %vm404_vm7 = vcmp.ge.f32.partialorder %v372_v41, 0.0  ;;  %v436_v5 = vmul.f32 0.01, %v372_v41  ;;  %v519_v13 = vrot.slane %v449_v16, 7  ;;  %v374_v18 = vadd.f32 %v4533_v32, %v335_v57 }
  0x46   : > { %3691 = vmatpush3.bf16.msra.mxu1 %v4317_v58  ;;  %v4803_v39 = vsel %vm509_vm0, 0.0, %v518_v3  ;;  %v469_v37 = vsel %vm405_vm8, %v373_v51, %v437_v27  ;;  %v375_v16 = vadd.f32 %v4533_v32, %v336_v34  ;;  %v315_v45 = vmul.f32 %v3386_v29, %v4516_v25  ;;  %v4331_v29 = vld [vmem:[%s6047_s3 + $0x1c0] sm:$0xff]  }
  0x47   : > { %3692 = vmatprep.subr.bf16.mxu1 %v4318_v17  ;;  %6114 = vst [vmem:[#allocation17_spill] sm:$0xff] %v4803_v39  ;;  %v468_v58 = vsel %vm404_vm7, %v372_v41, %v436_v5  ;;  %v4322_v17 = vld [vmem:[%s6047_s3 + $0x78] sm:$0xff]   ;;  %v4812_v30 = vsel %vm509_vm0, %v518_v3, %v519_v13  ;;  %v694_v24 = vrot.slane %v4803_v39, 1  ;;  %v549_v52 = vrot.slane %v469_v37, 7  ;;  %v4851_v37 = vld [vmem:[%s6047_s3 + $0x80] sm:$0xff]  }
  0x48   : > { %3967 = vmatpush3.bf16.msra.mxu0 %v4496_v19  ;;  %6115 = vst [vmem:[#allocation18_spill] sm:$0xff] %v4812_v30  ;;  %v4815_v19 = vsel %vm509_vm0, %v519_v13, 0.0  ;;  %v695_v49 = vrot.slane %v4812_v30, 1  ;;  %v4820_v50 = vrot.slane %v468_v58, 7  ;;  %v4823_v57 = vpack.c.bf16 %v4812_v30, %v518_v3  ;;  %v3529_v13 = vld [vmem:[%s4501_s16 + $0x70] sm:$0xff]   ;;  %v4323_v3 = vld [vmem:[%s6047_s3 + $0x38] sm:$0xff]  }
  0x49   : > { %3968 = vmatprep.subr.bf16.mxu0 %v4522_v26  ;;  %6116 = vst [vmem:[#allocation19_spill] sm:$0xff] %v4815_v19  ;;  %v697_v41 = vrot.slane %v4815_v19, 1  ;;  %vm406_vm9 = vcmp.ge.f32.partialorder %v374_v18, 0.0  ;;  %v438_v5 = vmul.f32 0.01, %v374_v18  ;;  %vm407_vm10 = vcmp.ge.f32.partialorder %v375_v16, 0.0 }
  0x4a   : > { %3693 = vmatpush3.bf16.msra.mxu1 %v4319_v38  ;;  %6117 = vst [vmem:[#allocation20_spill] sm:$0xff] %v4823_v57  ;;  %v696_v38 = vsel %vm678_vm1, %v694_v24, %v695_v49  ;;  %v4832_v27 = vsel %vm509_vm0, %v4820_v50, %v549_v52  ;;  %v3435_v31 = vunpack.c.h.bf16 %v3530_v7 }
  0x4b   : > { %3694 = vmatprep.subr.bf16.mxu1 %v4320_v42  ;;  %v698_v51 = vsel %vm678_vm1, %v695_v49, %v697_v41  ;;  %v4836_v42 = vsel %vm509_vm0, 0.0, %v4820_v50  ;;  %v865_v24 = vrot.slane %v4832_v27, 2  ;;  %v439_v41 = vmul.f32 0.01, %v375_v16 }
  0x4c   : > { %3969 = vmatpush3.bf16.msra.mxu0 %v4522_v26  ;;  %v4841_v34 = vpack.c.bf16 %v698_v51, %v696_v38  ;;  %v4844_v26 = vsel %vm509_vm0, %v549_v52, 0.0  ;;  %v864_v58 = vrot.slane %v4836_v42, 2  ;;  %v470_v38 = vsel %vm406_vm9, %v374_v18, %v438_v5 }
  0x4d   : > { %v867_v49 = vrot.slane %v4844_v26, 2  ;;  %v4857_v51 = vrot.slane %v470_v38, 7  ;;  %v471_v47 = vsel %vm407_vm10, %v375_v16, %v439_v41  ;;  %v3430_v18 = vunpack.c.l.bf16 %v3529_v13  ;;  %3818 = vmatprep.subr.bf16.mxu0 %v4331_v29 }
  0x4e   : > { %3695 = vmatpush3.bf16.msra.mxu1 %v4321_v6  ;;  %1258 = vmatprep.mubr.bf16.mxu0 %v4841_v34  ;;  %v866_v52 = vsel %vm798_vm2, %v864_v58, %v865_v24  ;;  %v3387_v6 = vunpack.c.h.bf16 %v4784_v4  ;;  %v552_v43 = vrot.slane %v471_v47, 7  ;;  %v354_v16 = vadd.f32 %v4533_v32, %v315_v45 }
  0x4f   : > { %3696 = vmatprep.subr.bf16.mxu1 %v4322_v17  ;;  %v868_v15 = vsel %vm798_vm2, %v865_v24, %v867_v49  ;;  %3028 = vmatmul.mubr.msk.bf16.gmra.mrb[8].mxu0 %vm4604_vm11, %v4823_v57  ;;  %v3431_v17 = vunpack.c.h.bf16 %v3529_v13  ;;  %v4870_v58 = vsel %vm509_vm0, 0.0, %v4857_v51  ;;  %v337_v13 = vmul.f32 %v3430_v18, %v4516_v25 }
  0x50   : > { %v4866_v5 = vpack.c.bf16 %v868_v15, %v866_v52  ;;  %v316_v4 = vmul.f32 %v3387_v6, %v4516_v25  ;;  %v869_v24 = vrot.slane %v4870_v58, 2  ;;  %v4884_v47 = vsel %vm509_vm0, %v4857_v51, %v552_v43 }
  0x51   : > { %v338_v15 = vmul.f32 %v3431_v17, %v4516_v25  ;;  %v3434_v41 = vunpack.c.l.bf16 %v3530_v7  ;;  %v870_v45 = vrot.slane %v4884_v47, 2  ;;  %vm386_vm12 = vcmp.ge.f32.partialorder %v354_v16, 0.0 }
  0x52   : > { %6118 = vst [vmem:[#allocation21_spill] sm:$0xff] %v4866_v5  ;;  %3697 = vmatpush3.bf16.msra.mxu1 %v4323_v3  ;;  %3994 = vmatprep.mubr.bf16.mxu1 %v4866_v5  ;;  %v4887_v3 = vsel %vm509_vm0, %v552_v43, 0.0  ;;  %v355_v49 = vadd.f32 %v4533_v32, %v316_v4  ;;  %v418_v52 = vmul.f32 0.01, %v354_v16  ;;  %v376_v18 = vadd.f32 %v4533_v32, %v337_v13  ;;  %v3519_v5 = vld [vmem:[%s4501_s16 + $0x20] sm:$0xff]  }
  0x53   : > { %4002 = vmatprep.subr.bf16.mxu1 %v4851_v37  ;;  %v872_v38 = vrot.slane %v4887_v3, 2  ;;  %v377_v17 = vadd.f32 %v4533_v32, %v338_v15  ;;  %v871_v43 = vsel %vm798_vm2, %v869_v24, %v870_v45  ;;  %v339_v24 = vmul.f32 %v3434_v41, %v4516_v25 }
  0x54   : > { %vm387_vm13 = vcmp.ge.f32.partialorder %v355_v49, 0.0  ;;  %v419_v6 = vmul.f32 0.01, %v355_v49  ;;  %v450_v4 = vsel %vm386_vm12, %v354_v16, %v418_v52  ;;  %vm408_vm14 = vcmp.ge.f32.partialorder %v376_v18, 0.0 }
  0x55   : > { %v873_v21 = vsel %vm798_vm2, %v870_v45, %v872_v38  ;;  %v521_v30 = vrot.slane %v450_v4, 7  ;;  %vm409_vm15 = vcmp.ge.f32.partialorder %v377_v17, 0.0  ;;  %v440_v44 = vmul.f32 0.01, %v376_v18 }
  0x56   : > { %v4897_v29 = vpack.c.bf16 %v873_v21, %v871_v43  ;;  %v451_v19 = vsel %vm387_vm13, %v355_v49, %v419_v6  ;;  %v441_v63 = vmul.f32 0.01, %v377_v17  ;;  %v340_v15 = vmul.f32 %v3435_v31, %v4516_v25 }
  0x57   : > { %v522_v39 = vrot.slane %v451_v19, 7  ;;  %v4901_v13 = vsel %vm509_vm0, 0.0, %v521_v30  ;;  %v3390_v16 = vunpack.c.l.bf16 %v3519_v5  ;;  %v472_v49 = vsel %vm408_vm14, %v376_v18, %v440_v44 }
  0x58   : > { %6119 = vst [vmem:[#allocation22_spill] sm:$0xff] %v4897_v29  ;;  %3995 = vmatmul.mubr.bf16.gmra.mrb[8].mxu1 %v4897_v29  ;;  %6120 = vst [vmem:[#allocation23_spill] sm:$0xff] %v4901_v13  ;;  %v699_v19 = vrot.slane %v4901_v13, 1  ;;  %v473_v52 = vsel %vm409_vm15, %v377_v17, %v441_v63  ;;  %v4914_v6 = vrot.slane %v472_v49, 7  ;;  %v378_v43 = vadd.f32 %v4533_v32, %v339_v24  ;;  %v3520_v63 = vld [vmem:[%s4501_s16 + $0x28] sm:$0xff]  }
  0x59   : > { %v4906_v21 = vsel %vm509_vm0, %v521_v30, %v522_v39  ;;  %v4909_v7 = vsel %vm509_vm0, %v522_v39, 0.0  ;;  %v555_v41 = vrot.slane %v473_v52, 7  ;;  %v379_v4 = vadd.f32 %v4533_v32, %v340_v15 }
  0x5a   : > { %6121 = vst [vmem:[#allocation24_spill] sm:$0xff] %v4906_v21  ;;  %6122 = vst [vmem:[#allocation25_spill] sm:$0xff] %v4909_v7  ;;  %v700_v45 = vrot.slane %v4906_v21, 1  ;;  %v702_v38 = vrot.slane %v4909_v7, 1  ;;  %v4917_v31 = vpack.c.bf16 %v4906_v21, %v521_v30  ;;  %v4925_v44 = vsel %vm509_vm0, 0.0, %v4914_v6 }
  0x5b   : > { %v3391_v18 = vunpack.c.h.bf16 %v3519_v5  ;;  %v4932_v30 = vsel %vm509_vm0, %v4914_v6, %v555_v41  ;;  %v4935_v24 = vsel %vm509_vm0, %v555_v41, 0.0  ;;  %v874_v15 = vrot.slane %v4925_v44, 2 }
  0x5c   : > { %6123 = vst [vmem:[#allocation26_spill] sm:$0xff] %v4917_v31  ;;  %v701_v39 = vsel %vm678_vm1, %v699_v19, %v700_v45  ;;  %v703_v29 = vsel %vm678_vm1, %v700_v45, %v702_v38  ;;  %v875_v19 = vrot.slane %v4932_v30, 2  ;;  %v877_v49 = vrot.slane %v4935_v24, 2 }
  0x5d   : > { %v4928_v17 = vpack.c.bf16 %v703_v29, %v701_v39  ;;  %vm410_vm3 = vcmp.ge.f32.partialorder %v378_v43, 0.0  ;;  %vm411_vm4 = vcmp.ge.f32.partialorder %v379_v4, 0.0  ;;  %v442_v5 = vmul.f32 0.01, %v378_v43 }
  0x5e   : > { %v443_v29 = vmul.f32 0.01, %v379_v4  ;;  %v317_v45 = vmul.f32 %v3390_v16, %v4516_v25  ;;  %v318_v38 = vmul.f32 %v3391_v18, %v4516_v25  ;;  %v876_v52 = vsel %vm798_vm2, %v874_v15, %v875_v19 }
  0x5f   : > { %6124 = vst [vmem:[#allocation27_spill] sm:$0xff] %v4928_v17  ;;  %1266 = vmatprep.mubr.bf16.mxu0 %v4928_v17  ;;  %v878_v41 = vsel %vm798_vm2, %v875_v19, %v877_v49  ;;  %v3394_v39 = vunpack.c.l.bf16 %v3520_v63  ;;  %v3395_v40 = vunpack.c.h.bf16 %v3520_v63  ;;  %v474_v21 = vsel %vm410_vm3, %v378_v43, %v442_v5 }
  0x60   : > { %3032 = vmatmul.mubr.msk.bf16.gmra.mrb[12].mxu0 %vm4604_vm11, %v4917_v31  ;;  %v4949_v7 = vpack.c.bf16 %v878_v41, %v876_v52  ;;  %v475_v13 = vsel %vm411_vm4, %v379_v4, %v443_v29  ;;  %v356_v17 = vadd.f32 %v4533_v32, %v317_v45  ;;  %v4952_v16 = vrot.slane %v474_v21, 7 }
  0x61   : > { %v558_v18 = vrot.slane %v475_v13, 7  ;;  %v357_v15 = vadd.f32 %v4533_v32, %v318_v38  ;;  %v319_v19 = vmul.f32 %v3394_v39, %v4516_v25  ;;  %v320_v63 = vmul.f32 %v3395_v40, %v4516_v25 }
  0x62   : > { %6125 = vst [vmem:[#allocation28_spill] sm:$0xff] %v4949_v7  ;;  %6126 = vst [vmem:[#allocation29_spill] sm:$0xff] %v4952_v16  ;;  %3998 = vmatprep.mubr.bf16.mxu1 %v4949_v7  ;;  %vm388_vm5 = vcmp.ge.f32.partialorder %v356_v17, 0.0  ;;  %v420_v49 = vmul.f32 0.01, %v356_v17  ;;  %v3398_v31 = vunpack.c.l.bf16 %v3521_v2  ;;  %v4964_v21 = vsel %vm509_vm0, 0.0, %v4952_v16 }
  0x63   : > { %v4960_v43 = vsel %vm509_vm0, %v4952_v16, %v558_v18  ;;  %v4967_v13 = vsel %vm509_vm0, %v558_v18, 0.0  ;;  %vm389_vm6 = vcmp.ge.f32.partialorder %v357_v15, 0.0  ;;  %v879_v4 = vrot.slane %v4964_v21, 2 }
  0x64   : > { %6127 = vst [vmem:[#allocation30_spill] sm:$0xff] %v4967_v13  ;;  %v880_v5 = vrot.slane %v4960_v43, 2  ;;  %v882_v29 = vrot.slane %v4967_v13, 2  ;;  %v421_v40 = vmul.f32 0.01, %v357_v15  ;;  %v452_v45 = vsel %vm388_vm5, %v356_v17, %v420_v49 }
  0x65   : > { %v358_v38 = vadd.f32 %v4533_v32, %v319_v19  ;;  %v359_v52 = vadd.f32 %v4533_v32, %v320_v63  ;;  %v3399_v41 = vunpack.c.h.bf16 %v3521_v2  ;;  %v524_v57 = vrot.slane %v452_v45, 7  ;;  %v4356_v49 = vld [vmem:[%s6045_s1] ss:$0 sm:$0xff] }
  0x66   : > { %v881_v39 = vsel %vm798_vm2, %v879_v4, %v880_v5  ;;  %v883_v7 = vsel %vm798_vm2, %v880_v5, %v882_v29  ;;  %v453_v18 = vsel %vm389_vm6, %v357_v15, %v421_v40  ;;  %v321_v32 = vmul.f32 %v3398_v31, %v4516_v25  ;;  %v3522_v4 = vld [vmem:[%s4501_s16 + $0x38] sm:$0xff]   ;;  %v4357_v45 = vld [vmem:[%s6046_s2] ss:$0 sm:$0xff] }
  0x67   : > { %v4976_v8 = vpack.c.bf16 %v883_v7, %v881_v39  ;;  %v525_v16 = vrot.slane %v453_v18, 7  ;;  %vm390_vm7 = vcmp.ge.f32.partialorder %v358_v38, 0.0  ;;  %vm391_vm8 = vcmp.ge.f32.partialorder %v359_v52, 0.0 }
  0x68   : > { %v4979_v13 = vsel %vm509_vm0, 0.0, %v524_v57  ;;  %v422_v17 = vmul.f32 0.01, %v358_v38  ;;  %v423_v19 = vmul.f32 0.01, %v359_v52  ;;  %v322_v63 = vmul.f32 %v4356_v49, %v3399_v41 }
  0x69   : > { %6128 = vst [vmem:[#allocation31_spill] sm:$0xff] %v4976_v8  ;;  %6129 = vst [vmem:[#allocation32_spill] sm:$0xff] %v4979_v13  ;;  %3999 = vmatmul.mubr.bf16.gmra.mrb[12].mxu1 %v4976_v8  ;;  %v4984_v2 = vsel %vm509_vm0, %v524_v57, %v525_v16  ;;  %v4987_v15 = vsel %vm509_vm0, %v525_v16, 0.0  ;;  %v704_v7 = vrot.slane %v4979_v13, 1  ;;  %v360_v41 = vadd.f32 %v4357_v45, %v321_v32 }
  0x6a   : > { %6130 = vst [vmem:[#allocation33_spill] sm:$0xff] %v4987_v15  ;;  %v705_v5 = vrot.slane %v4984_v2, 1  ;;  %v707_v25 = vrot.slane %v4987_v15, 1  ;;  %1708 = vmatprep.mubr.bf16.mxu1 %v4698_v61  ;;  %v4998_v31 = vpack.c.bf16 %v4984_v2, %v524_v57  ;;  %v454_v16 = vsel %vm390_vm7, %v358_v38, %v422_v17 }
  0x6b   : > { %v455_v29 = vsel %vm391_vm8, %v359_v52, %v423_v19  ;;  %v527_v40 = vrot.slane %v454_v16, 7  ;;  %v361_v39 = vadd.f32 %v4357_v45, %v322_v63  ;;  %v3402_v61 = vunpack.c.l.bf16 %v3522_v4  ;;  %v4325_v63 = vld [vmem:[%s6047_s3 + $0x88] sm:$0xff]  }
  0x6c   : > { %v706_v18 = vsel %vm678_vm1, %v704_v7, %v705_v5  ;;  %v708_v8 = vsel %vm678_vm1, %v705_v5, %v707_v25  ;;  %v528_v15 = vrot.slane %v455_v29, 7  ;;  %vm392_vm9 = vcmp.ge.f32.partialorder %v360_v41, 0.0 }
  0x6d   : > { %v5007_v13 = vpack.c.bf16 %v708_v8, %v706_v18  ;;  %v5010_v57 = vsel %vm509_vm0, 0.0, %v527_v40  ;;  %vm393_vm10 = vcmp.ge.f32.partialorder %v361_v39, 0.0  ;;  %v424_v19 = vmul.f32 0.01, %v360_v41 }
  0x6e   : > { %v5013_v38 = vsel %vm509_vm0, %v527_v40, %v528_v15  ;;  %v5016_v52 = vsel %vm509_vm0, %v528_v15, 0.0  ;;  %v709_v17 = vrot.slane %v5010_v57, 1  ;;  %v425_v7 = vmul.f32 0.01, %v361_v39 }
  0x6f   : > { %6131 = vst [vmem:[#allocation34_spill] sm:$0xff] %v5007_v13  ;;  %6132 = vst [vmem:[#allocation35_spill] sm:$0xff] %v5016_v52  ;;  %1274 = vmatprep.mubr.bf16.mxu0 %v5007_v13  ;;  %v710_v32 = vrot.slane %v5013_v38, 1  ;;  %v712_v8 = vrot.slane %v5016_v52, 1  ;;  %v456_v15 = vsel %vm392_vm9, %v360_v41, %v424_v19  ;;  %v3403_v25 = vunpack.c.h.bf16 %v3522_v4 }
  0x70   : > { %3036 = vmatmul.mubr.msk.bf16.gmra.mrb[16].mxu0 %vm4604_vm11, %v4998_v31  ;;  %v323_v16 = vmul.f32 %v4356_v49, %v3402_v61  ;;  %v457_v13 = vsel %vm393_vm10, %v361_v39, %v425_v7  ;;  %v530_v52 = vrot.slane %v456_v15, 7  ;;  %v5040_v19 = vpack.c.bf16 %v5013_v38, %v527_v40  ;;  %v4327_v7 = vld [vmem:[%s6047_s3 + $0x98] sm:$0xff]  }
  0x71   : > { %3108 = vmatmul.mubr.msk.bf16.vlgmr.msra.gmra.mrb[16].mxu1 %vm4604_vm11, %v4689_v60  ;;  %v711_v29 = vsel %vm678_vm1, %v709_v17, %v710_v32  ;;  %v713_v18 = vsel %vm678_vm1, %v710_v32, %v712_v8  ;;  %v531_v41 = vrot.slane %v457_v13, 7  ;;  %v324_v4 = vmul.f32 %v4356_v49, %v3403_v25 }
  0x72   : > { %4003 = vmatpush3.bf16.msra.mxu1 %v4851_v37  ;;  %v5036_v5 = vpack.c.bf16 %v713_v18, %v711_v29  ;;  %1716 = vmatprep.mubr.bf16.mxu1 %v4601_v33  ;;  %v362_v61 = vadd.f32 %v4357_v45, %v323_v16  ;;  %v5043_v60 = vsel %vm509_vm0, 0.0, %v530_v52  ;;  %v724_v17 = vrot.slane %v4591_v22, 1  ;;  %v4326_v37 = vld [vmem:[%s6047_s3 + $0x90] sm:$0xff]  }
  0x73   : > { %4004 = vmatprep.subr.bf16.mxu1 %v4325_v63  ;;  %v725_v39 = vrot.slane %v4587_v20, 1  ;;  %v5052_v33 = vsel %vm509_vm0, %v530_v52, %v531_v41  ;;  %v5055_v13 = vsel %vm509_vm0, %v531_v41, 0.0  ;;  %v714_v49 = vrot.slane %v5043_v60, 1 }
  0x74   : > { %1282 = vmatprep.mubr.bf16.mxu0 %v5036_v5  ;;  %v363_v40 = vadd.f32 %v4357_v45, %v324_v4  ;;  %v715_v32 = vrot.slane %v5052_v33, 1  ;;  %v717_v22 = vrot.slane %v5055_v13, 1  ;;  %vm394_vm12 = vcmp.ge.f32.partialorder %v362_v61, 0.0 }
  0x75   : > { %v727_v8 = vrot.slane %v4594_v23, 1  ;;  %v426_v15 = vmul.f32 0.01, %v362_v61  ;;  %v726_v4 = vsel %vm678_vm1, %v724_v17, %v725_v39  ;;  %v729_v16 = vrot.slane %v4623_v48, 1 }
  0x76   : > { %4005 = vmatpush3.bf16.msra.mxu1 %v4325_v63  ;;  %vm395_vm13 = vcmp.ge.f32.partialorder %v363_v40, 0.0  ;;  %v427_v25 = vmul.f32 0.01, %v363_v40  ;;  %v716_v18 = vsel %vm678_vm1, %v714_v49, %v715_v32  ;;  %v718_v45 = vsel %vm678_vm1, %v715_v32, %v717_v22 }
  0x77   : > { %4006 = vmatprep.subr.bf16.mxu1 %v4326_v37  ;;  %v5069_v23 = vpack.c.bf16 %v718_v45, %v716_v18  ;;  %v458_v41 = vsel %vm394_vm12, %v362_v61, %v426_v15  ;;  %v728_v22 = vsel %vm678_vm1, %v725_v39, %v727_v8  ;;  %v730_v61 = vrot.slane %v4629_v53, 1  ;;  %v4328_v45 = vld [vmem:[%s6047_s3 + $0xa0] sm:$0xff]  }
  0x78   : > { %3040 = vmatmul.mubr.msk.bf16.gmra.mrb[20].mxu0 %vm4604_vm11, %v5040_v19  ;;  %v459_v63 = vsel %vm395_vm13, %v363_v40, %v427_v25  ;;  %v533_v49 = vrot.slane %v458_v41, 7  ;;  %v734_v17 = vrot.slane %v4716_v14, 1  ;;  %v735_v40 = vrot.slane %v4725_v28, 1 }
  0x79   : > { %6133 = vst [vmem:[#allocation36_spill] sm:$0xff] %v5069_v23  ;;  %3112 = vmatmul.mubr.msk.bf16.gmra.mrb[20].mxu1 %vm4604_vm11, %v4609_v36  ;;  %v534_v32 = vrot.slane %v459_v63, 7  ;;  %1290 = vmatprep.mubr.bf16.mxu0 %v5069_v23  ;;  %v737_v15 = vrot.slane %v4728_v10, 1  ;;  %v5097_v8 = vpack.c.bf16 %v5052_v33, %v530_v52  ;;  %v5105_v41 = vpack.c.bf16 %v728_v22, %v726_v4 }
  0x7a   : > { %1724 = vmatprep.mubr.bf16.mxu1 %v4712_v12  ;;  %v5091_v39 = vsel %vm509_vm0, 0.0, %v533_v49  ;;  %4007 = vmatpush3.bf16.msra.mxu1 %v4326_v37  ;;  %v732_v63 = vrot.slane %v4632_v54, 1  ;;  %v736_v37 = vsel %vm678_vm1, %v734_v17, %v735_v40  ;;  %v5115_v29 = vsel %vm678_vm1, %v729_v16, %v730_v61 }
  0x7b   : > { %v5088_v25 = vsel %vm509_vm0, %v533_v49, %v534_v32  ;;  %v5094_v48 = vsel %vm509_vm0, %v534_v32, 0.0  ;;  %v719_v14 = vrot.slane %v5091_v39, 1  ;;  %4008 = vmatprep.subr.bf16.mxu1 %v4327_v7  ;;  %v738_v52 = vsel %vm678_vm1, %v735_v40, %v737_v15 }
  0x7c   : > { %v720_v18 = vrot.slane %v5088_v25, 1  ;;  %v722_v10 = vrot.slane %v5094_v48, 1  ;;  %v5117_v12 = vpack.c.bf16 %v738_v52, %v736_v37  ;;  %v739_v4 = vrot.slane %v4761_v59, 1  ;;  %v4329_v59 = vld [vmem:[%s6047_s3 + $0xa8] sm:$0xff]  }
  0x7d   : > { %v740_v22 = vrot.slane %v4757_v62, 1  ;;  %v742_v17 = vrot.slane %v4764_v1, 1  ;;  %v5128_v40 = vpack.c.bf16 %v5088_v25, %v533_v49  ;;  %v744_v16 = vrot.slane %v4836_v42, 1 }
  0x7e   : > { %v721_v32 = vsel %vm678_vm1, %v719_v14, %v720_v18  ;;  %v723_v36 = vsel %vm678_vm1, %v720_v18, %v722_v10  ;;  %4009 = vmatpush3.bf16.msra.mxu1 %v4327_v7  ;;  %v745_v15 = vrot.slane %v4832_v27, 1  ;;  %v5144_v42 = vpack.c.bf16 %v4832_v27, %v4820_v50 }
  0x7f   : > { %v5119_v23 = vpack.c.bf16 %v723_v36, %v721_v32  ;;  %v747_v36 = vrot.slane %v4844_v26, 1  ;;  %4010 = vmatprep.subr.bf16.mxu1 %v4328_v45  ;;  %v741_v1 = vsel %vm678_vm1, %v739_v4, %v740_v22  ;;  %v743_v7 = vsel %vm678_vm1, %v740_v22, %v742_v17 }
  0x80   : > { %3044 = vmatmul.mubr.msk.bf16.gmra.mrb[24].mxu0 %vm4604_vm11, %v5097_v8  ;;  %v749_v26 = vrot.slane %v4870_v58, 1  ;;  %v5148_v49 = vpack.c.bf16 %v743_v7, %v741_v1  ;;  %v746_v14 = vsel %vm678_vm1, %v744_v16, %v745_v15  ;;  %v750_v10 = vrot.slane %v4884_v47, 1  ;;  %v6136_v7 = vld [vmem:[#allocation6_spill] sm:$0xff] }
  0x81   : > { %3116 = vmatmul.mubr.msk.bf16.gmra.mrb[24].mxu1 %vm4604_vm11, %v4704_v0  ;;  %1298 = vmatprep.mubr.bf16.mxu0 %v5119_v23  ;;  %v748_v18 = vsel %vm678_vm1, %v745_v15, %v747_v36  ;;  %v752_v52 = vrot.slane %v4887_v3, 1  ;;  %v5158_v50 = vpack.c.bf16 %v4884_v47, %v4857_v51  ;;  %v754_v27 = vrot.slane %v4925_v44, 1  ;;  %v4330_v3 = vld [vmem:[%s6047_s3 + $0xb0] sm:$0xff]  }
  0x82   : > { %1732 = vmatprep.mubr.bf16.mxu1 %v4841_v34  ;;  %v5153_v37 = vpack.c.bf16 %v748_v18, %v746_v14  ;;  %4011 = vmatpush3.bf16.msra.mxu1 %v4328_v45  ;;  %v751_v58 = vsel %vm678_vm1, %v749_v26, %v750_v10  ;;  %v755_v32 = vrot.slane %v4932_v30, 1  ;;  %v757_v4 = vrot.slane %v4935_v24, 1  ;;  %v6134_v45 = vld [vmem:[#allocation30_spill] sm:$0xff] }
  0x83   : > { %v5166_v22 = vpack.c.bf16 %v4932_v30, %v4914_v6  ;;  %4012 = vmatprep.subr.bf16.mxu1 %v4329_v59  ;;  %v753_v51 = vsel %vm678_vm1, %v750_v10, %v752_v52  ;;  %v759_v47 = vrot.slane %v4964_v21, 1  ;;  %v760_v44 = vrot.slane %v4960_v43, 1  ;;  %v6135_v30 = vld [vmem:[#allocation29_spill] sm:$0xff] }
  0x84   : > { %v762_v17 = vrot.slane %v6134_v45, 1  ;;  %v5175_v16 = vpack.c.bf16 %v753_v51, %v751_v58  ;;  %v756_v24 = vsel %vm678_vm1, %v754_v27, %v755_v32  ;;  %v758_v6 = vsel %vm678_vm1, %v755_v32, %v757_v4  ;;  %v4339_v58 = vld [vmem:[%s6047_s3 + $0xb8] sm:$0xff]   ;;  %v6141_v32 = vld [vmem:[#allocation20_spill] sm:$0xff] }
  0x85   : > { %v5181_v15 = vpack.c.bf16 %v4960_v43, %v6135_v30  ;;  %v5183_v36 = vpack.c.bf16 %v758_v6, %v756_v24  ;;  %v761_v1 = vsel %vm678_vm1, %v759_v47, %v760_v44  ;;  %v805_v26 = vrot.slane %v6136_v7, 2  ;;  %v6144_v47 = vld [vmem:[#allocation27_spill] sm:$0xff]  ;;  %v6146_v24 = vld [vmem:[#allocation24_spill] sm:$0xff] }
  0x86   : > { %4013 = vmatpush3.bf16.msra.mxu1 %v4329_v59  ;;  %v763_v21 = vsel %vm678_vm1, %v760_v44, %v762_v17  ;;  %v6137_v18 = vrot.slane %v4681_v55, 2  ;;  %v6138_v43 = vrot.slane %v4673_v46, 2  ;;  %v6139_v59 = vrot.slane %v4684_v56, 2  ;;  %v6145_v17 = vld [vmem:[#allocation23_spill] sm:$0xff] }
  0x87   : > { %v5191_v14 = vpack.c.bf16 %v763_v21, %v761_v1  ;;  %4014 = vmatprep.subr.bf16.mxu1 %v4330_v3  ;;  %v6142_v46 = vrot.slane %v4575_v9, 2  ;;  %v6143_v56 = vrot.slane %v4578_v11, 2  ;;  %v733_v44 = vsel %vm678_vm1, %v730_v61, %v732_v63  ;;  %v6147_v11 = vld [vmem:[#allocation25_spill] sm:$0xff]  ;;  %v6148_v1 = vld [vmem:[#allocation32_spill] sm:$0xff] }
  0x88   : > { %3048 = vmatmul.mubr.msk.bf16.gmra.mrb[28].mxu0 %vm4604_vm11, %v5128_v40  ;;  %v811_v10 = vsel %vm798_vm2, %v6138_v43, %v6137_v18  ;;  %v6140_v52 = vmov %v6137_v18  ;;  %v819_v9 = vrot.slane %v6145_v17, 2  ;;  %v820_v6 = vrot.slane %v6146_v24, 2  ;;  %v6150_v61 = vld [vmem:[#allocation33_spill] sm:$0xff]  ;;  %v6152_v24 = vld [vmem:[#allocation26_spill] sm:$0xff] }
  0x89   : > { %v813_v27 = vsel %vm798_vm2, %v6140_v52, %v6139_v59  ;;  %3120 = vmatmul.mubr.msk.bf16.gmra.mrb[28].mxu1 %vm4604_vm11, %v6141_v32  ;;  %1306 = vmatprep.mubr.bf16.mxu0 %v5105_v41  ;;  %v806_v4 = vsel %vm798_vm2, %v6142_v46, %v805_v26  ;;  %v808_v55 = vsel %vm798_vm2, %v805_v26, %v6143_v56  ;;  %v822_v30 = vrot.slane %v6147_v11, 2  ;;  %v6149_v26 = vld [vmem:[#allocation5_spill] sm:$0xff] }
  0x8a   : > { %v5216_v51 = vpack.c.bf16 %v813_v27, %v811_v10  ;;  %1740 = vmatprep.mubr.bf16.mxu1 %v6144_v47  ;;  %v5224_v45 = vpack.c.bf16 %v808_v55, %v806_v4  ;;  %4015 = vmatpush3.bf16.msra.mxu1 %v4330_v3  ;;  %v824_v21 = vrot.slane %v6148_v1, 2  ;;  %v825_v7 = vrot.slane %v4984_v2, 2  ;;  %v5241_v3 = vld [vmem:[%s6047_s3 + $0x200] sm:$0xff]  }
  0x8b   : > { %v5233_v54 = vpack.c.bf16 %v4587_v20, %v6149_v26  ;;  %v821_v18 = vsel %vm798_vm2, %v819_v9, %v820_v6  ;;  %v827_v63 = vrot.slane %v6150_v61, 2  ;;  %v829_v43 = vrot.slane %v5010_v57, 2  ;;  %4016 = vmatprep.subr.bf16.mxu1 %v4339_v58  ;;  %v6151_v57 = vld [vmem:[#allocation35_spill] sm:$0xff]  ;;  %v6157_v26 = vld [vmem:[#allocation14_spill] sm:$0xff] }
  0x8c   : > { %v5244_v10 = vpack.c.bf16 %v733_v44, %v5115_v29  ;;  %v823_v2 = vsel %vm798_vm2, %v820_v6, %v822_v30  ;;  %v826_v20 = vsel %vm798_vm2, %v824_v21, %v825_v7  ;;  %v830_v59 = vrot.slane %v5013_v38, 2  ;;  %v6153_v6 = vld [vmem:[#allocation34_spill] sm:$0xff]  ;;  %v6154_v30 = vld [vmem:[#allocation7_spill] sm:$0xff]  ;;  %v6155_v21 = vld [vmem:[#allocation12_spill] sm:$0xff] }
  0x8d   : > { %v5249_v52 = vpack.c.bf16 %v823_v2, %v821_v18  ;;  %v828_v27 = vsel %vm798_vm2, %v825_v7, %v827_v63  ;;  %v832_v46 = vrot.slane %v6151_v57, 2  ;;  %v834_v4 = vrot.slane %v5043_v60, 2  ;;  %v6159_v61 = vld [vmem:[#allocation18_spill] sm:$0xff]  ;;  %v4333_v57 = vld [vmem:[%s6047_s3 + $0x1c8] sm:$0xff]  }
  0x8e   : > { %v5254_v56 = vpack.c.bf16 %v828_v27, %v826_v20  ;;  %v831_v55 = vsel %vm798_vm2, %v829_v43, %v830_v59  ;;  %4017 = vmatpush3.bf16.msra.mxu1 %v4339_v58  ;;  %v835_v29 = vrot.slane %v5052_v33, 2  ;;  %v837_v44 = vrot.slane %v5055_v13, 2  ;;  %v6160_v43 = vld [vmem:[#allocation19_spill] sm:$0xff]  ;;  %v4332_v27 = vld [vmem:[%s6047_s3 + $0x180] sm:$0xff]  }
  0x8f   : > { %v833_v38 = vsel %vm798_vm2, %v830_v59, %v832_v46  ;;  %v839_v17 = vrot.slane %v5091_v39, 2  ;;  %v840_v9 = vrot.slane %v5088_v25, 2  ;;  %v842_v60 = vrot.slane %v5094_v48, 2  ;;  %4050 = vmatprep.subr.bf16.mxu1 %v5241_v3 }
  0x90   : > { %3052 = vmatmul.mubr.msk.bf16.gmra.mrb[32].mxu0 %vm4604_vm11, %v5233_v54  ;;  %v5271_v33 = vpack.c.bf16 %v833_v38, %v831_v55  ;;  %v836_v13 = vsel %vm798_vm2, %v834_v4, %v835_v29  ;;  %v838_v58 = vsel %vm798_vm2, %v835_v29, %v837_v44  ;;  %v5284_v1 = vpack.c.bf16 %v4629_v53, %v6154_v30  ;;  %v6156_v53 = vld [vmem:[#allocation36_spill] sm:$0xff]  ;;  %v4334_v4 = vld [vmem:[%s6047_s3 + $0x188] sm:$0xff]   ;;  %v4337_v44 = vld [vmem:[%s6047_s3 + $0x1d8] sm:$0xff]  }
  0x91   : > { %3124 = vmatmul.mubr.msk.bf16.gmra.mrb[32].mxu1 %vm4604_vm11, %v6152_v24  ;;  %1314 = vmatprep.mubr.bf16.mxu0 %v5244_v10  ;;  %v5276_v39 = vpack.c.bf16 %v838_v58, %v836_v13  ;;  %v841_v25 = vsel %vm798_vm2, %v839_v17, %v840_v9  ;;  %v843_v48 = vsel %vm798_vm2, %v840_v9, %v842_v60  ;;  %v815_v63 = vrot.slane %v6159_v61, 2  ;;  %v4335_v55 = vld [vmem:[%s6047_s3 + $0x1d0] sm:$0xff]   ;;  %v4338_v38 = vld [vmem:[%s6047_s3 + $0x198] sm:$0xff]   ;;  %v4340_v17 = vld [vmem:[%s6047_s3 + $0x1e0] sm:$0xff]  }
  0x92   : > { %1748 = vmatprep.mubr.bf16.mxu1 %v6153_v6  ;;  %v5280_v11 = vpack.c.bf16 %v843_v48, %v841_v25  ;;  %v5296_v7 = vpack.c.bf16 %v4725_v28, %v6155_v21  ;;  %v5308_v18 = vpack.c.bf16 %v4757_v62, %v6157_v26  ;;  %v6158_v28 = vld [vmem:[#allocation17_spill] sm:$0xff]  ;;  %v817_v2 = vrot.slane %v6160_v43, 2  ;;  %v4336_v29 = vld [vmem:[%s6047_s3 + $0x190] sm:$0xff]   ;;  %v4341_v9 = vld [vmem:[%s6047_s3 + $0x1a0] sm:$0xff]  }
  0x93   : > { %v814_v62 = vrot.slane %v6158_v28, 2  ;;  %v4342_v60 = vld [vmem:[%s6047_s3 + $0x1e8] sm:$0xff]   ;;  %v6162_v25 = vld [vmem:[#allocation2_spill] sm:$0xff]  ;;  %v6163_v30 = vld [vmem:[#allocation4_spill] sm:$0xff] }
  0x94   : > { %v818_v59 = vsel %vm798_vm2, %v815_v63, %v817_v2  ;;  %v6161_v13 = vld [vmem:[#allocation3_spill] sm:$0xff]  ;;  %v800_v48 = vrot.slane %v6162_v25, 2  ;;  %v802_v21 = vrot.slane %v6163_v30, 2  ;;  %v4344_v28 = vld [vmem:[%s6047_s3 + $0x1f0] sm:$0xff]   ;;  %v4346_v43 = vld [vmem:[%s6047_s3 + $0x1f8] sm:$0xff]  }
  0x95   : > { %v816_v20 = vsel %vm798_vm2, %v814_v62, %v815_v63  ;;  %v799_v58 = vrot.slane %v6161_v13, 2  ;;  %v4343_v26 = vld [vmem:[%s6047_s3 + $0x1a8] sm:$0xff]   ;;  %v4345_v63 = vld [vmem:[%s6047_s3 + $0x1b0] sm:$0xff]  }
  0x96   : > { %v5361_v46 = vpack.c.bf16 %v818_v59, %v816_v20  ;;  %v803_v61 = vsel %vm798_vm2, %v800_v48, %v802_v21  ;;  %v4347_v20 = vld [vmem:[%s6047_s3 + $0x1b8] sm:$0xff]  }
  0x97   : > { %v801_v62 = vsel %vm798_vm2, %v799_v58, %v800_v48  ;;  %v6164_v59 = vld [vmem:[#allocation13_spill] sm:$0xff]  ;;  %v6167_v58 = vld [vmem:[#allocation15_spill] sm:$0xff]  ;;  %v6170_v48 = vld [vmem:[#allocation22_spill] sm:$0xff] }
  0x98   : > { %3056 = vmatmul.mubr.msk.bf16.gmra.mrb[36].mxu0 %vm4604_vm11, %v5284_v1  ;;  %v5422_v2 = vpack.c.bf16 %v803_v61, %v801_v62 }
  0x99   : > { %3128 = vmatmul.mubr.msk.bf16.gmra.mrb[36].mxu1 %vm4604_vm11, %v4998_v31  ;;  %1322 = vmatprep.mubr.bf16.mxu0 %v5117_v12 }
  0x9a   : > { %1756 = vmatprep.mubr.bf16.mxu1 %v5036_v5 }
  0xa0   : > { %3060 = vmatmul.mubr.msk.bf16.gmra.mrb[40].mxu0 %vm4604_vm11, %v5296_v7 }
  0xa1   : > { %3132 = vmatmul.mubr.msk.bf16.gmra.mrb[40].mxu1 %vm4604_vm11, %v5040_v19  ;;  %1330 = vmatprep.mubr.bf16.mxu0 %v5148_v49 }
  0xa2   : > { %1764 = vmatprep.mubr.bf16.mxu1 %v6156_v53 }
  0xa8   : > { %3064 = vmatmul.mubr.msk.bf16.gmra.mrb[44].mxu0 %vm4604_vm11, %v5308_v18 }
  0xa9   : > { %3136 = vmatmul.mubr.msk.bf16.gmra.mrb[44].mxu1 %vm4604_vm11, %v5097_v8  ;;  %1338 = vmatprep.mubr.bf16.mxu0 %v5153_v37 }
  0xaa   : > { %1772 = vmatprep.mubr.bf16.mxu1 %v5119_v23 }
  0xb0   : > { %3068 = vmatmul.mubr.msk.bf16.gmra.mrb[48].mxu0 %vm4604_vm11, %v5144_v42 }
  0xb1   : > { %3140 = vmatmul.mubr.msk.bf16.gmra.mrb[48].mxu1 %vm4604_vm11, %v5128_v40  ;;  %1346 = vmatprep.mubr.bf16.mxu0 %v5175_v16 }
  0xb2   : > { %1780 = vmatprep.mubr.bf16.mxu1 %v5105_v41 }
  0xb8   : > { %3072 = vmatmul.mubr.msk.bf16.gmra.mrb[52].mxu0 %vm4604_vm11, %v5158_v50 }
  0xb9   : > { %3144 = vmatmul.mubr.msk.bf16.gmra.mrb[52].mxu1 %vm4604_vm11, %v5233_v54  ;;  %1354 = vmatprep.mubr.bf16.mxu0 %v5183_v36 }
  0xba   : > { %1788 = vmatprep.mubr.bf16.mxu1 %v5244_v10 }
  0xc0   : > { %3076 = vmatmul.mubr.msk.bf16.gmra.mrb[56].mxu0 %vm4604_vm11, %v5166_v22 }
  0xc1   : > { %3148 = vmatmul.mubr.msk.bf16.gmra.mrb[56].mxu1 %vm4604_vm11, %v5284_v1  ;;  %1362 = vmatprep.mubr.bf16.mxu0 %v5191_v14 }
  0xc2   : > { %1796 = vmatprep.mubr.bf16.mxu1 %v5117_v12 }
  0xc8   : > { %3080 = vmatmul.mubr.msk.bf16.gmra.mrb[60].mxu0 %vm4604_vm11, %v5181_v15 }
  0xc9   : > { %3152 = vmatmul.mubr.msk.bf16.gmra.mrb[60].mxu1 %vm4604_vm11, %v5296_v7  ;;  %3970 = vmatprep.mubr.bf16.mxu0 %v5224_v45 }
  0xca   : > { %1804 = vmatprep.mubr.bf16.mxu1 %v5148_v49 }
  0xd0   : > { %3971 = vmatmul.mubr.bf16.vlgmr.msra.gmra.mrb[64].mxu0 %v5216_v51 }
  0xd1   : > { %3156 = vmatmul.mubr.msk.bf16.gmra.mrb[64].mxu1 %vm4604_vm11, %v5308_v18  ;;  %3819 = vmatpush3.bf16.msra.mxu0 %v4332_v27  ;;  %v4349_v27 = vld [vmem:[%s6047_s3 + $0x208] sm:$0xff]  }
  0xd2   : > { %3820 = vmatprep.subr.bf16.mxu0 %v4333_v57  ;;  %3974 = vmatprep.mubr.bf16.mxu0 %v5361_v46  ;;  %v4350_v57 = vld [vmem:[%s6047_s3 + $0x210] sm:$0xff]  }
  0xd3   : > { %1812 = vmatprep.mubr.bf16.mxu1 %v5153_v37 }
  0xd5   : > { %3821 = vmatpush3.bf16.msra.mxu0 %v4334_v4  ;;  %v4351_v4 = vld [vmem:[%s6047_s3 + $0x218] sm:$0xff]  }
  0xd6   : > { %3822 = vmatprep.subr.bf16.mxu0 %v4335_v55 }
  0xd8   : > { %3975 = vmatmul.mubr.bf16.gmra.mrb[68].mxu0 %v5249_v52 }
  0xd9   : > { %3160 = vmatmul.mubr.msk.bf16.gmra.mrb[68].mxu1 %vm4604_vm11, %v5144_v42  ;;  %3823 = vmatpush3.bf16.msra.mxu0 %v4336_v29 }
  0xda   : > { %3824 = vmatprep.subr.bf16.mxu0 %v4337_v44  ;;  %3978 = vmatprep.mubr.bf16.mxu0 %v5254_v56  ;;  %v4354_v44 = vld [vmem:[%s6047_s3 + $0x230] sm:$0xff]  }
  0xdb   : > { %1820 = vmatprep.mubr.bf16.mxu1 %v5175_v16 }
  0xdd   : > { %3825 = vmatpush3.bf16.msra.mxu0 %v4338_v38 }
  0xde   : > { %3826 = vmatprep.subr.bf16.mxu0 %v4340_v17  ;;  %v6165_v17 = vld [vmem:[#allocation8_spill] sm:$0xff] }
  0xe0   : > { %3979 = vmatmul.mubr.bf16.gmra.mrb[72].mxu0 %v5271_v33 }
  0xe1   : > { %3164 = vmatmul.mubr.msk.bf16.gmra.mrb[72].mxu1 %vm4604_vm11, %v5158_v50  ;;  %3827 = vmatpush3.bf16.msra.mxu0 %v4341_v9 }
  0xe2   : > { %3828 = vmatprep.subr.bf16.mxu0 %v4342_v60  ;;  %3982 = vmatprep.mubr.bf16.mxu0 %v5276_v39  ;;  %v6166_v60 = vld [vmem:[#allocation9_spill] sm:$0xff] }
  0xe3   : > { %1828 = vmatprep.mubr.bf16.mxu1 %v5183_v36 }
  0xe5   : > { %3829 = vmatpush3.bf16.msra.mxu0 %v4343_v26 }
  0xe6   : > { %3830 = vmatprep.subr.bf16.mxu0 %v4344_v28 }
  0xe8   : > { %3983 = vmatmul.mubr.bf16.gmra.mrb[76].mxu0 %v5280_v11 }
  0xe9   : > { %3168 = vmatmul.mubr.msk.bf16.gmra.mrb[76].mxu1 %vm4604_vm11, %v5166_v22  ;;  %3831 = vmatpush3.bf16.msra.mxu0 %v4345_v63 }
  0xea   : > { %3832 = vmatprep.subr.bf16.mxu0 %v4346_v43  ;;  %4018 = vmatprep.mubr.bf16.mxu1 %v5422_v2 }
  0xeb   : > { %2223 = vmatprep.mubr.bf16.mxu0 %v6164_v59 }
  0xed   : > { %3833 = vmatpush3.bf16.msra.mxu0 %v4347_v20 }
  0xf0   : > { %3244 = vmatmul.mubr.msk.bf16.vlgmr.msra.gmra.mrb[80].mxu0 %vm4604_vm11, %v4704_v0  ;;  %v4352_v0 = vld [vmem:[%s6047_s3 + $0x220] sm:$0xff]  }
  0xf1   : > { %4019 = vmatmul.mubr.bf16.vlgmr.msra.gmra.mrb[80].mxu1 %v5224_v45  ;;  %2231 = vmatprep.mubr.bf16.mxu0 %v4841_v34  ;;  %v4353_v45 = vld [vmem:[%s6047_s3 + $0x228] sm:$0xff]  }
  0xf2   : > { %4051 = vmatpush3.bf16.msra.mxu1 %v5241_v3  ;;  %4022 = vmatprep.mubr.bf16.mxu1 %v5216_v51 }
  0xf3   : > { %4052 = vmatprep.subr.bf16.mxu1 %v4349_v27 }
  0xf6   : > { %4053 = vmatpush3.bf16.msra.mxu1 %v4349_v27 }
  0xf7   : > { %4054 = vmatprep.subr.bf16.mxu1 %v4350_v57 }
  0xf8   : > { %3248 = vmatmul.mubr.msk.bf16.gmra.mrb[84].mxu0 %vm4604_vm11, %v6141_v32 }
  0xf9   : > { %4023 = vmatmul.mubr.bf16.gmra.mrb[84].mxu1 %v5361_v46  ;;  %2239 = vmatprep.mubr.bf16.mxu0 %v6144_v47 }
  0xfa   : > { %4026 = vmatprep.mubr.bf16.mxu1 %v5249_v52  ;;  %4055 = vmatpush3.bf16.msra.mxu1 %v4350_v57 }
  0xfb   : > { %4056 = vmatprep.subr.bf16.mxu1 %v4351_v4 }
  0xfe   : > { %4057 = vmatpush3.bf16.msra.mxu1 %v4351_v4 }
  0xff   : > { %4058 = vmatprep.subr.bf16.mxu1 %v4352_v0 }
 0x100   : > { %3252 = vmatmul.mubr.msk.bf16.gmra.mrb[88].mxu0 %vm4604_vm11, %v6152_v24  ;;  %v4355_v24 = vld [vmem:[%s6047_s3 + $0x238] sm:$0xff]  }
 0x101   : > { %4027 = vmatmul.mubr.bf16.gmra.mrb[88].mxu1 %v5254_v56  ;;  %2247 = vmatprep.mubr.bf16.mxu0 %v6153_v6 }
 0x102   : > { %v3562_v34 = vpop.f32.mrb[0].mxu0  ;;  %4030 = vmatprep.mubr.bf16.mxu1 %v5271_v33  ;;  %4059 = vmatpush3.bf16.msra.mxu1 %v4352_v0 }
 0x103   : > { %v3563_v32 = vpop.f32.mrb[1].mxu0  ;;  %4060 = vmatprep.subr.bf16.mxu1 %v4353_v45 }
 0x104   : > { %v5464_v47 = vadd.f32 %v3563_v32, %v3562_v34  ;;  %v3565_v3 = vpop.f32.mrb[2].mxu0 }
 0x105   : > { %v3566_v55 = vpop.f32.mrb[3].mxu0 }
 0x106   : > { %v5469_v29 = vadd.f32 %v3566_v55, %v3565_v3  ;;  %4061 = vmatpush3.bf16.msra.mxu1 %v4353_v45 }
 0x107   : > { %4062 = vmatprep.subr.bf16.mxu1 %v4354_v44 }
 0x108   : > { %3256 = vmatmul.mubr.msk.bf16.gmra.mrb[92].mxu0 %vm4604_vm11, %v4998_v31 }
 0x109   : > { %4031 = vmatmul.mubr.bf16.gmra.mrb[92].mxu1 %v5276_v39  ;;  %2255 = vmatprep.mubr.bf16.mxu0 %v5036_v5 }
 0x10a   : > { %4034 = vmatprep.mubr.bf16.mxu1 %v5280_v11  ;;  %4063 = vmatpush3.bf16.msra.mxu1 %v4354_v44 }
 0x10b   : > { %4064 = vmatprep.subr.bf16.mxu1 %v4355_v24 }
 0x10d   : > { %v3568_v6 = vpop.f32.mrb[4].mxu0 }
 0x10e   : > { %4065 = vmatpush3.bf16.msra.mxu1 %v4355_v24  ;;  %v3569_v38 = vpop.f32.mrb[5].mxu0 }
 0x10f   : > { %v5488_v31 = vadd.f32 %v3569_v38, %v3568_v6  ;;  %v3571_v9 = vpop.f32.mrb[6].mxu0 }
 0x110   : > { %3260 = vmatmul.mubr.msk.bf16.gmra.mrb[96].mxu0 %vm4604_vm11, %v5040_v19  ;;  %v3572_v5 = vpop.f32.mrb[7].mxu0  ;;  %v6168_v19 = vld [vmem:[#allocation16_spill] sm:$0xff] }
 0x111   : > { %4035 = vmatmul.mubr.bf16.gmra.mrb[0].mxu1 %v6165_v17  ;;  %2263 = vmatprep.mubr.bf16.mxu0 %v6156_v53  ;;  %v5491_v13 = vadd.f32 %v3572_v5, %v3571_v9  ;;  %v6169_v53 = vld [vmem:[#allocation21_spill] sm:$0xff] }
 0x112   : > { %4038 = vmatprep.mubr.bf16.mxu1 %v6166_v60 }
 0x118   : > { %3264 = vmatmul.mubr.msk.bf16.gmra.mrb[100].mxu0 %vm4604_vm11, %v5097_v8 }
 0x119   : > { %4039 = vmatmul.mubr.bf16.gmra.mrb[4].mxu1 %v6167_v58  ;;  %2271 = vmatprep.mubr.bf16.mxu0 %v5119_v23  ;;  %v6171_v23 = vld [vmem:[#allocation28_spill] sm:$0xff] }
 0x11a   : > { %4042 = vmatprep.mubr.bf16.mxu1 %v6168_v19 }
 0x120   : > { %3268 = vmatmul.mubr.msk.bf16.gmra.mrb[104].mxu0 %vm4604_vm11, %v5128_v40 }
 0x121   : > { %4043 = vmatmul.mubr.bf16.gmra.mrb[8].mxu1 %v6169_v53  ;;  %2279 = vmatprep.mubr.bf16.mxu0 %v5105_v41 }
 0x122   : > { %v3574_v25 = vpop.f32.mrb[8].mxu0  ;;  %4046 = vmatprep.mubr.bf16.mxu1 %v6170_v48 }
 0x123   : > { %v3575_v30 = vpop.f32.mrb[9].mxu0 }
 0x124   : > { %v5505_v21 = vadd.f32 %v3575_v30, %v3574_v25  ;;  %v3577_v8 = vpop.f32.mrb[10].mxu0 }
 0x125   : > { %v3578_v26 = vpop.f32.mrb[11].mxu0 }
 0x126   : > { %v5507_v28 = vadd.f32 %v3578_v26, %v3577_v8 }
 0x128   : > { %3272 = vmatmul.mubr.msk.bf16.gmra.mrb[108].mxu0 %vm4604_vm11, %v5233_v54 }
 0x129   : > { %4047 = vmatmul.mubr.bf16.gmra.mrb[12].mxu1 %v6171_v23  ;;  %2287 = vmatprep.mubr.bf16.mxu0 %v5244_v10 }
 0x12a   : > { %4066 = vmatprep.mubr.bf16.mxu1 %v5216_v51 }
 0x130   : > { %3276 = vmatmul.mubr.msk.bf16.gmra.mrb[112].mxu0 %vm4604_vm11, %v5284_v1 }
 0x131   : > { %4067 = vmatmul.mubr.bf16.vlgmr.msra.gmra.mrb[80].mxu1 %v5361_v46  ;;  %2295 = vmatprep.mubr.bf16.mxu0 %v5117_v12 }
 0x132   : > { %4070 = vmatprep.mubr.bf16.mxu1 %v5249_v52 }
 0x133   : > { %v3580_v41 = vpop.f32.mrb[12].mxu0 }
 0x134   : > { %v3581_v40 = vpop.f32.mrb[13].mxu0 }
 0x135   : > { %v5521_v62 = vadd.f32 %v3581_v40, %v3580_v41  ;;  %v3583_v54 = vpop.f32.mrb[14].mxu0 }
 0x136   : > { %v3584_v61 = vpop.f32.mrb[15].mxu0 }
 0x137   : > { %v5523_v63 = vadd.f32 %v3584_v61, %v3583_v54 }
 0x138   : > { %3280 = vmatmul.mubr.msk.bf16.gmra.mrb[116].mxu0 %vm4604_vm11, %v5296_v7 }
 0x139   : > { %4071 = vmatmul.mubr.bf16.gmra.mrb[84].mxu1 %v5254_v56  ;;  %2303 = vmatprep.mubr.bf16.mxu0 %v5148_v49 }
 0x13a   : > { %4074 = vmatprep.mubr.bf16.mxu1 %v5271_v33 }
 0x140   : > { %3284 = vmatmul.mubr.msk.bf16.gmra.mrb[120].mxu0 %vm4604_vm11, %v5308_v18 }
 0x141   : > { %4075 = vmatmul.mubr.bf16.gmra.mrb[88].mxu1 %v5276_v39  ;;  %2311 = vmatprep.mubr.bf16.mxu0 %v5153_v37 }
 0x142   : > { %4078 = vmatprep.mubr.bf16.mxu1 %v5280_v11 }
 0x143   : > { %v3586_v12 = vpop.f32.mrb[16].mxu0 }
 0x144   : > { %v3698_v51 = vpop.f32.mrb[16].mxu1  ;;  %v3587_v10 = vpop.f32.mrb[17].mxu0 }
 0x145   : > { %v5537_v52 = vadd.f32 %v3587_v10, %v3586_v12  ;;  %v3699_v56 = vpop.f32.mrb[17].mxu1  ;;  %v3589_v1 = vpop.f32.mrb[18].mxu0 }
 0x146   : > { %v5539_v49 = vadd.f32 %v3699_v56, %v3698_v51  ;;  %v3701_v33 = vpop.f32.mrb[18].mxu1  ;;  %v3590_v7 = vpop.f32.mrb[19].mxu0 }
 0x147   : > { %v5541_v46 = vadd.f32 %v3590_v7, %v3589_v1  ;;  %v3702_v18 = vpop.f32.mrb[19].mxu1 }
 0x148   : > { %v5543_v43 = vadd.f32 %v3702_v18, %v3701_v33  ;;  %3288 = vmatmul.mubr.msk.bf16.gmra.mrb[124].mxu0 %vm4604_vm11, %v5144_v42 }
 0x149   : > { %4079 = vmatmul.mubr.bf16.gmra.mrb[92].mxu1 %v6165_v17  ;;  %2319 = vmatprep.mubr.bf16.mxu0 %v5175_v16 }
 0x14a   : > { %4082 = vmatprep.mubr.bf16.mxu1 %v6166_v60 }
 0x14b   : > { %v3592_v37 = vpop.f32.mrb[20].mxu0 }
 0x14c   : > { %v3704_v39 = vpop.f32.mrb[20].mxu1  ;;  %v3593_v11 = vpop.f32.mrb[21].mxu0 }
 0x14d   : > { %v5551_v20 = vadd.f32 %v3593_v11, %v3592_v37  ;;  %v3705_v59 = vpop.f32.mrb[21].mxu1  ;;  %v3595_v27 = vpop.f32.mrb[22].mxu0 }
 0x14e   : > { %v5553_v57 = vadd.f32 %v3705_v59, %v3704_v39  ;;  %v3707_v4 = vpop.f32.mrb[22].mxu1  ;;  %v3596_v0 = vpop.f32.mrb[23].mxu0 }
 0x14f   : > { %v5555_v34 = vadd.f32 %v3596_v0, %v3595_v27  ;;  %v3708_v42 = vpop.f32.mrb[23].mxu1 }
 0x150   : > { %v5557_v45 = vadd.f32 %v3708_v42, %v3707_v4  ;;  %3292 = vmatmul.mubr.msk.bf16.gmra.mrb[128].mxu0 %vm4604_vm11, %v5158_v50 }
 0x151   : > { %4083 = vmatmul.mubr.bf16.gmra.mrb[0].mxu1 %v6167_v58  ;;  %2327 = vmatprep.mubr.bf16.mxu0 %v5183_v36 }
 0x152   : > { %4086 = vmatprep.mubr.bf16.mxu1 %v6168_v19 }
 0x153   : > { %v3598_v16 = vpop.f32.mrb[24].mxu0 }
 0x154   : > { %v3710_v32 = vpop.f32.mrb[24].mxu1  ;;  %v3599_v3 = vpop.f32.mrb[25].mxu0 }
 0x155   : > { %v5565_v55 = vadd.f32 %v3599_v3, %v3598_v16  ;;  %v3711_v44 = vpop.f32.mrb[25].mxu1  ;;  %v3601_v24 = vpop.f32.mrb[26].mxu0 }
 0x156   : > { %v5567_v6 = vadd.f32 %v3711_v44, %v3710_v32  ;;  %v3713_v38 = vpop.f32.mrb[26].mxu1  ;;  %v3602_v17 = vpop.f32.mrb[27].mxu0 }
 0x157   : > { %v5569_v9 = vadd.f32 %v3602_v17, %v3601_v24  ;;  %v3714_v50 = vpop.f32.mrb[27].mxu1 }
 0x158   : > { %v5571_v60 = vadd.f32 %v3714_v50, %v3713_v38  ;;  %3296 = vmatmul.mubr.msk.bf16.gmra.mrb[132].mxu0 %vm4604_vm11, %v5166_v22 }
 0x159   : > { %4087 = vmatmul.mubr.bf16.gmra.mrb[4].mxu1 %v6169_v53  ;;  %2335 = vmatprep.mubr.bf16.mxu0 %v5191_v14  ;;  %v6172_v14 = vld [vmem:[#allocation11_spill] sm:$0xff] }
 0x15a   : > { %4090 = vmatprep.mubr.bf16.mxu1 %v6170_v48  ;;  %v6173_v53 = vld [vmem:[#allocation31_spill] sm:$0xff] }
 0x15b   : > { %v3604_v36 = vpop.f32.mrb[28].mxu0 }
 0x15c   : > { %v3716_v5 = vpop.f32.mrb[28].mxu1  ;;  %v3605_v58 = vpop.f32.mrb[29].mxu0 }
 0x15d   : > { %v5579_v19 = vadd.f32 %v3605_v58, %v3604_v36  ;;  %v3717_v25 = vpop.f32.mrb[29].mxu1  ;;  %v3607_v30 = vpop.f32.mrb[30].mxu0 }
 0x15e   : > { %v5581_v8 = vadd.f32 %v3717_v25, %v3716_v5  ;;  %v3719_v26 = vpop.f32.mrb[30].mxu1  ;;  %v3608_v41 = vpop.f32.mrb[31].mxu0 }
 0x15f   : > { %v5583_v40 = vadd.f32 %v3608_v41, %v3607_v30  ;;  %v3720_v22 = vpop.f32.mrb[31].mxu1 }
 0x160   : > { %v5585_v54 = vadd.f32 %v3720_v22, %v3719_v26  ;;  %3300 = vmatmul.mubr.msk.bf16.gmra.mrb[136].mxu0 %vm4604_vm11, %v5181_v15  ;;  %v6174_v15 = vld [vmem:[#allocation10_spill] sm:$0xff] }
 0x161   : > { %4091 = vmatmul.mubr.bf16.gmra.mrb[8].mxu1 %v6171_v23  ;;  %2343 = vmatprep.mubr.bf16.mxu0 %v6172_v14 }
 0x162   : > { %4094 = vmatprep.mubr.bf16.mxu1 %v6173_v53 }
 0x163   : > { %v3610_v48 = vpop.f32.mrb[32].mxu0 }
 0x164   : > { %v3722_v61 = vpop.f32.mrb[32].mxu1  ;;  %v3611_v12 = vpop.f32.mrb[33].mxu0 }
 0x165   : > { %v3612_v51 = vadd.f32 %v3611_v12, %v3610_v48  ;;  %v3723_v10 = vpop.f32.mrb[33].mxu1  ;;  %v3613_v56 = vpop.f32.mrb[34].mxu0 }
 0x166   : > { %v5593_v1 = vadd.f32 %v3723_v10, %v3722_v61  ;;  %v3725_v33 = vpop.f32.mrb[34].mxu1  ;;  %v3614_v7 = vpop.f32.mrb[35].mxu0 }
 0x167   : > { %v3615_v18 = vadd.f32 %v3614_v7, %v3613_v56  ;;  %v3726_v37 = vpop.f32.mrb[35].mxu1 }
 0x168   : > { %v5595_v39 = vadd.f32 %v3726_v37, %v3725_v33  ;;  %3304 = vmatmul.mubr.msk.bf16.gmra.mrb[140].mxu0 %vm4604_vm11, %v6174_v15 }
 0x169   : > { %4095 = vmatmul.mubr.bf16.gmra.mrb[12].mxu1 %v5422_v2 }
 0x16b   : > { %v3616_v23 = vpop.f32.mrb[36].mxu0 }
 0x16c   : > { %v3728_v11 = vpop.f32.mrb[36].mxu1  ;;  %v3617_v59 = vpop.f32.mrb[37].mxu0 }
 0x16d   : > { %v3618_v27 = vadd.f32 %v3617_v59, %v3616_v23  ;;  %v3729_v4 = vpop.f32.mrb[37].mxu1  ;;  %v3619_v0 = vpop.f32.mrb[38].mxu0 }
 0x16e   : > { %v5601_v42 = vadd.f32 %v3729_v4, %v3728_v11  ;;  %v3731_v16 = vpop.f32.mrb[38].mxu1  ;;  %v3620_v32 = vpop.f32.mrb[39].mxu0 }
 0x16f   : > { %v3621_v3 = vadd.f32 %v3620_v32, %v3619_v0  ;;  %v3732_v44 = vpop.f32.mrb[39].mxu1 }
 0x170   : > { %v5603_v24 = vadd.f32 %v3732_v44, %v3731_v16 }
 0x173   : > { %v3622_v38 = vpop.f32.mrb[40].mxu0 }
 0x174   : > { %v3734_v17 = vpop.f32.mrb[40].mxu1  ;;  %v3623_v35 = vpop.f32.mrb[41].mxu0 }
 0x175   : > { %v3624_v50 = vadd.f32 %v3623_v35, %v3622_v38  ;;  %v3735_v36 = vpop.f32.mrb[41].mxu1  ;;  %v3625_v2 = vpop.f32.mrb[42].mxu0 }
 0x176   : > { %v5605_v5 = vadd.f32 %v3735_v36, %v3734_v17  ;;  %v3737_v58 = vpop.f32.mrb[42].mxu1  ;;  %v3626_v25 = vpop.f32.mrb[43].mxu0 }
 0x177   : > { %v3627_v30 = vadd.f32 %v3626_v25, %v3625_v2  ;;  %v3738_v26 = vpop.f32.mrb[43].mxu1 }
 0x178   : > { %v5607_v41 = vadd.f32 %v3738_v26, %v3737_v58 }
 0x17b   : > { %v3628_v22 = vpop.f32.mrb[44].mxu0 }
 0x17c   : > { %v3740_v14 = vpop.f32.mrb[44].mxu1  ;;  %v3629_v53 = vpop.f32.mrb[45].mxu0 }
 0x17d   : > { %v3630_v48 = vadd.f32 %v3629_v53, %v3628_v22  ;;  %v3741_v61 = vpop.f32.mrb[45].mxu1  ;;  %v3631_v12 = vpop.f32.mrb[46].mxu0 }
 0x17e   : > { %v5609_v10 = vadd.f32 %v3741_v61, %v3740_v14  ;;  %v3743_v56 = vpop.f32.mrb[46].mxu1  ;;  %v3632_v33 = vpop.f32.mrb[47].mxu0 }
 0x17f   : > { %v3633_v7 = vadd.f32 %v3632_v33, %v3631_v12  ;;  %v3744_v37 = vpop.f32.mrb[47].mxu1 }
 0x180   : > { %v5611_v15 = vadd.f32 %v3744_v37, %v3743_v56 }
 0x183   : > { %v3634_v23 = vpop.f32.mrb[48].mxu0 }
 0x184   : > { %v3746_v11 = vpop.f32.mrb[48].mxu1  ;;  %v3635_v59 = vpop.f32.mrb[49].mxu0 }
 0x185   : > { %v5613_v4 = vadd.f32 %v3635_v59, %v3634_v23  ;;  %v3747_v0 = vpop.f32.mrb[49].mxu1  ;;  %v3637_v16 = vpop.f32.mrb[50].mxu0 }
 0x186   : > { %v3748_v32 = vadd.f32 %v3747_v0, %v3746_v11  ;;  %v3749_v44 = vpop.f32.mrb[50].mxu1  ;;  %v3638_v38 = vpop.f32.mrb[51].mxu0 }
 0x187   : > { %v5615_v17 = vadd.f32 %v3638_v38, %v3637_v16  ;;  %v3750_v35 = vpop.f32.mrb[51].mxu1 }
 0x188   : > { %v5617_v36 = vadd.f32 %v3748_v32, %v3612_v51  ;;  %v3751_v2 = vadd.f32 %v3750_v35, %v3749_v44 }
 0x18a   : > { %v5619_v58 = vadd.f32 %v3751_v2, %v3615_v18 }
 0x18b   : > { %v3640_v25 = vpop.f32.mrb[52].mxu0 }
 0x18c   : > { %v3752_v26 = vpop.f32.mrb[52].mxu1  ;;  %v3641_v22 = vpop.f32.mrb[53].mxu0 }
 0x18d   : > { %v5621_v14 = vadd.f32 %v3641_v22, %v3640_v25  ;;  %v3753_v53 = vpop.f32.mrb[53].mxu1  ;;  %v3643_v61 = vpop.f32.mrb[54].mxu0 }
 0x18e   : > { %v3754_v12 = vadd.f32 %v3753_v53, %v3752_v26  ;;  %v3755_v56 = vpop.f32.mrb[54].mxu1  ;;  %v3644_v33 = vpop.f32.mrb[55].mxu0 }
 0x18f   : > { %v5623_v37 = vadd.f32 %v3644_v33, %v3643_v61  ;;  %v3756_v23 = vpop.f32.mrb[55].mxu1 }
 0x190   : > { %v5625_v11 = vadd.f32 %v3754_v12, %v3618_v27  ;;  %v3757_v51 = vadd.f32 %v3756_v23, %v3755_v56 }
 0x192   : > { %v5627_v59 = vadd.f32 %v3757_v51, %v3621_v3 }
 0x193   : > { %v3646_v18 = vpop.f32.mrb[56].mxu0 }
 0x194   : > { %v3758_v0 = vpop.f32.mrb[56].mxu1  ;;  %v3647_v16 = vpop.f32.mrb[57].mxu0 }
 0x195   : > { %v5629_v32 = vadd.f32 %v3647_v16, %v3646_v18  ;;  %v3759_v44 = vpop.f32.mrb[57].mxu1  ;;  %v3649_v38 = vpop.f32.mrb[58].mxu0 }
 0x196   : > { %v3760_v35 = vadd.f32 %v3759_v44, %v3758_v0  ;;  %v3761_v2 = vpop.f32.mrb[58].mxu1  ;;  %v3650_v25 = vpop.f32.mrb[59].mxu0 }
 0x197   : > { %v5631_v26 = vadd.f32 %v3650_v25, %v3649_v38  ;;  %v3762_v22 = vpop.f32.mrb[59].mxu1 }
 0x198   : > { %v5633_v53 = vadd.f32 %v3760_v35, %v3624_v50  ;;  %v3763_v27 = vadd.f32 %v3762_v22, %v3761_v2 }
 0x19a   : > { %v5635_v61 = vadd.f32 %v3763_v27, %v3627_v30 }
 0x19b   : > { %v3652_v3 = vpop.f32.mrb[60].mxu0 }
 0x19c   : > { %6175 = vst [vmem:[#allocation30_spill] sm:$0xff] %v5635_v61  ;;  %v3764_v12 = vpop.f32.mrb[60].mxu1  ;;  %v3653_v56 = vpop.f32.mrb[61].mxu0 }
 0x19d   : > { %v5637_v33 = vadd.f32 %v3653_v56, %v3652_v3  ;;  %v3765_v23 = vpop.f32.mrb[61].mxu1  ;;  %v3655_v51 = vpop.f32.mrb[62].mxu0 }
 0x19e   : > { %v3766_v18 = vadd.f32 %v3765_v23, %v3764_v12  ;;  %v3767_v16 = vpop.f32.mrb[62].mxu1  ;;  %v3656_v0 = vpop.f32.mrb[63].mxu0 }
 0x19f   : > { %v5639_v44 = vadd.f32 %v3656_v0, %v3655_v51  ;;  %v3768_v38 = vpop.f32.mrb[63].mxu1 }
 0x1a0   : > { %v5641_v25 = vadd.f32 %v3766_v18, %v3630_v48  ;;  %v3769_v50 = vadd.f32 %v3768_v38, %v3767_v16 }
 0x1a2   : > { %v5643_v35 = vadd.f32 %v3769_v50, %v3633_v7 }
 0x1a3   : > { %v3972_v30 = vpop.f32.mrb[64].mxu0 }
 0x1a4   : > { %v1414_v2 = vadd.f32 %v3972_v30, %v5488_v31  ;;  %v3770_v22 = vpop.f32.mrb[64].mxu1  ;;  %v1405_v27 = vpop.f32.mrb[65].mxu0 }
 0x1a5   : > { %v1406_v3 = vadd.f32 %v5464_v47, %v1405_v27  ;;  %v3771_v56 = vpop.f32.mrb[65].mxu1  ;;  %v3973_v61 = vpop.f32.mrb[66].mxu0 }
 0x1a6   : > { %v5648_v12 = vadd.f32 %v5553_v57, %v1414_v2  ;;  %v3772_v23 = vadd.f32 %v3771_v56, %v3770_v22  ;;  %v1417_v51 = vadd.f32 %v3973_v61, %v5491_v13  ;;  %v3773_v48 = vpop.f32.mrb[66].mxu1  ;;  %v1408_v18 = vpop.f32.mrb[67].mxu0 }
 0x1a7   : > { %v5652_v7 = vadd.f32 %v5539_v49, %v1406_v3  ;;  %v1409_v16 = vadd.f32 %v5469_v29, %v1408_v18  ;;  %v3774_v31 = vpop.f32.mrb[67].mxu1 }
 0x1a8   : > { %v5656_v0 = vadd.f32 %v3772_v23, %v5613_v4  ;;  %v5659_v47 = vadd.f32 %v5557_v45, %v1417_v51  ;;  %v3775_v38 = vadd.f32 %v3774_v31, %v3773_v48 }
 0x1a9   : > { %v5662_v57 = vadd.f32 %v5543_v43, %v1409_v16 }
 0x1aa   : > { %v5665_v13 = vadd.f32 %v3775_v38, %v5615_v17 }
 0x1ab   : > { %v3976_v61 = vpop.f32.mrb[68].mxu0 }
 0x1ac   : > { %v1430_v49 = vadd.f32 %v3976_v61, %v5521_v62  ;;  %v3776_v50 = vpop.f32.mrb[68].mxu1  ;;  %v1421_v30 = vpop.f32.mrb[69].mxu0 }
 0x1ad   : > { %v1422_v29 = vadd.f32 %v5505_v21, %v1421_v30  ;;  %v3777_v2 = vpop.f32.mrb[69].mxu1  ;;  %v3977_v4 = vpop.f32.mrb[70].mxu0 }
 0x1ae   : > { %v5670_v22 = vadd.f32 %v5581_v8, %v1430_v49  ;;  %v3778_v45 = vadd.f32 %v3777_v2, %v3776_v50  ;;  %v1433_v27 = vadd.f32 %v3977_v4, %v5523_v63  ;;  %v3779_v43 = vpop.f32.mrb[70].mxu1  ;;  %v1424_v3 = vpop.f32.mrb[71].mxu0 }
 0x1af   : > { %v5674_v17 = vadd.f32 %v5567_v6, %v1422_v29  ;;  %v1425_v56 = vadd.f32 %v5507_v28, %v1424_v3  ;;  %v3780_v62 = vpop.f32.mrb[71].mxu1 }
 0x1b0   : > { %v5678_v23 = vadd.f32 %v3778_v45, %v5621_v14  ;;  %v5681_v21 = vadd.f32 %v5585_v54, %v1433_v27  ;;  %v3781_v51 = vadd.f32 %v3780_v62, %v3779_v43 }
 0x1b1   : > { %v5684_v8 = vadd.f32 %v5571_v60, %v1425_v56 }
 0x1b2   : > { %v5687_v63 = vadd.f32 %v3781_v51, %v5623_v37 }
 0x1b3   : > { %v3980_v48 = vpop.f32.mrb[72].mxu0 }
 0x1b4   : > { %v1446_v6 = vadd.f32 %v3980_v48, %v5551_v20  ;;  %v3782_v18 = vpop.f32.mrb[72].mxu1  ;;  %v1437_v16 = vpop.f32.mrb[73].mxu0 }
 0x1b5   : > { %v1438_v28 = vadd.f32 %v5537_v52, %v1437_v16  ;;  %v3783_v31 = vpop.f32.mrb[73].mxu1  ;;  %v3981_v14 = vpop.f32.mrb[74].mxu0 }
 0x1b6   : > { %v5692_v38 = vadd.f32 %v5601_v42, %v1446_v6  ;;  %v3784_v54 = vadd.f32 %v3783_v31, %v3782_v18  ;;  %v1449_v61 = vadd.f32 %v3981_v14, %v5555_v34  ;;  %v3785_v60 = vpop.f32.mrb[74].mxu1  ;;  %v1440_v49 = vpop.f32.mrb[75].mxu0 }
 0x1b7   : > { %v5696_v37 = vadd.f32 %v5593_v1, %v1438_v28  ;;  %v1441_v50 = vadd.f32 %v5541_v46, %v1440_v49  ;;  %v3786_v20 = vpop.f32.mrb[75].mxu1 }
 0x1b8   : > { %v5700_v30 = vadd.f32 %v3784_v54, %v5629_v32  ;;  %v5703_v52 = vadd.f32 %v5603_v24, %v1449_v61  ;;  %v3787_v29 = vadd.f32 %v3786_v20, %v3785_v60 }
 0x1b9   : > { %v1746_v42 = vadd.f32 %v5595_v39, %v1441_v50 }
 0x1ba   : > { %v5707_v2 = vadd.f32 %v3787_v29, %v5631_v26 }
 0x1bb   : > { %v3984_v34 = vpop.f32.mrb[76].mxu0 }
 0x1bc   : > { %v1462_v4 = vadd.f32 %v3984_v34, %v5579_v19  ;;  %v3788_v1 = vpop.f32.mrb[76].mxu1  ;;  %v1453_v45 = vpop.f32.mrb[77].mxu0 }
 0x1bd   : > { %v1454_v46 = vadd.f32 %v5565_v55, %v1453_v45  ;;  %v3789_v27 = vpop.f32.mrb[77].mxu1  ;;  %v3985_v43 = vpop.f32.mrb[78].mxu0 }
 0x1be   : > { %v5712_v32 = vadd.f32 %v5609_v10, %v1462_v4  ;;  %v3790_v24 = vadd.f32 %v3789_v27, %v3788_v1  ;;  %v1465_v3 = vadd.f32 %v3985_v43, %v5583_v40  ;;  %v3791_v56 = vpop.f32.mrb[78].mxu1  ;;  %v1456_v39 = vpop.f32.mrb[79].mxu0 }
 0x1bf   : > { %v1759_v26 = vadd.f32 %v5605_v5, %v1454_v46  ;;  %v1457_v62 = vadd.f32 %v5569_v9, %v1456_v39  ;;  %v3792_v51 = vpop.f32.mrb[79].mxu1 }
 0x1c0   : > { %v5718_v19 = vadd.f32 %v3790_v24, %v5637_v33  ;;  %v5721_v55 = vadd.f32 %v5611_v15, %v1465_v3  ;;  %v3793_v48 = vadd.f32 %v3792_v51, %v3791_v56 }
 0x1c1   : > { %v1762_v10 = vadd.f32 %v5607_v41, %v1457_v62 }
 0x1c2   : > { %v5725_v6 = vadd.f32 %v3793_v48, %v5639_v44 }
 0x1c3   : > { %v3834_v40 = vpop.f32.mrb[80].mxu0 }
 0x1c4   : > { %v3835_v18 = vpop.f32.mrb[81].mxu0 }
 0x1c5   : > { %v3836_v16 = vadd.f32 %v3835_v18, %v3834_v40  ;;  %v3837_v28 = vpop.f32.mrb[82].mxu0 }
 0x1c6   : > { %v3838_v5 = vpop.f32.mrb[83].mxu0 }
 0x1c7   : > { %v3839_v31 = vadd.f32 %v3838_v5, %v3837_v28  ;;  %v5728_v9 = vadd.f32 %v3836_v16, %v5652_v7 }
 0x1c9   : > { %v5731_v33 = vadd.f32 %v3839_v31, %v5662_v57 }
 0x1cb   : > { %v3840_v15 = vpop.f32.mrb[84].mxu0 }
 0x1cc   : > { %v3841_v14 = vpop.f32.mrb[85].mxu0 }
 0x1cd   : > { %v3842_v54 = vadd.f32 %v3841_v14, %v3840_v15  ;;  %v3843_v61 = vpop.f32.mrb[86].mxu0 }
 0x1ce   : > { %v3844_v41 = vpop.f32.mrb[87].mxu0 }
 0x1cf   : > { %v3845_v60 = vadd.f32 %v3844_v41, %v3843_v61  ;;  %v4116_v44 = vadd.f32 %v3842_v54, %v5648_v12 }
 0x1d1   : > { %v5735_v49 = vadd.f32 %v3845_v60, %v5659_v47 }
 0x1d3   : > { %v3846_v50 = vpop.f32.mrb[88].mxu0 }
 0x1d4   : > { %v3847_v20 = vpop.f32.mrb[89].mxu0 }
 0x1d5   : > { %v3848_v29 = vadd.f32 %v3847_v20, %v3846_v50  ;;  %v3849_v34 = vpop.f32.mrb[90].mxu0 }
 0x1d6   : > { %v3850_v7 = vpop.f32.mrb[91].mxu0 }
 0x1d7   : > { %v3851_v4 = vadd.f32 %v3850_v7, %v3849_v34  ;;  %v5738_v57 = vadd.f32 %v3848_v29, %v5674_v17 }
 0x1d9   : > { %v5741_v1 = vadd.f32 %v3851_v4, %v5684_v8 }
 0x1db   : > { %v3852_v45 = vpop.f32.mrb[92].mxu0 }
 0x1dc   : > { %v3853_v46 = vpop.f32.mrb[93].mxu0 }
 0x1dd   : > { %v3854_v27 = vadd.f32 %v3853_v46, %v3852_v45  ;;  %v3855_v43 = vpop.f32.mrb[94].mxu0 }
 0x1de   : > { %v3856_v12 = vpop.f32.mrb[95].mxu0 }
 0x1df   : > { %v3857_v24 = vadd.f32 %v3856_v12, %v3855_v43  ;;  %v5744_v47 = vadd.f32 %v3854_v27, %v5670_v22 }
 0x1e1   : > { %v5747_v3 = vadd.f32 %v3857_v24, %v5681_v21 }
 0x1e3   : > { %v3858_v56 = vpop.f32.mrb[96].mxu0 }
 0x1e4   : > { %v3859_v39 = vpop.f32.mrb[97].mxu0 }
 0x1e5   : > { %v3860_v62 = vadd.f32 %v3859_v39, %v3858_v56  ;;  %v3861_v17 = vpop.f32.mrb[98].mxu0 }
 0x1e6   : > { %v3862_v51 = vpop.f32.mrb[99].mxu0 }
 0x1e7   : > { %v3863_v48 = vadd.f32 %v3862_v51, %v3861_v17  ;;  %v5750_v8 = vadd.f32 %v3860_v62, %v5696_v37 }
 0x1e9   : > { %v5752_v40 = vadd.f32 %v3863_v48, %v1746_v42 }
 0x1eb   : > { %v3864_v18 = vpop.f32.mrb[100].mxu0 }
 0x1ec   : > { %v3865_v16 = vpop.f32.mrb[101].mxu0 }
 0x1ed   : > { %v3866_v28 = vadd.f32 %v3865_v16, %v3864_v18  ;;  %v3867_v22 = vpop.f32.mrb[102].mxu0 }
 0x1ee   : > { %v3868_v5 = vpop.f32.mrb[103].mxu0 }
 0x1ef   : > { %v3869_v31 = vadd.f32 %v3868_v5, %v3867_v22  ;;  %v5755_v21 = vadd.f32 %v3866_v28, %v5692_v38 }
 0x1f1   : > { %v5758_v15 = vadd.f32 %v3869_v31, %v5703_v52 }
 0x1f3   : > { %v3870_v14 = vpop.f32.mrb[104].mxu0 }
 0x1f4   : > { %v3871_v54 = vpop.f32.mrb[105].mxu0 }
 0x1f5   : > { %v3872_v61 = vadd.f32 %v3871_v54, %v3870_v14  ;;  %v3873_v37 = vpop.f32.mrb[106].mxu0 }
 0x1f6   : > { %v3874_v41 = vpop.f32.mrb[107].mxu0 }
 0x1f7   : > { %v3875_v42 = vadd.f32 %v3874_v41, %v3873_v37  ;;  %v5760_v60 = vadd.f32 %v3872_v61, %v1759_v26 }
 0x1f9   : > { %v5762_v50 = vadd.f32 %v3875_v42, %v1762_v10 }
 0x1fb   : > { %v3876_v20 = vpop.f32.mrb[108].mxu0 }
 0x1fc   : > { %v3877_v29 = vpop.f32.mrb[109].mxu0 }
 0x1fd   : > { %v3878_v34 = vadd.f32 %v3877_v29, %v3876_v20  ;;  %v3879_v7 = vpop.f32.mrb[110].mxu0 }
 0x1fe   : > { %v3880_v38 = vpop.f32.mrb[111].mxu0 }
 0x1ff   : > { %v3881_v4 = vadd.f32 %v3880_v38, %v3879_v7  ;;  %v5766_v52 = vadd.f32 %v3878_v34, %v5712_v32 }
 0x201   : > { %v5769_v45 = vadd.f32 %v3881_v4, %v5721_v55 }
 0x203   : > { %v3882_v46 = vpop.f32.mrb[112].mxu0 }
 0x204   : > { %v4068_v26 = vpop.f32.mrb[80].mxu1  ;;  %v3883_v27 = vpop.f32.mrb[113].mxu0 }
 0x205   : > { %v5771_v10 = vadd.f32 %v4116_v44, %v4068_v26  ;;  %v3884_v43 = vadd.f32 %v3883_v27, %v3882_v46  ;;  %v2386_v12 = vpop.f32.mrb[81].mxu1  ;;  %v3885_v24 = vpop.f32.mrb[114].mxu0 }
 0x206   : > { %v5774_v56 = vadd.f32 %v5728_v9, %v2386_v12  ;;  %v4069_v39 = vpop.f32.mrb[82].mxu1  ;;  %v3886_v62 = vpop.f32.mrb[115].mxu0 }
 0x207   : > { %v5777_v32 = vadd.f32 %v5735_v49, %v4069_v39  ;;  %v3887_v17 = vadd.f32 %v3886_v62, %v3885_v24  ;;  %v2389_v55 = vpop.f32.mrb[83].mxu1  ;;  %v5780_v51 = vadd.f32 %v5617_v36, %v3884_v43 }
 0x208   : > { %v5788_v9 = vadd.f32 %v5731_v33, %v2389_v55 }
 0x209   : > { %v3444_v44 = vpack.c.bf16 %v5777_v32, %v5771_v10  ;;  %v5793_v49 = vadd.f32 %v5619_v58, %v3887_v17 }
 0x20a   : > { %v3439_v36 = vpack.c.bf16 %v5788_v9, %v5774_v56  ;;  %v2705_v48 = vadd.f32 %v5788_v9, %v5774_v56 }
 0x20b   : > { %3531 = vst [vmem:[%s5785_s27 + $0x8] sm:$0xff] %v3444_v44   ;;  %v3888_v18 = vpop.f32.mrb[116].mxu0 }
 0x20c   : > { %3440 = vst [vmem:[%s5785_s27] sm:$0xff] %v3439_v36   ;;  %v2706_v16 = vadd.f32 %v5771_v10, %v2705_v48  ;;  %v4072_v28 = vpop.f32.mrb[84].mxu1  ;;  %v3889_v33 = vpop.f32.mrb[117].mxu0 }
 0x20d   : > { %v5803_v22 = vadd.f32 %v5744_v47, %v4072_v28  ;;  %v3890_v5 = vadd.f32 %v3889_v33, %v3888_v18  ;;  %v2402_v31 = vpop.f32.mrb[85].mxu1  ;;  %v3891_v58 = vpop.f32.mrb[118].mxu0  ;;  %v6176_v18 = vld [vmem:[#allocation30_spill] sm:$0xff] }
 0x20e   : > { %v5806_v14 = vadd.f32 %v5738_v57, %v2402_v31  ;;  %v2707_v54 = vadd.f32 %v5777_v32, %v2706_v16  ;;  %v4073_v61 = vpop.f32.mrb[86].mxu1  ;;  %v3892_v37 = vpop.f32.mrb[119].mxu0 }
 0x20f   : > { %v5810_v41 = vadd.f32 %v5747_v3, %v4073_v61  ;;  %v3893_v42 = vadd.f32 %v3892_v37, %v3891_v58  ;;  %v2405_v20 = vpop.f32.mrb[87].mxu1  ;;  %v4179_v47 = vadd.f32 %v5625_v11, %v3890_v5 }
 0x210   : > { %v2708_v29 = vadd.f32 %v5806_v14, %v2707_v54  ;;  %v5815_v34 = vadd.f32 %v5741_v1, %v2405_v20 }
 0x211   : > { %v3454_v57 = vpack.c.bf16 %v5810_v41, %v5803_v22  ;;  %v5820_v7 = vadd.f32 %v5627_v59, %v3893_v42 }
 0x212   : > { %v3449_v38 = vpack.c.bf16 %v5815_v34, %v5806_v14  ;;  %v2709_v3 = vadd.f32 %v5815_v34, %v2708_v29 }
 0x213   : > { %3533 = vst [vmem:[%s5785_s27 + $0x18] sm:$0xff] %v3454_v57   ;;  %v3894_v4 = vpop.f32.mrb[120].mxu0 }
 0x214   : > { %3532 = vst [vmem:[%s5785_s27 + $0x10] sm:$0xff] %v3449_v38   ;;  %v2710_v11 = vadd.f32 %v5803_v22, %v2709_v3  ;;  %v4076_v46 = vpop.f32.mrb[88].mxu1  ;;  %v3895_v26 = vpop.f32.mrb[121].mxu0 }
 0x215   : > { %v5829_v1 = vadd.f32 %v5755_v21, %v4076_v46  ;;  %v3896_v27 = vadd.f32 %v3895_v26, %v3894_v4  ;;  %v2418_v43 = vpop.f32.mrb[89].mxu1  ;;  %v3897_v59 = vpop.f32.mrb[122].mxu0 }
 0x216   : > { %v5832_v12 = vadd.f32 %v5750_v8, %v2418_v43  ;;  %v2711_v24 = vadd.f32 %v5810_v41, %v2710_v11  ;;  %v4077_v39 = vpop.f32.mrb[90].mxu1  ;;  %v3898_v62 = vpop.f32.mrb[123].mxu0 }
 0x217   : > { %v5836_v17 = vadd.f32 %v5758_v15, %v4077_v39  ;;  %v3899_v55 = vadd.f32 %v3898_v62, %v3897_v59  ;;  %v2421_v44 = vpop.f32.mrb[91].mxu1  ;;  %v5839_v21 = vadd.f32 %v5633_v53, %v3896_v27 }
 0x218   : > { %v2712_v36 = vadd.f32 %v5832_v12, %v2711_v24  ;;  %v5843_v48 = vadd.f32 %v5752_v40, %v2421_v44 }
 0x219   : > { %v3464_v8 = vpack.c.bf16 %v5836_v17, %v5829_v1  ;;  %v5848_v16 = vadd.f32 %v6176_v18, %v3899_v55 }
 0x21a   : > { %v3459_v15 = vpack.c.bf16 %v5843_v48, %v5832_v12  ;;  %v2713_v28 = vadd.f32 %v5843_v48, %v2712_v36 }
 0x21b   : > { %3535 = vst [vmem:[%s5785_s27 + $0x28] sm:$0xff] %v3464_v8   ;;  %v3900_v33 = vpop.f32.mrb[124].mxu0 }
 0x21c   : > { %3534 = vst [vmem:[%s5785_s27 + $0x20] sm:$0xff] %v3459_v15   ;;  %v2714_v53 = vadd.f32 %v5829_v1, %v2713_v28  ;;  %v4080_v5 = vpop.f32.mrb[92].mxu1  ;;  %v3901_v31 = vpop.f32.mrb[125].mxu0 }
 0x21d   : > { %v5857_v40 = vadd.f32 %v5766_v52, %v4080_v5  ;;  %v3902_v58 = vadd.f32 %v3901_v31, %v3900_v33  ;;  %v2434_v54 = vpop.f32.mrb[93].mxu1  ;;  %v3903_v61 = vpop.f32.mrb[126].mxu0 }
 0x21e   : > { %v5860_v37 = vadd.f32 %v5760_v60, %v2434_v54  ;;  %v2715_v42 = vadd.f32 %v5836_v17, %v2714_v53  ;;  %v4081_v20 = vpop.f32.mrb[94].mxu1  ;;  %v3904_v29 = vpop.f32.mrb[127].mxu0 }
 0x21f   : > { %v5864_v57 = vadd.f32 %v5769_v45, %v4081_v20  ;;  %v3905_v38 = vadd.f32 %v3904_v29, %v3903_v61  ;;  %v2437_v3 = vpop.f32.mrb[95].mxu1  ;;  %v4191_v52 = vadd.f32 %v5641_v25, %v3902_v58 }
 0x220   : > { %v2716_v4 = vadd.f32 %v5860_v37, %v2715_v42  ;;  %v5869_v11 = vadd.f32 %v5762_v50, %v2437_v3 }
 0x221   : > { %v3474_v60 = vpack.c.bf16 %v5864_v57, %v5857_v40  ;;  %v4197_v46 = vadd.f32 %v5643_v35, %v3905_v38 }
 0x222   : > { %v3469_v26 = vpack.c.bf16 %v5869_v11, %v5860_v37  ;;  %v2717_v45 = vadd.f32 %v5869_v11, %v2716_v4 }
 0x223   : > { %3537 = vst [vmem:[%s5785_s27 + $0x38] sm:$0xff] %v3474_v60   ;;  %v3906_v27 = vpop.f32.mrb[128].mxu0 }
 0x224   : > { %3536 = vst [vmem:[%s5785_s27 + $0x30] sm:$0xff] %v3469_v26   ;;  %v2718_v25 = vadd.f32 %v5857_v40, %v2717_v45  ;;  %v4084_v43 = vpop.f32.mrb[0].mxu1  ;;  %v3907_v59 = vpop.f32.mrb[129].mxu0 }
 0x225   : > { %v5880_v24 = vadd.f32 %v4179_v47, %v4084_v43  ;;  %v3908_v50 = vadd.f32 %v3907_v59, %v3906_v27  ;;  %v2450_v39 = vpop.f32.mrb[1].mxu1  ;;  %v3909_v62 = vpop.f32.mrb[130].mxu0 }
 0x226   : > { %v5883_v35 = vadd.f32 %v5780_v51, %v2450_v39  ;;  %v2719_v55 = vadd.f32 %v5864_v57, %v2718_v25  ;;  %v4085_v44 = vpop.f32.mrb[2].mxu1  ;;  %v3910_v36 = vpop.f32.mrb[131].mxu0 }
 0x227   : > { %v5887_v8 = vadd.f32 %v5820_v7, %v4085_v44  ;;  %v3911_v18 = vadd.f32 %v3910_v36, %v3909_v62  ;;  %v2453_v15 = vpop.f32.mrb[3].mxu1  ;;  %v4206_v47 = vadd.f32 %v5656_v0, %v3908_v50 }
 0x228   : > { %v2720_v28 = vadd.f32 %v5883_v35, %v2719_v55  ;;  %v5892_v33 = vadd.f32 %v5793_v49, %v2453_v15 }
 0x229   : > { %v3484_v51 = vpack.c.bf16 %v5887_v8, %v5880_v24  ;;  %v4212_v53 = vadd.f32 %v5665_v13, %v3911_v18 }
 0x22a   : > { %v3479_v5 = vpack.c.bf16 %v5892_v33, %v5883_v35  ;;  %v2721_v7 = vadd.f32 %v5892_v33, %v2720_v28 }
 0x22b   : > { %3539 = vst [vmem:[%s5785_s27 + $0x48] sm:$0xff] %v3484_v51   ;;  %v3912_v31 = vpop.f32.mrb[132].mxu0 }
 0x22c   : > { %3538 = vst [vmem:[%s5785_s27 + $0x40] sm:$0xff] %v3479_v5   ;;  %v2722_v0 = vadd.f32 %v5880_v24, %v2721_v7  ;;  %v4088_v58 = vpop.f32.mrb[4].mxu1  ;;  %v3913_v54 = vpop.f32.mrb[133].mxu0 }
 0x22d   : > { %v5903_v61 = vadd.f32 %v4191_v52, %v4088_v58  ;;  %v3914_v49 = vadd.f32 %v3913_v54, %v3912_v31  ;;  %v2466_v42 = vpop.f32.mrb[5].mxu1  ;;  %v3915_v20 = vpop.f32.mrb[134].mxu0 }
 0x22e   : > { %v5906_v13 = vadd.f32 %v5839_v21, %v2466_v42  ;;  %v2723_v29 = vadd.f32 %v5887_v8, %v2722_v0  ;;  %v4089_v38 = vpop.f32.mrb[6].mxu1  ;;  %v3916_v3 = vpop.f32.mrb[135].mxu0 }
 0x22f   : > { %v5909_v4 = vadd.f32 %v4197_v46, %v4089_v38  ;;  %v3917_v60 = vadd.f32 %v3916_v3, %v3915_v20  ;;  %v2469_v26 = vpop.f32.mrb[7].mxu1  ;;  %v4203_v45 = vadd.f32 %v5678_v23, %v3914_v49 }
 0x230   : > { %v2724_v52 = vadd.f32 %v5906_v13, %v2723_v29  ;;  %v5914_v27 = vadd.f32 %v5848_v16, %v2469_v26 }
 0x231   : > { %v3494_v21 = vpack.c.bf16 %v5909_v4, %v5903_v61  ;;  %v4209_v25 = vadd.f32 %v5687_v63, %v3917_v60 }
 0x232   : > { %v3489_v43 = vpack.c.bf16 %v5914_v27, %v5906_v13  ;;  %v2725_v46 = vadd.f32 %v5914_v27, %v2724_v52 }
 0x233   : > { %3541 = vst [vmem:[%s5785_s27 + $0x58] sm:$0xff] %v3494_v21   ;;  %v3918_v59 = vpop.f32.mrb[136].mxu0 }
 0x234   : > { %3540 = vst [vmem:[%s5785_s27 + $0x50] sm:$0xff] %v3489_v43   ;;  %v2726_v23 = vadd.f32 %v5903_v61, %v2725_v46  ;;  %v4092_v50 = vpop.f32.mrb[8].mxu1  ;;  %v3919_v39 = vpop.f32.mrb[137].mxu0 }
 0x235   : > { %v5925_v62 = vadd.f32 %v4203_v45, %v4092_v50  ;;  %v3920_v16 = vadd.f32 %v3919_v39, %v3918_v59  ;;  %v2482_v55 = vpop.f32.mrb[9].mxu1  ;;  %v3921_v44 = vpop.f32.mrb[138].mxu0 }
 0x236   : > { %v5927_v36 = vadd.f32 %v4206_v47, %v2482_v55  ;;  %v2727_v63 = vadd.f32 %v5909_v4, %v2726_v23  ;;  %v4093_v18 = vpop.f32.mrb[10].mxu1  ;;  %v3922_v15 = vpop.f32.mrb[139].mxu0 }
 0x237   : > { %v5930_v28 = vadd.f32 %v4209_v25, %v4093_v18  ;;  %v3923_v51 = vadd.f32 %v3922_v15, %v3921_v44  ;;  %v2485_v5 = vpop.f32.mrb[11].mxu1  ;;  %v4218_v7 = vadd.f32 %v5700_v30, %v3920_v16 }
 0x238   : > { %v2728_v31 = vadd.f32 %v5927_v36, %v2727_v63  ;;  %v5934_v0 = vadd.f32 %v4212_v53, %v2485_v5 }
 0x239   : > { %v3504_v58 = vpack.c.bf16 %v5930_v28, %v5925_v62  ;;  %v4224_v47 = vadd.f32 %v5707_v2, %v3923_v51 }
 0x23a   : > { %v3499_v54 = vpack.c.bf16 %v5934_v0, %v5927_v36  ;;  %v2729_v49 = vadd.f32 %v5934_v0, %v2728_v31 }
 0x23b   : > { %3543 = vst [vmem:[%s5785_s27 + $0x68] sm:$0xff] %v3504_v58   ;;  %v3924_v42 = vpop.f32.mrb[140].mxu0 }
 0x23c   : > { %3542 = vst [vmem:[%s5785_s27 + $0x60] sm:$0xff] %v3499_v54   ;;  %v2730_v20 = vadd.f32 %v5925_v62, %v2729_v49  ;;  %v4096_v30 = vpop.f32.mrb[12].mxu1  ;;  %v3925_v29 = vpop.f32.mrb[141].mxu0 }
 0x23d   : > { %v3926_v38 = vadd.f32 %v3925_v29, %v3924_v42  ;;  %v2498_v53 = vpop.f32.mrb[13].mxu1  ;;  %v3927_v3 = vpop.f32.mrb[142].mxu0 }
 0x23e   : > { %v5945_v60 = vadd.f32 %v4218_v7, %v2498_v53  ;;  %v2731_v2 = vadd.f32 %v5930_v28, %v2730_v20  ;;  %v4097_v26 = vpop.f32.mrb[14].mxu1  ;;  %v3928_v45 = vpop.f32.mrb[143].mxu0 }
 0x23f   : > { %v4215_v52 = vadd.f32 %v5718_v19, %v3926_v38  ;;  %v3929_v21 = vadd.f32 %v3928_v45, %v3927_v3  ;;  %v2501_v25 = vpop.f32.mrb[15].mxu1 }
 0x240   : > { %v2732_v43 = vadd.f32 %v5945_v60, %v2731_v2  ;;  %v5950_v46 = vadd.f32 %v4224_v47, %v2501_v25 }
 0x241   : > { %v5952_v59 = vadd.f32 %v4215_v52, %v4096_v30  ;;  %v4221_v23 = vadd.f32 %v5725_v6, %v3929_v21 }
 0x242   : > { %v3509_v50 = vpack.c.bf16 %v5950_v46, %v5945_v60  ;;  %v2733_v39 = vadd.f32 %v5950_v46, %v2732_v43 }
 0x243   : > { %v5958_v16 = vadd.f32 %v4221_v23, %v4097_v26 }
 0x244   : > { %3544 = vst [vmem:[%s5785_s27 + $0x70] sm:$0xff] %v3509_v50   ;;  %v2734_v19 = vadd.f32 %v5952_v59, %v2733_v39 }
 0x245   : > { %v3514_v55 = vpack.c.bf16 %v5958_v16, %v5952_v59 }
 0x246   : > { %v2735_v44 = vadd.f32 %v5958_v16, %v2734_v19 }
 0x247   : > { %3545 = vst [vmem:[%s5785_s27 + $0x78] sm:$0xff] %v3514_v55  }
 0x248   : > { %v2736_v63 = vrot.slane %v2735_v44, 4 }
 0x24a   : > { %v2737_v18 = vadd.f32 %v2736_v63, %v2735_v44 }
 0x24c   : > { %v2738_v15 = vrot.slane %v2737_v18, 2 }
 0x24e   : > { %v2739_v6 = vadd.f32 %v2738_v15, %v2737_v18 }
 0x250   : > { %v2740_v51 = vrot.slane %v2739_v6, 1 }
 0x252   : > { %v5966_v5 = vadd.f32 %v2740_v51, %v2739_v6 }
 0x254   : > { %v5969_v7 = vmul.f32 0.00390625, %v5966_v5 }
 0x256   : > { %v2743_v31 = vsub.f32 %v5774_v56, %v5969_v7  ;;  %v2744_v58 = vsub.f32 %v5788_v9, %v5969_v7  ;;  %v2745_v47 = vsub.f32 %v5771_v10, %v5969_v7  ;;  %v2746_v42 = vsub.f32 %v5777_v32, %v5969_v7 }
 0x257   : > { %v2747_v20 = vsub.f32 %v5806_v14, %v5969_v7  ;;  %v2748_v38 = vsub.f32 %v5815_v34, %v5969_v7  ;;  %v2749_v9 = vsub.f32 %v5803_v22, %v5969_v7  ;;  %v2750_v2 = vsub.f32 %v5810_v41, %v5969_v7 }
 0x258   : > { %v2775_v54 = vmul.f32 %v2743_v31, %v2743_v31  ;;  %v2776_v49 = vmul.f32 %v2744_v58, %v2744_v58  ;;  %v2777_v30 = vmul.f32 %v2745_v47, %v2745_v47  ;;  %v2778_v56 = vmul.f32 %v2746_v42, %v2746_v42 }
 0x259   : > { %v2779_v3 = vmul.f32 %v2747_v20, %v2747_v20  ;;  %v2780_v26 = vmul.f32 %v2748_v38, %v2748_v38  ;;  %v2751_v14 = vsub.f32 %v5832_v12, %v5969_v7  ;;  %v2781_v45 = vmul.f32 %v2749_v9, %v2749_v9 }
 0x25a   : > { %v2807_v29 = vadd.f32 %v2776_v49, %v2775_v54  ;;  %v2752_v34 = vsub.f32 %v5843_v48, %v5969_v7  ;;  %v2782_v21 = vmul.f32 %v2750_v2, %v2750_v2  ;;  %v2753_v22 = vsub.f32 %v5829_v1, %v5969_v7 }
 0x25b   : > { %v2783_v43 = vmul.f32 %v2751_v14, %v2751_v14  ;;  %v2754_v41 = vsub.f32 %v5836_v17, %v5969_v7  ;;  %v2755_v12 = vsub.f32 %v5860_v37, %v5969_v7  ;;  %v2756_v48 = vsub.f32 %v5869_v11, %v5969_v7 }
 0x25c   : > { %v2808_v53 = vadd.f32 %v2807_v29, %v2777_v30  ;;  %v2784_v50 = vmul.f32 %v2752_v34, %v2752_v34  ;;  %v2785_v19 = vmul.f32 %v2753_v22, %v2753_v22  ;;  %v2757_v1 = vsub.f32 %v5857_v40, %v5969_v7 }
 0x25d   : > { %v2786_v44 = vmul.f32 %v2754_v41, %v2754_v41  ;;  %v2787_v18 = vmul.f32 %v2755_v12, %v2755_v12  ;;  %v2758_v17 = vsub.f32 %v5864_v57, %v5969_v7  ;;  %v2788_v6 = vmul.f32 %v2756_v48, %v2756_v48 }
 0x25e   : > { %v2809_v10 = vadd.f32 %v2808_v53, %v2778_v56  ;;  %v2759_v37 = vsub.f32 %v5883_v35, %v5969_v7  ;;  %v2789_v31 = vmul.f32 %v2757_v1, %v2757_v1  ;;  %v2760_v11 = vsub.f32 %v5892_v33, %v5969_v7 }
 0x25f   : > { %v2790_v47 = vmul.f32 %v2758_v17, %v2758_v17  ;;  %v2761_v40 = vsub.f32 %v5880_v24, %v5969_v7  ;;  %v2762_v57 = vsub.f32 %v5887_v8, %v5969_v7  ;;  %v2763_v35 = vsub.f32 %v5906_v13, %v5969_v7 }
 0x260   : > { %v2810_v32 = vadd.f32 %v2809_v10, %v2779_v3  ;;  %v2791_v49 = vmul.f32 %v2759_v37, %v2759_v37  ;;  %v2792_v20 = vmul.f32 %v2760_v11, %v2760_v11  ;;  %v2764_v33 = vsub.f32 %v5914_v27, %v5969_v7 }
 0x261   : > { %v2793_v29 = vmul.f32 %v2761_v40, %v2761_v40  ;;  %v2794_v56 = vmul.f32 %v2762_v57, %v2762_v57  ;;  %v2765_v24 = vsub.f32 %v5903_v61, %v5969_v7  ;;  %v2795_v9 = vmul.f32 %v2763_v35, %v2763_v35 }
 0x262   : > { %v2811_v52 = vadd.f32 %v2810_v32, %v2780_v26  ;;  %v2766_v8 = vsub.f32 %v5909_v4, %v5969_v7  ;;  %v2796_v10 = vmul.f32 %v2764_v33, %v2764_v33  ;;  %v2767_v13 = vsub.f32 %v5927_v36, %v5969_v7 }
 0x263   : > { %v2797_v26 = vmul.f32 %v2765_v24, %v2765_v24  ;;  %v2768_v27 = vsub.f32 %v5934_v0, %v5969_v7  ;;  %v2769_v61 = vsub.f32 %v5925_v62, %v5969_v7  ;;  %v2770_v4 = vsub.f32 %v5930_v28, %v5969_v7 }
 0x264   : > { %v2812_v25 = vadd.f32 %v2811_v52, %v2781_v45  ;;  %v2798_v14 = vmul.f32 %v2766_v8, %v2766_v8  ;;  %v2799_v52 = vmul.f32 %v2767_v13, %v2767_v13  ;;  %v2771_v36 = vsub.f32 %v5945_v60, %v5969_v7 }
 0x265   : > { %v2801_v22 = vmul.f32 %v2769_v61, %v2769_v61  ;;  %v2772_v0 = vsub.f32 %v5950_v46, %v5969_v7  ;;  %v2773_v62 = vsub.f32 %v5952_v59, %v5969_v7  ;;  %v2774_v28 = vsub.f32 %v5958_v16, %v5969_v7 }
 0x266   : > { %v2813_v23 = vadd.f32 %v2812_v25, %v2782_v21  ;;  %v2800_v21 = vmul.f32 %v2768_v27, %v2768_v27 }
 0x267   : > { %v2804_v12 = vmul.f32 %v2772_v0, %v2772_v0  ;;  %v2806_v48 = vmul.f32 %v2774_v28, %v2774_v28 }
 0x268   : > { %v2814_v39 = vadd.f32 %v2813_v23, %v2783_v43  ;;  %v2802_v23 = vmul.f32 %v2770_v4, %v2770_v4 }
 0x26a   : > { %v2815_v55 = vadd.f32 %v2814_v39, %v2784_v50  ;;  %v2803_v50 = vmul.f32 %v2771_v36, %v2771_v36 }
 0x26c   : > { %v2816_v63 = vadd.f32 %v2815_v55, %v2785_v19  ;;  %v2805_v55 = vmul.f32 %v2773_v62, %v2773_v62 }
 0x26e   : > { %v2817_v15 = vadd.f32 %v2816_v63, %v2786_v44 }
 0x270   : > { %v2818_v51 = vadd.f32 %v2817_v15, %v2787_v18 }
 0x272   : > { %v2819_v58 = vadd.f32 %v2818_v51, %v2788_v6 }
 0x274   : > { %v2820_v54 = vadd.f32 %v2819_v58, %v2789_v31 }
 0x276   : > { %v2821_v42 = vadd.f32 %v2820_v54, %v2790_v47 }
 0x278   : > { %v2822_v30 = vadd.f32 %v2821_v42, %v2791_v49 }
 0x27a   : > { %v2823_v38 = vadd.f32 %v2822_v30, %v2792_v20 }
 0x27c   : > { %v2824_v53 = vadd.f32 %v2823_v38, %v2793_v29 }
 0x27e   : > { %v2825_v3 = vadd.f32 %v2824_v53, %v2794_v56 }
 0x280   : > { %v2826_v2 = vadd.f32 %v2825_v3, %v2795_v9 }
 0x282   : > { %v2827_v32 = vadd.f32 %v2826_v2, %v2796_v10 }
 0x284   : > { %v2828_v45 = vadd.f32 %v2827_v32, %v2797_v26 }
 0x286   : > { %v2829_v34 = vadd.f32 %v2828_v45, %v2798_v14 }
 0x288   : > { %v2830_v25 = vadd.f32 %v2829_v34, %v2799_v52 }
 0x28a   : > { %v2831_v43 = vadd.f32 %v2830_v25, %v2800_v21 }
 0x28c   : > { %v2832_v41 = vadd.f32 %v2831_v43, %v2801_v22 }
 0x28e   : > { %v2833_v39 = vadd.f32 %v2832_v41, %v2802_v23 }
 0x290   : > { %v2834_v19 = vadd.f32 %v2833_v39, %v2803_v50 }
 0x292   : > { %v2835_v60 = vadd.f32 %v2834_v19, %v2804_v12 }
 0x294   : > { %v2836_v44 = vadd.f32 %v2835_v60, %v2805_v55 }
 0x296   : > { %v2837_v63 = vadd.f32 %v2836_v44, %v2806_v48 }
 0x298   : > { %v2838_v1 = vrot.slane %v2837_v63, 4 }
 0x29a   : > { %v2839_v46 = vadd.f32 %v2838_v1, %v2837_v63 }
 0x29c   : > { %v2840_v18 = vrot.slane %v2839_v46, 2 }
 0x29e   : > { %v2841_v15 = vadd.f32 %v2840_v18, %v2839_v46 }
 0x2a0   : > { %v2842_v17 = vrot.slane %v2841_v15, 1 }
 0x2a2   : > { %v2843_v59 = vadd.f32 %v2842_v17, %v2841_v15 }
 0x2a4   : > { %v2844_v16 = vsel %vm509_vm0, %v5966_v5, %v2843_v59 }
 0x2a5   : > { %2845 = vst [vmem:[%s236_s30] sm:$0x3] %v2844_v16 }
 0x2a6 PF: > { %s16_s18 = sadd.s32 1, %s4364_s18  }
 0x2a7   : > { %p13_p5 = scmp.ge.s32.totalorder %s16_s18, 4  }
 0x2a9   :  { %15 = sbr.rel (!%p13_p5) target bundleno = 1 (0x1), region = 80 }

</bundles_post_ra>
